<compile_context>
chip_gen: v5e
topology: v5e:2x2
jax: 0.10.0
libtpu: 0.0.40
codegen_flags: <defaults>
</compile_context>

<pallas_src>
import functools

import jax
import jax.numpy as jnp
from jax.experimental import pallas as pl
from jax.experimental.pallas import tpu as pltpu

# Tap enumeration order; must match the (kH, kW) flattening of the weights.
_TAP_OFFSETS = tuple((dy, dx) for dy in (-1, 0, 1) for dx in (-1, 0, 1))


# ----------------------------------------------------------------------------
# host-side helpers (plain JAX glue)
# ----------------------------------------------------------------------------
def _round_up(x, m):
    return (x + m - 1) // m * m


def _tap_masks(H, W):
    """(9, 1, H*W) f32 border masks: mask[t, 0, p] == 1 iff tap t's shifted
    source position for output p lies inside the image (emulates zero pad)."""
    r = jnp.arange(H * W, dtype=jnp.int32) // W
    c = jnp.arange(H * W, dtype=jnp.int32) % W
    rows = []
    for dy, dx in _TAP_OFFSETS:
        ok = (r + dy >= 0) & (r + dy < H) & (c + dx >= 0) & (c + dx < W)
        rows.append(ok.astype(jnp.float32))
    return jnp.stack(rows, axis=0).reshape(9, 1, H * W)


def _prep_conv_weight(w, cin_pad):
    """w: (3, 3, Cin, Cout) -> (Cout, 9*cin_pad), taps folded into K (tap-major)."""
    kh, kw, cin, cout = w.shape
    if cin_pad > cin:
        w = jnp.pad(w, ((0, 0), (0, 0), (0, cin_pad - cin), (0, 0)))
    return jnp.transpose(w, (3, 0, 1, 2)).reshape(cout, kh * kw * cin_pad)


def _prep_lstm_weights(w, C):
    """w: (3,3,2C,4C) -> (W_x (4C,9C), W_h (4C,9C)); combined input is
    cat([x, h]) per the reference cell, tap-major column order."""
    wt = jnp.transpose(w, (3, 0, 1, 2)).reshape(4 * C, 9, 2 * C)
    wx = wt[:, :, :C].reshape(4 * C, 9 * C)
    wh = wt[:, :, C:].reshape(4 * C, 9 * C)
    return wx, wh


# ----------------------------------------------------------------------------
# in-kernel helpers
# ----------------------------------------------------------------------------
def _build_taps(x, masks, W_img, lane_n):
    """x: (C, lane_n) lane-dense. Returns list of 9 border-masked shifted copies."""
    taps = []
    for k, (dy, dx) in enumerate(_TAP_OFFSETS):
        s = (-(dy * W_img + dx)) % lane_n
        rolled = x if s == 0 else pltpu.roll(x, shift=s, axis=1)
        taps.append(rolled * masks[k])
    return taps


# ----------------------------------------------------------------------------
# Pallas kernels
# ----------------------------------------------------------------------------
def _conv_kernel(W_img, lane_n, has_prologue, has_bias, emit_stats, mm_dtype,
                 *refs):
    # inputs : x (Cin, lane_n) [, scale (Cin,1), shift (Cin,1)], w (Cout, 9*Cin)
    #          [, bias (Cout,1)], masks (9, 1, lane_n)
    # outputs: y (Cout, lane_n) [, sum (1,Cout,1), sumsq (1,Cout,1)]
    it = iter(refs)
    x_ref = next(it)
    scale_ref = next(it) if has_prologue else None
    shift_ref = next(it) if has_prologue else None
    w_ref = next(it)
    bias_ref = next(it) if has_bias else None
    masks_ref = next(it)
    y_ref = next(it)
    sum_ref = next(it) if emit_stats else None
    ssq_ref = next(it) if emit_stats else None

    x = x_ref[...]                                          # (Cin, lane_n)
    if has_prologue:
        # fused BN+ReLU of the producing conv (per-channel affine)
        x = jnp.maximum(x * scale_ref[...] + shift_ref[...], 0.0)

    masks = [masks_ref[k] for k in range(9)]
    # K-stacked operand assembled as a VALUE (no scratch store->load round trip)
    pat = jnp.concatenate(_build_taps(x, masks, W_img, lane_n), axis=0)
    w = w_ref[...]
    if mm_dtype != jnp.float32:
        pat = pat.astype(mm_dtype)
        w = w.astype(mm_dtype)
    y = jnp.dot(w, pat, preferred_element_type=jnp.float32)  # (Cout, lane_n)
    if has_bias:
        y = y + bias_ref[...]
    y_ref[...] = y.astype(y_ref.dtype)

    if emit_stats:
        # per-lane-tile partial stats, written ONCE per grid step (no RMW
        # accumulator, so the lane-tile grid axis stays "parallel")
        sum_ref[0] = jnp.sum(y, axis=1, keepdims=True)
        ssq_ref[0] = jnp.sum(y * y, axis=1, keepdims=True)


def _lstm_seq_kernel(W_img, HW, C, mm_dtype,
                     gx0_ref, wh0_ref, w1_ref, masks_ref,
                     out_ref, c0_ref, c1_ref, taps_ref):
    # gx0:(4C,HW) hoisted layer-0 input projection (+b0) for this timestep
    # wh0:(4C,9C)  w1:(4C,18C+8) = [W_x1 | W_h1 | b1-cols]  masks:(9,1,HW)
    # out:(1,C,HW)  scratch: c0,c1 (C,HW)  taps (18C+8, HW) persistent cache
    t = pl.program_id(0)
    KH = 9 * C                 # rows per tap block (one layer's hidden state)
    KB = 2 * KH                # start of constant ones rows (bias trick)

    @pl.when(t == 0)
    def _init():
        c0_ref[...] = jnp.zeros_like(c0_ref)
        c1_ref[...] = jnp.zeros_like(c1_ref)
        taps_ref[...] = jnp.zeros_like(taps_ref)
        # constant ones rows: dot against w1's bias columns contributes +b1
        taps_ref[KB:KB + 8, :] = jnp.ones((8, HW), jnp.float32)

    # hoist mask broadcasts: done once per step, reused by both tap builds
    masks_b = [jnp.broadcast_to(masks_ref[k], (C, HW)) for k in range(9)]

    def write_taps(h, row0):
        for k, (dy, dx) in enumerate(_TAP_OFFSETS):
            s = (-(dy * W_img + dx)) % HW
            rolled = h if s == 0 else pltpu.roll(h, shift=s, axis=1)
            taps_ref[row0 + k * C: row0 + (k + 1) * C, :] = rolled * masks_b[k]

    def lstm_update(gates, c_prev):
        # gate order (i, f, o, g) matches torch.split(conv_out, C, dim=1)
        i = jax.nn.sigmoid(gates[0 * C:1 * C])
        f = jax.nn.sigmoid(gates[1 * C:2 * C])
        o = jax.nn.sigmoid(gates[2 * C:3 * C])
        g = jnp.tanh(gates[3 * C:4 * C])
        c_next = f * c_prev + i * g
        h_next = o * jnp.tanh(c_next)
        return h_next, c_next

    def mm(a, b):
        if mm_dtype != jnp.float32:
            a = a.astype(mm_dtype)
            b = b.astype(mm_dtype)
        return jnp.dot(a, b, preferred_element_type=jnp.float32)

    # ---- layer 0: hoisted input projection + recurrent term -----------------
    # taps_ref[0:KH] still holds taps(h0_{t-1}) from the previous step (zeros
    # at t==0), so they are reused instead of being rebuilt.
    g0 = gx0_ref[...] + mm(wh0_ref[...], taps_ref[0:KH, :])
    h0, c0 = lstm_update(g0, c0_ref[...])
    c0_ref[...] = c0
    # taps(h0_t): layer-1 input taps NOW, layer-0 recurrent taps at t+1
    write_taps(h0, 0)

    # ---- layer 1: [W_x1 | W_h1 | b1] @ [taps(h0_t); taps(h1_{t-1}); ones] ---
    g1 = mm(w1_ref[...], taps_ref[...])
    h1, c1 = lstm_update(g1, c1_ref[...])
    c1_ref[...] = c1
    out_ref[0] = h1.astype(out_ref.dtype)
    # taps(h1_t): layer-1 recurrent taps at t+1
    write_taps(h1, KH)


# ----------------------------------------------------------------------------
# pallas_call wrappers
# ----------------------------------------------------------------------------
def conv3x3(x, w, masks, W_img, HW, tile_imgs, *, scale=None, shift=None,
            bias=None, emit_stats=True, mm_dtype=jnp.float32):
    """x: (Cin, B*HW) lane-dense; w: (Cout, 9*Cin); masks: (9, 1, B*HW) tiled
    per image. Optional fused prologue relu(x*scale+shift) and output bias.
    Returns y (Cout, B*HW) [, per-tile partial sum/sumsq (n_tiles, Cout, 1)]."""
    cin, N = x.shape
    cout = w.shape[0]
    tile_n = tile_imgs * HW
    n_tiles = N // tile_n
    has_prologue = scale is not None
    has_bias = bias is not None

    kernel = functools.partial(_conv_kernel, W_img, tile_n, has_prologue,
                               has_bias, emit_stats, mm_dtype)

    in_specs = [pl.BlockSpec((cin, tile_n), lambda i: (0, i))]
    args = [x]
    if has_prologue:
        in_specs += [pl.BlockSpec((cin, 1), lambda i: (0, 0)),
                     pl.BlockSpec((cin, 1), lambda i: (0, 0))]
        args += [scale, shift]
    in_specs.append(pl.BlockSpec(w.shape, lambda i: (0, 0)))
    args.append(w)
    if has_bias:
        in_specs.append(pl.BlockSpec((cout, 1), lambda i: (0, 0)))
        args.append(bias)
    in_specs.append(pl.BlockSpec((9, 1, tile_n), lambda i: (0, 0, i)))
    args.append(masks)

    if emit_stats:
        out_specs = (pl.BlockSpec((cout, tile_n), lambda i: (0, i)),
                     pl.BlockSpec((1, cout, 1), lambda i: (i, 0, 0)),
                     pl.BlockSpec((1, cout, 1), lambda i: (i, 0, 0)))
        out_shape = (jax.ShapeDtypeStruct((cout, N), jnp.float32),
                     jax.ShapeDtypeStruct((n_tiles, cout, 1), jnp.float32),
                     jax.ShapeDtypeStruct((n_tiles, cout, 1), jnp.float32))
    else:
        out_specs = pl.BlockSpec((cout, tile_n), lambda i: (0, i))
        out_shape = jax.ShapeDtypeStruct((cout, N), jnp.float32)

    return pl.pallas_call(
        kernel,
        grid=(n_tiles,),
        in_specs=in_specs,
        out_specs=out_specs,
        out_shape=out_shape,
        # lane tiles are independent (per-tile partial stats) -> megacore OK
        compiler_params=pltpu.CompilerParams(dimension_semantics=("parallel",)),
    )(*args)


def convlstm_2layer(gx0, wh0, w1_full, masks_img, W_img, HW, C, T, *,
                    mm_dtype=jnp.float32):
    """Serial 2-layer ConvLSTM recurrence, gridded over T ("arbitrary") with
    c/taps state in persistent VMEM scratch; gx0 (hoisted input projection,
    shape (4C, T*HW)) and the output are pipelined per step by BlockSpec."""
    kernel = functools.partial(_lstm_seq_kernel, W_img, HW, C, mm_dtype)
    return pl.pallas_call(
        kernel,
        grid=(T,),
        in_specs=[
            pl.BlockSpec((4 * C, HW), lambda t: (0, t)),     # gx0 time slice
            pl.BlockSpec(wh0.shape, lambda t: (0, 0)),       # W_h0
            pl.BlockSpec(w1_full.shape, lambda t: (0, 0)),   # [W_x1|W_h1|b1]
            pl.BlockSpec((9, 1, HW), lambda t: (0, 0, 0)),   # border masks
        ],
        out_specs=pl.BlockSpec((1, C, HW), lambda t: (t, 0, 0)),
        out_shape=jax.ShapeDtypeStruct((T, C, HW), jnp.float32),
        scratch_shapes=[pltpu.VMEM((C, HW), jnp.float32),          # c0
                        pltpu.VMEM((C, HW), jnp.float32),          # c1
                        pltpu.VMEM((18 * C + 8, HW), jnp.float32)],  # taps cache
        compiler_params=pltpu.CompilerParams(
            dimension_semantics=("arbitrary",)),
    )(gx0, wh0, w1_full, masks_img)


# ----------------------------------------------------------------------------
# forward pass
# ----------------------------------------------------------------------------
def double_conv_forward(x_nchw, params, *, mm_dtype=jnp.float32):
    """Mirrors DoubleConv.forward: NCHW (B, Cin, H, W) -> NCHW (B, Cout, H, W).
    mm_dtype=jnp.bfloat16 is recommended on v6e/v7x (f32 accumulation)."""
    x = x_nchw.astype(jnp.float32)
    B, Cin, H, Wsp = x.shape
    HW = H * Wsp
    N = B * HW
    C = params["w1"].shape[-1]
    eps = 1e-5

    # channels on sublanes, (batch * H * W) on lanes; pad Cin to sublane mult.
    cin_p = _round_up(Cin, 8)
    x2d = jnp.transpose(x.reshape(B, Cin, HW), (1, 0, 2)).reshape(Cin, N)
    if cin_p > Cin:
        x2d = jnp.pad(x2d, ((0, cin_p - Cin), (0, 0)))

    # border masks (zero-pad emulation), tiled per image so rolls over the
    # folded batch/lane axis never leak pixels between adjacent images
    mask_img = _tap_masks(H, Wsp)                       # (9, 1, HW)
    masks_n = jnp.tile(mask_img, (1, 1, B))             # (9, 1, B*HW)

    # whole images per lane tile, ~512-2048 lanes per grid step
    tile_imgs = min(B, max(1, 2048 // HW))
    while B % tile_imgs:
        tile_imgs -= 1
    if tile_imgs < B and (tile_imgs * HW) % 128:
        tile_imgs = B        # keep blocks lane-aligned (or equal to full dim)

    w1 = _prep_conv_weight(params["w1"], cin_p)         # (C, 9*cin_p)
    w2 = _prep_conv_weight(params["w2"], C)             # (C, 9*C)
    wx0, wh0 = _prep_lstm_weights(params["lw0"], C)     # (4C, 9C) each
    wx1, wh1 = _prep_lstm_weights(params["lw1"], C)
    # fold layer-1 gate bias into its weight (8 extra cols, matched by constant
    # ones rows in the recurrence's taps scratch)
    b1_cols = jnp.concatenate(
        [params["lb1"].reshape(-1, 1), jnp.zeros((4 * C, 7), jnp.float32)],
        axis=1)
    w1_lstm = jnp.concatenate([wx1, wh1, b1_cols], axis=1)   # (4C, 18C+8)

    def bn_affine(sum_p, ssq_p, gamma, beta):
        # training-mode BatchNorm2d (biased batch statistics).
        # TODO(synk): running_mean/var buffers are not tracked (train-mode
        # forward output does not depend on them).
        # TODO(synk): E[x^2]-E[x]^2 can lose precision vs torch when
        # |mean| >> std; clamped at 0 here.
        s = jnp.sum(sum_p, axis=0)                      # (C, 1)
        q = jnp.sum(ssq_p, axis=0)
        mean = s / N
        var = jnp.maximum(q / N - mean * mean, 0.0)
        sc = gamma.reshape(-1, 1) * jax.lax.rsqrt(var + eps)
        sh = beta.reshape(-1, 1) - mean * sc
        return sc, sh

    # conv1 (bias-free) + per-tile batch-stat partials
    y1, s1, q1 = conv3x3(x2d, w1, masks_n, Wsp, HW, tile_imgs,
                         mm_dtype=mm_dtype)
    sc1, sh1 = bn_affine(s1, q1, params["g1"], params["b1"])
    # conv2 with fused BN1+ReLU1 prologue + stat partials
    y2, s2, q2 = conv3x3(y1, w2, masks_n, Wsp, HW, tile_imgs,
                         scale=sc1, shift=sh1, mm_dtype=mm_dtype)
    sc2, sh2 = bn_affine(s2, q2, params["g2"], params["b2"])

    # ConvLSTM: x.unsqueeze(0) with batch_first=True -> batch=1, time=B.
    # Hoisted layer-0 input projection for ALL timesteps in one lane-tiled
    # matmul (N = T*HW), fusing BN2+ReLU2 as prologue and the b0 gate bias.
    gx0 = conv3x3(y2, wx0, masks_n, Wsp, HW, tile_imgs,
                  scale=sc2, shift=sh2, bias=params["lb0"].reshape(-1, 1),
                  emit_stats=False, mm_dtype=mm_dtype)       # (4C, B*HW)

    # Serial 2-layer recurrence, grid over T, state + taps cache in VMEM.
    out = convlstm_2layer(gx0, wh0, w1_lstm, mask_img, Wsp, HW, C, B,
                          mm_dtype=mm_dtype)                 # (T=B, C, HW)

    return out.reshape(B, C, H, Wsp)                         # a[0][0], NCHW


# ----------------------------------------------------------------------------
# main
# ----------------------------------------------------------------------------
if __name__ == "__main__":
    B, Cin, H, W = 2, 4, 16, 16
    Cout = 8

    key = jax.random.PRNGKey(0)
    ks = jax.random.split(key, 12)
    x = jax.random.normal(ks[0], (B, Cin, H, W), jnp.float32)

    params = {
        # conv block (bias=False convs, BN affine params); conv weights stored
        # as (kH, kW, Cin, Cout)
        "w1": 0.2 * jax.random.normal(ks[1], (3, 3, Cin, Cout), jnp.float32),
        "g1": 1.0 + 0.1 * jax.random.normal(ks[2], (Cout,), jnp.float32),
        "b1": 0.1 * jax.random.normal(ks[3], (Cout,), jnp.float32),
        "w2": 0.2 * jax.random.normal(ks[4], (3, 3, Cout, Cout), jnp.float32),
        "g2": 1.0 + 0.1 * jax.random.normal(ks[5], (Cout,), jnp.float32),
        "b2": 0.1 * jax.random.normal(ks[6], (Cout,), jnp.float32),
        # ConvLSTM cells: gate conv weight (3,3,2C,4C) (i,f,o,g order), bias (4C,)
        "lw0": 0.2 * jax.random.normal(ks[7], (3, 3, 2 * Cout, 4 * Cout), jnp.float32),
        "lb0": 0.1 * jax.random.normal(ks[8], (4 * Cout,), jnp.float32),
        "lw1": 0.2 * jax.random.normal(ks[9], (3, 3, 2 * Cout, 4 * Cout), jnp.float32),
        "lb1": 0.1 * jax.random.normal(ks[10], (4 * Cout,), jnp.float32),
    }

    out = jax.jit(double_conv_forward)(x, params)
    out = jax.block_until_ready(out)
    assert out.shape == (B, Cout, H, W), out.shape
    assert jnp.all(jnp.isfinite(out))
    print("KERNEL_OK")
</pallas_src>

<mosaic_0001>
module attributes {stable_mosaic.version = 11 : i64} {
  func.func @_conv_kernel(%arg0: i32, %arg1: memref<8x512xf32, #tpu.memory_space<vmem>>, %arg2: memref<8x1xf32, #tpu.memory_space<vmem>>, %arg3: memref<8x1xf32, #tpu.memory_space<vmem>>, %arg4: memref<32x72xf32, #tpu.memory_space<vmem>>, %arg5: memref<32x1xf32, #tpu.memory_space<vmem>>, %arg6: memref<9x1x512xf32, #tpu.memory_space<vmem>>, %arg7: memref<32x512xf32, #tpu.memory_space<vmem>>) attributes {dimension_semantics = [#tpu.dimension_semantics<parallel>], iteration_bounds = array<i64: 1>, scalar_prefetch = 0 : i64, scratch_operands = 0 : i64, tpu.core_type = #tpu.core_type<tc>, window_params = [{transform_indices = @transform_0, window_bounds = array<i64: 8, 512>}, {pipeline_mode = #tpu.pipeline_mode<synchronous>, transform_indices = @transform_1, window_bounds = array<i64: 8, 1>}, {pipeline_mode = #tpu.pipeline_mode<synchronous>, transform_indices = @transform_2, window_bounds = array<i64: 8, 1>}, {pipeline_mode = #tpu.pipeline_mode<synchronous>, transform_indices = @transform_3, window_bounds = array<i64: 32, 72>}, {pipeline_mode = #tpu.pipeline_mode<synchronous>, transform_indices = @transform_4, window_bounds = array<i64: 32, 1>}, {transform_indices = @transform_5, window_bounds = array<i64: 9, 1, 512>}, {transform_indices = @transform_6, window_bounds = array<i64: 32, 512>}]} {
    %c0 = arith.constant 0 : index
    %c0_0 = arith.constant 0 : index
    %0 = vector.load %arg1[%c0, %c0_0] : memref<8x512xf32, #tpu.memory_space<vmem>>, vector<8x512xf32>
    %c0_1 = arith.constant 0 : index
    %c0_2 = arith.constant 0 : index
    %1 = vector.load %arg2[%c0_1, %c0_2] : memref<8x1xf32, #tpu.memory_space<vmem>>, vector<8x1xf32>
    %2 = vector.broadcast %1 : vector<8x1xf32> to vector<8x512xf32>
    %3 = arith.mulf %0, %2 : vector<8x512xf32>
    %c0_3 = arith.constant 0 : index
    %c0_4 = arith.constant 0 : index
    %4 = vector.load %arg3[%c0_3, %c0_4] : memref<8x1xf32, #tpu.memory_space<vmem>>, vector<8x1xf32>
    %5 = vector.broadcast %4 : vector<8x1xf32> to vector<8x512xf32>
    %6 = arith.addf %3, %5 : vector<8x512xf32>
    %cst = arith.constant 0.000000e+00 : f32
    %7 = vector.broadcast %cst : f32 to vector<8x512xf32>
    %8 = arith.maximumf %6, %7 : vector<8x512xf32>
    %c0_5 = arith.constant 0 : index
    %c0_6 = arith.constant 0 : index
    %c0_7 = arith.constant 0 : index
    %9 = vector.load %arg6[%c0_5, %c0_6, %c0_7] : memref<9x1x512xf32, #tpu.memory_space<vmem>>, vector<1x1x512xf32>
    %10 = vector.shape_cast %9 : vector<1x1x512xf32> to vector<1x512xf32>
    %c1 = arith.constant 1 : index
    %c0_8 = arith.constant 0 : index
    %c0_9 = arith.constant 0 : index
    %11 = vector.load %arg6[%c1, %c0_8, %c0_9] : memref<9x1x512xf32, #tpu.memory_space<vmem>>, vector<1x1x512xf32>
    %12 = vector.shape_cast %11 : vector<1x1x512xf32> to vector<1x512xf32>
    %c2 = arith.constant 2 : index
    %c0_10 = arith.constant 0 : index
    %c0_11 = arith.constant 0 : index
    %13 = vector.load %arg6[%c2, %c0_10, %c0_11] : memref<9x1x512xf32, #tpu.memory_space<vmem>>, vector<1x1x512xf32>
    %14 = vector.shape_cast %13 : vector<1x1x512xf32> to vector<1x512xf32>
    %c3 = arith.constant 3 : index
    %c0_12 = arith.constant 0 : index
    %c0_13 = arith.constant 0 : index
    %15 = vector.load %arg6[%c3, %c0_12, %c0_13] : memref<9x1x512xf32, #tpu.memory_space<vmem>>, vector<1x1x512xf32>
    %16 = vector.shape_cast %15 : vector<1x1x512xf32> to vector<1x512xf32>
    %c4 = arith.constant 4 : index
    %c0_14 = arith.constant 0 : index
    %c0_15 = arith.constant 0 : index
    %17 = vector.load %arg6[%c4, %c0_14, %c0_15] : memref<9x1x512xf32, #tpu.memory_space<vmem>>, vector<1x1x512xf32>
    %18 = vector.shape_cast %17 : vector<1x1x512xf32> to vector<1x512xf32>
    %c5 = arith.constant 5 : index
    %c0_16 = arith.constant 0 : index
    %c0_17 = arith.constant 0 : index
    %19 = vector.load %arg6[%c5, %c0_16, %c0_17] : memref<9x1x512xf32, #tpu.memory_space<vmem>>, vector<1x1x512xf32>
    %20 = vector.shape_cast %19 : vector<1x1x512xf32> to vector<1x512xf32>
    %c6 = arith.constant 6 : index
    %c0_18 = arith.constant 0 : index
    %c0_19 = arith.constant 0 : index
    %21 = vector.load %arg6[%c6, %c0_18, %c0_19] : memref<9x1x512xf32, #tpu.memory_space<vmem>>, vector<1x1x512xf32>
    %22 = vector.shape_cast %21 : vector<1x1x512xf32> to vector<1x512xf32>
    %c7 = arith.constant 7 : index
    %c0_20 = arith.constant 0 : index
    %c0_21 = arith.constant 0 : index
    %23 = vector.load %arg6[%c7, %c0_20, %c0_21] : memref<9x1x512xf32, #tpu.memory_space<vmem>>, vector<1x1x512xf32>
    %24 = vector.shape_cast %23 : vector<1x1x512xf32> to vector<1x512xf32>
    %c8 = arith.constant 8 : index
    %c0_22 = arith.constant 0 : index
    %c0_23 = arith.constant 0 : index
    %25 = vector.load %arg6[%c8, %c0_22, %c0_23] : memref<9x1x512xf32, #tpu.memory_space<vmem>>, vector<1x1x512xf32>
    %26 = vector.shape_cast %25 : vector<1x1x512xf32> to vector<1x512xf32>
    %c17_i32 = arith.constant 17 : i32
    %27 = tpu.dynamic_rotate %8 by %c17_i32 dim 1 : vector<8x512xf32>, i32 -> vector<8x512xf32>
    %28 = vector.broadcast %10 : vector<1x512xf32> to vector<8x512xf32>
    %29 = arith.mulf %27, %28 : vector<8x512xf32>
    %c16_i32 = arith.constant 16 : i32
    %30 = tpu.dynamic_rotate %8 by %c16_i32 dim 1 : vector<8x512xf32>, i32 -> vector<8x512xf32>
    %31 = vector.broadcast %12 : vector<1x512xf32> to vector<8x512xf32>
    %32 = arith.mulf %30, %31 : vector<8x512xf32>
    %c15_i32 = arith.constant 15 : i32
    %33 = tpu.dynamic_rotate %8 by %c15_i32 dim 1 : vector<8x512xf32>, i32 -> vector<8x512xf32>
    %34 = vector.broadcast %14 : vector<1x512xf32> to vector<8x512xf32>
    %35 = arith.mulf %33, %34 : vector<8x512xf32>
    %c1_i32 = arith.constant 1 : i32
    %36 = tpu.dynamic_rotate %8 by %c1_i32 dim 1 : vector<8x512xf32>, i32 -> vector<8x512xf32>
    %37 = vector.broadcast %16 : vector<1x512xf32> to vector<8x512xf32>
    %38 = arith.mulf %36, %37 : vector<8x512xf32>
    %39 = vector.broadcast %18 : vector<1x512xf32> to vector<8x512xf32>
    %40 = arith.mulf %8, %39 : vector<8x512xf32>
    %c511_i32 = arith.constant 511 : i32
    %41 = tpu.dynamic_rotate %8 by %c511_i32 dim 1 : vector<8x512xf32>, i32 -> vector<8x512xf32>
    %42 = vector.broadcast %20 : vector<1x512xf32> to vector<8x512xf32>
    %43 = arith.mulf %41, %42 : vector<8x512xf32>
    %c497_i32 = arith.constant 497 : i32
    %44 = tpu.dynamic_rotate %8 by %c497_i32 dim 1 : vector<8x512xf32>, i32 -> vector<8x512xf32>
    %45 = vector.broadcast %22 : vector<1x512xf32> to vector<8x512xf32>
    %46 = arith.mulf %44, %45 : vector<8x512xf32>
    %c496_i32 = arith.constant 496 : i32
    %47 = tpu.dynamic_rotate %8 by %c496_i32 dim 1 : vector<8x512xf32>, i32 -> vector<8x512xf32>
    %48 = vector.broadcast %24 : vector<1x512xf32> to vector<8x512xf32>
    %49 = arith.mulf %47, %48 : vector<8x512xf32>
    %c495_i32 = arith.constant 495 : i32
    %50 = tpu.dynamic_rotate %8 by %c495_i32 dim 1 : vector<8x512xf32>, i32 -> vector<8x512xf32>
    %51 = vector.broadcast %26 : vector<1x512xf32> to vector<8x512xf32>
    %52 = arith.mulf %50, %51 : vector<8x512xf32>
    %53 = tpu.concatenate %29, %32, %35, %38, %40, %43, %46, %49, %52 in 0 : vector<8x512xf32>, vector<8x512xf32>, vector<8x512xf32>, vector<8x512xf32>, vector<8x512xf32>, vector<8x512xf32>, vector<8x512xf32>, vector<8x512xf32>, vector<8x512xf32> -> vector<72x512xf32>
    %c0_24 = arith.constant 0 : index
    %c0_25 = arith.constant 0 : index
    %54 = vector.load %arg4[%c0_24, %c0_25] : memref<32x72xf32, #tpu.memory_space<vmem>>, vector<32x72xf32>
    %cst_26 = arith.constant dense<0.000000e+00> : vector<32x512xf32>
    %55 = tpu.matmul %54, %53, %cst_26 {dimension_numbers = #tpu.dot_dimension_numbers<[1], [0], [0], [1], [0, 0, 1, 1], [], []>} : vector<32x72xf32>, vector<72x512xf32>, vector<32x512xf32> -> vector<32x512xf32>
    %c0_27 = arith.constant 0 : index
    %c0_28 = arith.constant 0 : index
    %56 = vector.load %arg5[%c0_27, %c0_28] : memref<32x1xf32, #tpu.memory_space<vmem>>, vector<32x1xf32>
    %57 = vector.broadcast %56 : vector<32x1xf32> to vector<32x512xf32>
    %58 = arith.addf %55, %57 : vector<32x512xf32>
    %c0_29 = arith.constant 0 : index
    %c0_30 = arith.constant 0 : index
    %59 = vector.load %arg7[%c0_29, %c0_30] : memref<32x512xf32, #tpu.memory_space<vmem>>, vector<32x512xf32>
    tpu.vector_store %arg7[%c0_29, %c0_30], %58 {strides = array<i32>} : memref<32x512xf32, #tpu.memory_space<vmem>>, vector<32x512xf32>,
    return
  }
  func.func @transform_0(%arg0: i32) -> (i32, i32) {
    %c0_i32 = arith.constant 0 : i32
    %c0_i32_0 = arith.constant 0 : i32
    return %c0_i32, %arg0 : i32, i32
  }
  func.func @transform_1(%arg0: i32) -> (i32, i32) {
    %c0_i32 = arith.constant 0 : i32
    %c0_i32_0 = arith.constant 0 : i32
    %c0_i32_1 = arith.constant 0 : i32
    return %c0_i32, %c0_i32_0 : i32, i32
  }
  func.func @transform_2(%arg0: i32) -> (i32, i32) {
    %c0_i32 = arith.constant 0 : i32
    %c0_i32_0 = arith.constant 0 : i32
    %c0_i32_1 = arith.constant 0 : i32
    return %c0_i32, %c0_i32_0 : i32, i32
  }
  func.func @transform_3(%arg0: i32) -> (i32, i32) {
    %c0_i32 = arith.constant 0 : i32
    %c0_i32_0 = arith.constant 0 : i32
    %c0_i32_1 = arith.constant 0 : i32
    return %c0_i32, %c0_i32_0 : i32, i32
  }
  func.func @transform_4(%arg0: i32) -> (i32, i32) {
    %c0_i32 = arith.constant 0 : i32
    %c0_i32_0 = arith.constant 0 : i32
    %c0_i32_1 = arith.constant 0 : i32
    return %c0_i32, %c0_i32_0 : i32, i32
  }
  func.func @transform_5(%arg0: i32) -> (i32, i32, i32) {
    %c0_i32 = arith.constant 0 : i32
    %c0_i32_0 = arith.constant 0 : i32
    %c0_i32_1 = arith.constant 0 : i32
    return %c0_i32, %c0_i32_0, %arg0 : i32, i32, i32
  }
  func.func @transform_6(%arg0: i32) -> (i32, i32) {
    %c0_i32 = arith.constant 0 : i32
    %c0_i32_0 = arith.constant 0 : i32
    return %c0_i32, %arg0 : i32, i32
  }
}

module attributes {stable_mosaic.version = 11 : i64} {
  func.func @_conv_kernel(%arg0: i32, %arg1: memref<8x512xf32, #tpu.memory_space<vmem>>, %arg2: memref<8x72xf32, #tpu.memory_space<vmem>>, %arg3: memref<9x1x512xf32, #tpu.memory_space<vmem>>, %arg4: memref<8x512xf32, #tpu.memory_space<vmem>>, %arg5: memref<1x8x1xf32, #tpu.memory_space<vmem>>, %arg6: memref<1x8x1xf32, #tpu.memory_space<vmem>>) attributes {dimension_semantics = [#tpu.dimension_semantics<parallel>], iteration_bounds = array<i64: 1>, scalar_prefetch = 0 : i64, scratch_operands = 0 : i64, tpu.core_type = #tpu.core_type<tc>, window_params = [{transform_indices = @transform_0, window_bounds = array<i64: 8, 512>}, {pipeline_mode = #tpu.pipeline_mode<synchronous>, transform_indices = @transform_1, window_bounds = array<i64: 8, 72>}, {transform_indices = @transform_2, window_bounds = array<i64: 9, 1, 512>}, {transform_indices = @transform_3, window_bounds = array<i64: 8, 512>}, {transform_indices = @transform_4, window_bounds = array<i64: 1, 8, 1>}, {transform_indices = @transform_5, window_bounds = array<i64: 1, 8, 1>}]} {
    %c0 = arith.constant 0 : index
    %c0_0 = arith.constant 0 : index
    %0 = vector.load %arg1[%c0, %c0_0] : memref<8x512xf32, #tpu.memory_space<vmem>>, vector<8x512xf32>
    %c0_1 = arith.constant 0 : index
    %c0_2 = arith.constant 0 : index
    %c0_3 = arith.constant 0 : index
    %1 = vector.load %arg3[%c0_1, %c0_2, %c0_3] : memref<9x1x512xf32, #tpu.memory_space<vmem>>, vector<1x1x512xf32>
    %2 = vector.shape_cast %1 : vector<1x1x512xf32> to vector<1x512xf32>
    %c1 = arith.constant 1 : index
    %c0_4 = arith.constant 0 : index
    %c0_5 = arith.constant 0 : index
    %3 = vector.load %arg3[%c1, %c0_4, %c0_5] : memref<9x1x512xf32, #tpu.memory_space<vmem>>, vector<1x1x512xf32>
    %4 = vector.shape_cast %3 : vector<1x1x512xf32> to vector<1x512xf32>
    %c2 = arith.constant 2 : index
    %c0_6 = arith.constant 0 : index
    %c0_7 = arith.constant 0 : index
    %5 = vector.load %arg3[%c2, %c0_6, %c0_7] : memref<9x1x512xf32, #tpu.memory_space<vmem>>, vector<1x1x512xf32>
    %6 = vector.shape_cast %5 : vector<1x1x512xf32> to vector<1x512xf32>
    %c3 = arith.constant 3 : index
    %c0_8 = arith.constant 0 : index
    %c0_9 = arith.constant 0 : index
    %7 = vector.load %arg3[%c3, %c0_8, %c0_9] : memref<9x1x512xf32, #tpu.memory_space<vmem>>, vector<1x1x512xf32>
    %8 = vector.shape_cast %7 : vector<1x1x512xf32> to vector<1x512xf32>
    %c4 = arith.constant 4 : index
    %c0_10 = arith.constant 0 : index
    %c0_11 = arith.constant 0 : index
    %9 = vector.load %arg3[%c4, %c0_10, %c0_11] : memref<9x1x512xf32, #tpu.memory_space<vmem>>, vector<1x1x512xf32>
    %10 = vector.shape_cast %9 : vector<1x1x512xf32> to vector<1x512xf32>
    %c5 = arith.constant 5 : index
    %c0_12 = arith.constant 0 : index
    %c0_13 = arith.constant 0 : index
    %11 = vector.load %arg3[%c5, %c0_12, %c0_13] : memref<9x1x512xf32, #tpu.memory_space<vmem>>, vector<1x1x512xf32>
    %12 = vector.shape_cast %11 : vector<1x1x512xf32> to vector<1x512xf32>
    %c6 = arith.constant 6 : index
    %c0_14 = arith.constant 0 : index
    %c0_15 = arith.constant 0 : index
    %13 = vector.load %arg3[%c6, %c0_14, %c0_15] : memref<9x1x512xf32, #tpu.memory_space<vmem>>, vector<1x1x512xf32>
    %14 = vector.shape_cast %13 : vector<1x1x512xf32> to vector<1x512xf32>
    %c7 = arith.constant 7 : index
    %c0_16 = arith.constant 0 : index
    %c0_17 = arith.constant 0 : index
    %15 = vector.load %arg3[%c7, %c0_16, %c0_17] : memref<9x1x512xf32, #tpu.memory_space<vmem>>, vector<1x1x512xf32>
    %16 = vector.shape_cast %15 : vector<1x1x512xf32> to vector<1x512xf32>
    %c8 = arith.constant 8 : index
    %c0_18 = arith.constant 0 : index
    %c0_19 = arith.constant 0 : index
    %17 = vector.load %arg3[%c8, %c0_18, %c0_19] : memref<9x1x512xf32, #tpu.memory_space<vmem>>, vector<1x1x512xf32>
    %18 = vector.shape_cast %17 : vector<1x1x512xf32> to vector<1x512xf32>
    %c17_i32 = arith.constant 17 : i32
    %19 = tpu.dynamic_rotate %0 by %c17_i32 dim 1 : vector<8x512xf32>, i32 -> vector<8x512xf32>
    %20 = vector.broadcast %2 : vector<1x512xf32> to vector<8x512xf32>
    %21 = arith.mulf %19, %20 : vector<8x512xf32>
    %c16_i32 = arith.constant 16 : i32
    %22 = tpu.dynamic_rotate %0 by %c16_i32 dim 1 : vector<8x512xf32>, i32 -> vector<8x512xf32>
    %23 = vector.broadcast %4 : vector<1x512xf32> to vector<8x512xf32>
    %24 = arith.mulf %22, %23 : vector<8x512xf32>
    %c15_i32 = arith.constant 15 : i32
    %25 = tpu.dynamic_rotate %0 by %c15_i32 dim 1 : vector<8x512xf32>, i32 -> vector<8x512xf32>
    %26 = vector.broadcast %6 : vector<1x512xf32> to vector<8x512xf32>
    %27 = arith.mulf %25, %26 : vector<8x512xf32>
    %c1_i32 = arith.constant 1 : i32
    %28 = tpu.dynamic_rotate %0 by %c1_i32 dim 1 : vector<8x512xf32>, i32 -> vector<8x512xf32>
    %29 = vector.broadcast %8 : vector<1x512xf32> to vector<8x512xf32>
    %30 = arith.mulf %28, %29 : vector<8x512xf32>
    %31 = vector.broadcast %10 : vector<1x512xf32> to vector<8x512xf32>
    %32 = arith.mulf %0, %31 : vector<8x512xf32>
    %c511_i32 = arith.constant 511 : i32
    %33 = tpu.dynamic_rotate %0 by %c511_i32 dim 1 : vector<8x512xf32>, i32 -> vector<8x512xf32>
    %34 = vector.broadcast %12 : vector<1x512xf32> to vector<8x512xf32>
    %35 = arith.mulf %33, %34 : vector<8x512xf32>
    %c497_i32 = arith.constant 497 : i32
    %36 = tpu.dynamic_rotate %0 by %c497_i32 dim 1 : vector<8x512xf32>, i32 -> vector<8x512xf32>
    %37 = vector.broadcast %14 : vector<1x512xf32> to vector<8x512xf32>
    %38 = arith.mulf %36, %37 : vector<8x512xf32>
    %c496_i32 = arith.constant 496 : i32
    %39 = tpu.dynamic_rotate %0 by %c496_i32 dim 1 : vector<8x512xf32>, i32 -> vector<8x512xf32>
    %40 = vector.broadcast %16 : vector<1x512xf32> to vector<8x512xf32>
    %41 = arith.mulf %39, %40 : vector<8x512xf32>
    %c495_i32 = arith.constant 495 : i32
    %42 = tpu.dynamic_rotate %0 by %c495_i32 dim 1 : vector<8x512xf32>, i32 -> vector<8x512xf32>
    %43 = vector.broadcast %18 : vector<1x512xf32> to vector<8x512xf32>
    %44 = arith.mulf %42, %43 : vector<8x512xf32>
    %45 = tpu.concatenate %21, %24, %27, %30, %32, %35, %38, %41, %44 in 0 : vector<8x512xf32>, vector<8x512xf32>, vector<8x512xf32>, vector<8x512xf32>, vector<8x512xf32>, vector<8x512xf32>, vector<8x512xf32>, vector<8x512xf32>, vector<8x512xf32> -> vector<72x512xf32>
    %c0_20 = arith.constant 0 : index
    %c0_21 = arith.constant 0 : index
    %46 = vector.load %arg2[%c0_20, %c0_21] : memref<8x72xf32, #tpu.memory_space<vmem>>, vector<8x72xf32>
    %cst = arith.constant dense<0.000000e+00> : vector<8x512xf32>
    %47 = tpu.matmul %46, %45, %cst {dimension_numbers = #tpu.dot_dimension_numbers<[1], [0], [0], [1], [0, 0, 1, 1], [], []>} : vector<8x72xf32>, vector<72x512xf32>, vector<8x512xf32> -> vector<8x512xf32>
    %c0_22 = arith.constant 0 : index
    %c0_23 = arith.constant 0 : index
    %48 = vector.load %arg4[%c0_22, %c0_23] : memref<8x512xf32, #tpu.memory_space<vmem>>, vector<8x512xf32>
    tpu.vector_store %arg4[%c0_22, %c0_23], %47 {strides = array<i32>} : memref<8x512xf32, #tpu.memory_space<vmem>>, vector<8x512xf32>,
    %cst_24 = arith.constant dense<0.000000e+00> : vector<8xf32>
    %49 = vector.multi_reduction <add>, %47, %cst_24 [1] : vector<8x512xf32> to vector<8xf32>
    %50 = vector.shape_cast %49 : vector<8xf32> to vector<8x1xf32>
    %c0_25 = arith.constant 0 : index
    %c0_26 = arith.constant 0 : index
    %c0_27 = arith.constant 0 : index
    %51 = vector.load %arg5[%c0_25, %c0_26, %c0_27] : memref<1x8x1xf32, #tpu.memory_space<vmem>>, vector<1x8x1xf32>
    %52 = vector.shape_cast %51 : vector<1x8x1xf32> to vector<8x1xf32>
    %53 = vector.shape_cast %50 : vector<8x1xf32> to vector<1x8x1xf32>
    tpu.vector_store %arg5[%c0_25, %c0_26, %c0_27], %53 {strides = array<i32>} : memref<1x8x1xf32, #tpu.memory_space<vmem>>, vector<1x8x1xf32>,
    %54 = arith.mulf %47, %47 : vector<8x512xf32>
    %cst_28 = arith.constant dense<0.000000e+00> : vector<8xf32>
    %55 = vector.multi_reduction <add>, %54, %cst_28 [1] : vector<8x512xf32> to vector<8xf32>
    %56 = vector.shape_cast %55 : vector<8xf32> to vector<8x1xf32>
    %c0_29 = arith.constant 0 : index
    %c0_30 = arith.constant 0 : index
    %c0_31 = arith.constant 0 : index
    %57 = vector.load %arg6[%c0_29, %c0_30, %c0_31] : memref<1x8x1xf32, #tpu.memory_space<vmem>>, vector<1x8x1xf32>
    %58 = vector.shape_cast %57 : vector<1x8x1xf32> to vector<8x1xf32>
    %59 = vector.shape_cast %56 : vector<8x1xf32> to vector<1x8x1xf32>
    tpu.vector_store %arg6[%c0_29, %c0_30, %c0_31], %59 {strides = array<i32>} : memref<1x8x1xf32, #tpu.memory_space<vmem>>, vector<1x8x1xf32>,
    return
  }
  func.func @transform_0(%arg0: i32) -> (i32, i32) {
    %c0_i32 = arith.constant 0 : i32
    %c0_i32_0 = arith.constant 0 : i32
    return %c0_i32, %arg0 : i32, i32
  }
  func.func @transform_1(%arg0: i32) -> (i32, i32) {
    %c0_i32 = arith.constant 0 : i32
    %c0_i32_0 = arith.constant 0 : i32
    %c0_i32_1 = arith.constant 0 : i32
    return %c0_i32, %c0_i32_0 : i32, i32
  }
  func.func @transform_2(%arg0: i32) -> (i32, i32, i32) {
    %c0_i32 = arith.constant 0 : i32
    %c0_i32_0 = arith.constant 0 : i32
    %c0_i32_1 = arith.constant 0 : i32
    return %c0_i32, %c0_i32_0, %arg0 : i32, i32, i32
  }
  func.func @transform_3(%arg0: i32) -> (i32, i32) {
    %c0_i32 = arith.constant 0 : i32
    %c0_i32_0 = arith.constant 0 : i32
    return %c0_i32, %arg0 : i32, i32
  }
  func.func @transform_4(%arg0: i32) -> (i32, i32, i32) {
    %c0_i32 = arith.constant 0 : i32
    %c0_i32_0 = arith.constant 0 : i32
    %c0_i32_1 = arith.constant 0 : i32
    return %arg0, %c0_i32, %c0_i32_0 : i32, i32, i32
  }
  func.func @transform_5(%arg0: i32) -> (i32, i32, i32) {
    %c0_i32 = arith.constant 0 : i32
    %c0_i32_0 = arith.constant 0 : i32
    %c0_i32_1 = arith.constant 0 : i32
    return %arg0, %c0_i32, %c0_i32_0 : i32, i32, i32
  }
}

module attributes {stable_mosaic.version = 11 : i64} {
  func.func @_conv_kernel(%arg0: i32, %arg1: memref<8x512xf32, #tpu.memory_space<vmem>>, %arg2: memref<8x1xf32, #tpu.memory_space<vmem>>, %arg3: memref<8x1xf32, #tpu.memory_space<vmem>>, %arg4: memref<8x72xf32, #tpu.memory_space<vmem>>, %arg5: memref<9x1x512xf32, #tpu.memory_space<vmem>>, %arg6: memref<8x512xf32, #tpu.memory_space<vmem>>, %arg7: memref<1x8x1xf32, #tpu.memory_space<vmem>>, %arg8: memref<1x8x1xf32, #tpu.memory_space<vmem>>) attributes {dimension_semantics = [#tpu.dimension_semantics<parallel>], iteration_bounds = array<i64: 1>, scalar_prefetch = 0 : i64, scratch_operands = 0 : i64, tpu.core_type = #tpu.core_type<tc>, window_params = [{transform_indices = @transform_0, window_bounds = array<i64: 8, 512>}, {pipeline_mode = #tpu.pipeline_mode<synchronous>, transform_indices = @transform_1, window_bounds = array<i64: 8, 1>}, {pipeline_mode = #tpu.pipeline_mode<synchronous>, transform_indices = @transform_2, window_bounds = array<i64: 8, 1>}, {pipeline_mode = #tpu.pipeline_mode<synchronous>, transform_indices = @transform_3, window_bounds = array<i64: 8, 72>}, {transform_indices = @transform_4, window_bounds = array<i64: 9, 1, 512>}, {transform_indices = @transform_5, window_bounds = array<i64: 8, 512>}, {transform_indices = @transform_6, window_bounds = array<i64: 1, 8, 1>}, {transform_indices = @transform_7, window_bounds = array<i64: 1, 8, 1>}]} {
    %c0 = arith.constant 0 : index
    %c0_0 = arith.constant 0 : index
    %0 = vector.load %arg1[%c0, %c0_0] : memref<8x512xf32, #tpu.memory_space<vmem>>, vector<8x512xf32>
    %c0_1 = arith.constant 0 : index
    %c0_2 = arith.constant 0 : index
    %1 = vector.load %arg2[%c0_1, %c0_2] : memref<8x1xf32, #tpu.memory_space<vmem>>, vector<8x1xf32>
    %2 = vector.broadcast %1 : vector<8x1xf32> to vector<8x512xf32>
    %3 = arith.mulf %0, %2 : vector<8x512xf32>
    %c0_3 = arith.constant 0 : index
    %c0_4 = arith.constant 0 : index
    %4 = vector.load %arg3[%c0_3, %c0_4] : memref<8x1xf32, #tpu.memory_space<vmem>>, vector<8x1xf32>
    %5 = vector.broadcast %4 : vector<8x1xf32> to vector<8x512xf32>
    %6 = arith.addf %3, %5 : vector<8x512xf32>
    %cst = arith.constant 0.000000e+00 : f32
    %7 = vector.broadcast %cst : f32 to vector<8x512xf32>
    %8 = arith.maximumf %6, %7 : vector<8x512xf32>
    %c0_5 = arith.constant 0 : index
    %c0_6 = arith.constant 0 : index
    %c0_7 = arith.constant 0 : index
    %9 = vector.load %arg5[%c0_5, %c0_6, %c0_7] : memref<9x1x512xf32, #tpu.memory_space<vmem>>, vector<1x1x512xf32>
    %10 = vector.shape_cast %9 : vector<1x1x512xf32> to vector<1x512xf32>
    %c1 = arith.constant 1 : index
    %c0_8 = arith.constant 0 : index
    %c0_9 = arith.constant 0 : index
    %11 = vector.load %arg5[%c1, %c0_8, %c0_9] : memref<9x1x512xf32, #tpu.memory_space<vmem>>, vector<1x1x512xf32>
    %12 = vector.shape_cast %11 : vector<1x1x512xf32> to vector<1x512xf32>
    %c2 = arith.constant 2 : index
    %c0_10 = arith.constant 0 : index
    %c0_11 = arith.constant 0 : index
    %13 = vector.load %arg5[%c2, %c0_10, %c0_11] : memref<9x1x512xf32, #tpu.memory_space<vmem>>, vector<1x1x512xf32>
    %14 = vector.shape_cast %13 : vector<1x1x512xf32> to vector<1x512xf32>
    %c3 = arith.constant 3 : index
    %c0_12 = arith.constant 0 : index
    %c0_13 = arith.constant 0 : index
    %15 = vector.load %arg5[%c3, %c0_12, %c0_13] : memref<9x1x512xf32, #tpu.memory_space<vmem>>, vector<1x1x512xf32>
    %16 = vector.shape_cast %15 : vector<1x1x512xf32> to vector<1x512xf32>
    %c4 = arith.constant 4 : index
    %c0_14 = arith.constant 0 : index
    %c0_15 = arith.constant 0 : index
    %17 = vector.load %arg5[%c4, %c0_14, %c0_15] : memref<9x1x512xf32, #tpu.memory_space<vmem>>, vector<1x1x512xf32>
    %18 = vector.shape_cast %17 : vector<1x1x512xf32> to vector<1x512xf32>
    %c5 = arith.constant 5 : index
    %c0_16 = arith.constant 0 : index
    %c0_17 = arith.constant 0 : index
    %19 = vector.load %arg5[%c5, %c0_16, %c0_17] : memref<9x1x512xf32, #tpu.memory_space<vmem>>, vector<1x1x512xf32>
    %20 = vector.shape_cast %19 : vector<1x1x512xf32> to vector<1x512xf32>
    %c6 = arith.constant 6 : index
    %c0_18 = arith.constant 0 : index
    %c0_19 = arith.constant 0 : index
    %21 = vector.load %arg5[%c6, %c0_18, %c0_19] : memref<9x1x512xf32, #tpu.memory_space<vmem>>, vector<1x1x512xf32>
    %22 = vector.shape_cast %21 : vector<1x1x512xf32> to vector<1x512xf32>
    %c7 = arith.constant 7 : index
    %c0_20 = arith.constant 0 : index
    %c0_21 = arith.constant 0 : index
    %23 = vector.load %arg5[%c7, %c0_20, %c0_21] : memref<9x1x512xf32, #tpu.memory_space<vmem>>, vector<1x1x512xf32>
    %24 = vector.shape_cast %23 : vector<1x1x512xf32> to vector<1x512xf32>
    %c8 = arith.constant 8 : index
    %c0_22 = arith.constant 0 : index
    %c0_23 = arith.constant 0 : index
    %25 = vector.load %arg5[%c8, %c0_22, %c0_23] : memref<9x1x512xf32, #tpu.memory_space<vmem>>, vector<1x1x512xf32>
    %26 = vector.shape_cast %25 : vector<1x1x512xf32> to vector<1x512xf32>
    %c17_i32 = arith.constant 17 : i32
    %27 = tpu.dynamic_rotate %8 by %c17_i32 dim 1 : vector<8x512xf32>, i32 -> vector<8x512xf32>
    %28 = vector.broadcast %10 : vector<1x512xf32> to vector<8x512xf32>
    %29 = arith.mulf %27, %28 : vector<8x512xf32>
    %c16_i32 = arith.constant 16 : i32
    %30 = tpu.dynamic_rotate %8 by %c16_i32 dim 1 : vector<8x512xf32>, i32 -> vector<8x512xf32>
    %31 = vector.broadcast %12 : vector<1x512xf32> to vector<8x512xf32>
    %32 = arith.mulf %30, %31 : vector<8x512xf32>
    %c15_i32 = arith.constant 15 : i32
    %33 = tpu.dynamic_rotate %8 by %c15_i32 dim 1 : vector<8x512xf32>, i32 -> vector<8x512xf32>
    %34 = vector.broadcast %14 : vector<1x512xf32> to vector<8x512xf32>
    %35 = arith.mulf %33, %34 : vector<8x512xf32>
    %c1_i32 = arith.constant 1 : i32
    %36 = tpu.dynamic_rotate %8 by %c1_i32 dim 1 : vector<8x512xf32>, i32 -> vector<8x512xf32>
    %37 = vector.broadcast %16 : vector<1x512xf32> to vector<8x512xf32>
    %38 = arith.mulf %36, %37 : vector<8x512xf32>
    %39 = vector.broadcast %18 : vector<1x512xf32> to vector<8x512xf32>
    %40 = arith.mulf %8, %39 : vector<8x512xf32>
    %c511_i32 = arith.constant 511 : i32
    %41 = tpu.dynamic_rotate %8 by %c511_i32 dim 1 : vector<8x512xf32>, i32 -> vector<8x512xf32>
    %42 = vector.broadcast %20 : vector<1x512xf32> to vector<8x512xf32>
    %43 = arith.mulf %41, %42 : vector<8x512xf32>
    %c497_i32 = arith.constant 497 : i32
    %44 = tpu.dynamic_rotate %8 by %c497_i32 dim 1 : vector<8x512xf32>, i32 -> vector<8x512xf32>
    %45 = vector.broadcast %22 : vector<1x512xf32> to vector<8x512xf32>
    %46 = arith.mulf %44, %45 : vector<8x512xf32>
    %c496_i32 = arith.constant 496 : i32
    %47 = tpu.dynamic_rotate %8 by %c496_i32 dim 1 : vector<8x512xf32>, i32 -> vector<8x512xf32>
    %48 = vector.broadcast %24 : vector<1x512xf32> to vector<8x512xf32>
    %49 = arith.mulf %47, %48 : vector<8x512xf32>
    %c495_i32 = arith.constant 495 : i32
    %50 = tpu.dynamic_rotate %8 by %c495_i32 dim 1 : vector<8x512xf32>, i32 -> vector<8x512xf32>
    %51 = vector.broadcast %26 : vector<1x512xf32> to vector<8x512xf32>
    %52 = arith.mulf %50, %51 : vector<8x512xf32>
    %53 = tpu.concatenate %29, %32, %35, %38, %40, %43, %46, %49, %52 in 0 : vector<8x512xf32>, vector<8x512xf32>, vector<8x512xf32>, vector<8x512xf32>, vector<8x512xf32>, vector<8x512xf32>, vector<8x512xf32>, vector<8x512xf32>, vector<8x512xf32> -> vector<72x512xf32>
    %c0_24 = arith.constant 0 : index
    %c0_25 = arith.constant 0 : index
    %54 = vector.load %arg4[%c0_24, %c0_25] : memref<8x72xf32, #tpu.memory_space<vmem>>, vector<8x72xf32>
    %cst_26 = arith.constant dense<0.000000e+00> : vector<8x512xf32>
    %55 = tpu.matmul %54, %53, %cst_26 {dimension_numbers = #tpu.dot_dimension_numbers<[1], [0], [0], [1], [0, 0, 1, 1], [], []>} : vector<8x72xf32>, vector<72x512xf32>, vector<8x512xf32> -> vector<8x512xf32>
    %c0_27 = arith.constant 0 : index
    %c0_28 = arith.constant 0 : index
    %56 = vector.load %arg6[%c0_27, %c0_28] : memref<8x512xf32, #tpu.memory_space<vmem>>, vector<8x512xf32>
    tpu.vector_store %arg6[%c0_27, %c0_28], %55 {strides = array<i32>} : memref<8x512xf32, #tpu.memory_space<vmem>>, vector<8x512xf32>,
    %cst_29 = arith.constant dense<0.000000e+00> : vector<8xf32>
    %57 = vector.multi_reduction <add>, %55, %cst_29 [1] : vector<8x512xf32> to vector<8xf32>
    %58 = vector.shape_cast %57 : vector<8xf32> to vector<8x1xf32>
    %c0_30 = arith.constant 0 : index
    %c0_31 = arith.constant 0 : index
    %c0_32 = arith.constant 0 : index
    %59 = vector.load %arg7[%c0_30, %c0_31, %c0_32] : memref<1x8x1xf32, #tpu.memory_space<vmem>>, vector<1x8x1xf32>
    %60 = vector.shape_cast %59 : vector<1x8x1xf32> to vector<8x1xf32>
    %61 = vector.shape_cast %58 : vector<8x1xf32> to vector<1x8x1xf32>
    tpu.vector_store %arg7[%c0_30, %c0_31, %c0_32], %61 {strides = array<i32>} : memref<1x8x1xf32, #tpu.memory_space<vmem>>, vector<1x8x1xf32>,
    %62 = arith.mulf %55, %55 : vector<8x512xf32>
    %cst_33 = arith.constant dense<0.000000e+00> : vector<8xf32>
    %63 = vector.multi_reduction <add>, %62, %cst_33 [1] : vector<8x512xf32> to vector<8xf32>
    %64 = vector.shape_cast %63 : vector<8xf32> to vector<8x1xf32>
    %c0_34 = arith.constant 0 : index
    %c0_35 = arith.constant 0 : index
    %c0_36 = arith.constant 0 : index
    %65 = vector.load %arg8[%c0_34, %c0_35, %c0_36] : memref<1x8x1xf32, #tpu.memory_space<vmem>>, vector<1x8x1xf32>
    %66 = vector.shape_cast %65 : vector<1x8x1xf32> to vector<8x1xf32>
    %67 = vector.shape_cast %64 : vector<8x1xf32> to vector<1x8x1xf32>
    tpu.vector_store %arg8[%c0_34, %c0_35, %c0_36], %67 {strides = array<i32>} : memref<1x8x1xf32, #tpu.memory_space<vmem>>, vector<1x8x1xf32>,
    return
  }
  func.func @transform_0(%arg0: i32) -> (i32, i32) {
    %c0_i32 = arith.constant 0 : i32
    %c0_i32_0 = arith.constant 0 : i32
    return %c0_i32, %arg0 : i32, i32
  }
  func.func @transform_1(%arg0: i32) -> (i32, i32) {
    %c0_i32 = arith.constant 0 : i32
    %c0_i32_0 = arith.constant 0 : i32
    %c0_i32_1 = arith.constant 0 : i32
    return %c0_i32, %c0_i32_0 : i32, i32
  }
  func.func @transform_2(%arg0: i32) -> (i32, i32) {
    %c0_i32 = arith.constant 0 : i32
    %c0_i32_0 = arith.constant 0 : i32
    %c0_i32_1 = arith.constant 0 : i32
    return %c0_i32, %c0_i32_0 : i32, i32
  }
  func.func @transform_3(%arg0: i32) -> (i32, i32) {
    %c0_i32 = arith.constant 0 : i32
    %c0_i32_0 = arith.constant 0 : i32
    %c0_i32_1 = arith.constant 0 : i32
    return %c0_i32, %c0_i32_0 : i32, i32
  }
  func.func @transform_4(%arg0: i32) -> (i32, i32, i32) {
    %c0_i32 = arith.constant 0 : i32
    %c0_i32_0 = arith.constant 0 : i32
    %c0_i32_1 = arith.constant 0 : i32
    return %c0_i32, %c0_i32_0, %arg0 : i32, i32, i32
  }
  func.func @transform_5(%arg0: i32) -> (i32, i32) {
    %c0_i32 = arith.constant 0 : i32
    %c0_i32_0 = arith.constant 0 : i32
    return %c0_i32, %arg0 : i32, i32
  }
  func.func @transform_6(%arg0: i32) -> (i32, i32, i32) {
    %c0_i32 = arith.constant 0 : i32
    %c0_i32_0 = arith.constant 0 : i32
    %c0_i32_1 = arith.constant 0 : i32
    return %arg0, %c0_i32, %c0_i32_0 : i32, i32, i32
  }
  func.func @transform_7(%arg0: i32) -> (i32, i32, i32) {
    %c0_i32 = arith.constant 0 : i32
    %c0_i32_0 = arith.constant 0 : i32
    %c0_i32_1 = arith.constant 0 : i32
    return %arg0, %c0_i32, %c0_i32_0 : i32, i32, i32
  }
}

module attributes {stable_mosaic.version = 11 : i64} {
  func.func @_lstm_seq_kernel(%arg0: i32, %arg1: memref<32x256xf32, #tpu.memory_space<vmem>>, %arg2: memref<32x72xf32, #tpu.memory_space<vmem>>, %arg3: memref<32x152xf32, #tpu.memory_space<vmem>>, %arg4: memref<9x1x256xf32, #tpu.memory_space<vmem>>, %arg5: memref<1x8x256xf32, #tpu.memory_space<vmem>>, %arg6: memref<8x256xf32, #tpu.memory_space<vmem>>, %arg7: memref<8x256xf32, #tpu.memory_space<vmem>>, %arg8: memref<152x256xf32, #tpu.memory_space<vmem>>) attributes {dimension_semantics = [#tpu.dimension_semantics<arbitrary>], iteration_bounds = array<i64: 2>, scalar_prefetch = 0 : i64, scratch_operands = 3 : i64, tpu.core_type = #tpu.core_type<tc>, window_params = [{transform_indices = @transform_0, window_bounds = array<i64: 32, 256>}, {pipeline_mode = #tpu.pipeline_mode<synchronous>, transform_indices = @transform_1, window_bounds = array<i64: 32, 72>}, {pipeline_mode = #tpu.pipeline_mode<synchronous>, transform_indices = @transform_2, window_bounds = array<i64: 32, 152>}, {pipeline_mode = #tpu.pipeline_mode<synchronous>, transform_indices = @transform_3, window_bounds = array<i64: 9, 1, 256>}, {transform_indices = @transform_4, window_bounds = array<i64: 1, 8, 256>}]} {
    %c0_i32 = arith.constant 0 : i32
    %0 = arith.cmpi eq, %arg0, %c0_i32 : i32
    %1 = arith.extui %0 : i1 to i32
    %c0_i32_0 = arith.constant 0 : i32
    %2 = arith.cmpi ne, %1, %c0_i32_0 : i32
    scf.if %2 {
      %cst_75 = arith.constant 0.000000e+00 : f32
      %156 = vector.broadcast %cst_75 : f32 to vector<8x256xf32>
      %c0_76 = arith.constant 0 : index
      %c0_77 = arith.constant 0 : index
      %157 = vector.load %arg6[%c0_76, %c0_77] : memref<8x256xf32, #tpu.memory_space<vmem>>, vector<8x256xf32>
      tpu.vector_store %arg6[%c0_76, %c0_77], %156 {strides = array<i32>} : memref<8x256xf32, #tpu.memory_space<vmem>>, vector<8x256xf32>,
      %cst_78 = arith.constant 0.000000e+00 : f32
      %158 = vector.broadcast %cst_78 : f32 to vector<8x256xf32>
      %c0_79 = arith.constant 0 : index
      %c0_80 = arith.constant 0 : index
      %159 = vector.load %arg7[%c0_79, %c0_80] : memref<8x256xf32, #tpu.memory_space<vmem>>, vector<8x256xf32>
      tpu.vector_store %arg7[%c0_79, %c0_80], %158 {strides = array<i32>} : memref<8x256xf32, #tpu.memory_space<vmem>>, vector<8x256xf32>,
      %cst_81 = arith.constant 0.000000e+00 : f32
      %160 = vector.broadcast %cst_81 : f32 to vector<152x256xf32>
      %c0_82 = arith.constant 0 : index
      %c0_83 = arith.constant 0 : index
      %161 = vector.load %arg8[%c0_82, %c0_83] : memref<152x256xf32, #tpu.memory_space<vmem>>, vector<152x256xf32>
      tpu.vector_store %arg8[%c0_82, %c0_83], %160 {strides = array<i32>} : memref<152x256xf32, #tpu.memory_space<vmem>>, vector<152x256xf32>,
      %cst_84 = arith.constant 1.000000e+00 : f32
      %162 = vector.broadcast %cst_84 : f32 to vector<8x256xf32>
      %c144 = arith.constant 144 : index
      %c0_85 = arith.constant 0 : index
      %163 = vector.load %arg8[%c144, %c0_85] : memref<152x256xf32, #tpu.memory_space<vmem>>, vector<8x256xf32>
      tpu.vector_store %arg8[%c144, %c0_85], %162 {strides = array<i32>} : memref<152x256xf32, #tpu.memory_space<vmem>>, vector<8x256xf32>,
    } else {
    }
    %c0 = arith.constant 0 : index
    %c0_1 = arith.constant 0 : index
    %c0_2 = arith.constant 0 : index
    %3 = vector.load %arg4[%c0, %c0_1, %c0_2] : memref<9x1x256xf32, #tpu.memory_space<vmem>>, vector<1x1x256xf32>
    %4 = vector.shape_cast %3 : vector<1x1x256xf32> to vector<1x256xf32>
    %5 = vector.shape_cast %4 : vector<1x256xf32> to vector<1x256xf32>
    %6 = vector.broadcast %5 : vector<1x256xf32> to vector<8x256xf32>
    %c1 = arith.constant 1 : index
    %c0_3 = arith.constant 0 : index
    %c0_4 = arith.constant 0 : index
    %7 = vector.load %arg4[%c1, %c0_3, %c0_4] : memref<9x1x256xf32, #tpu.memory_space<vmem>>, vector<1x1x256xf32>
    %8 = vector.shape_cast %7 : vector<1x1x256xf32> to vector<1x256xf32>
    %9 = vector.shape_cast %8 : vector<1x256xf32> to vector<1x256xf32>
    %10 = vector.broadcast %9 : vector<1x256xf32> to vector<8x256xf32>
    %c2 = arith.constant 2 : index
    %c0_5 = arith.constant 0 : index
    %c0_6 = arith.constant 0 : index
    %11 = vector.load %arg4[%c2, %c0_5, %c0_6] : memref<9x1x256xf32, #tpu.memory_space<vmem>>, vector<1x1x256xf32>
    %12 = vector.shape_cast %11 : vector<1x1x256xf32> to vector<1x256xf32>
    %13 = vector.shape_cast %12 : vector<1x256xf32> to vector<1x256xf32>
    %14 = vector.broadcast %13 : vector<1x256xf32> to vector<8x256xf32>
    %c3 = arith.constant 3 : index
    %c0_7 = arith.constant 0 : index
    %c0_8 = arith.constant 0 : index
    %15 = vector.load %arg4[%c3, %c0_7, %c0_8] : memref<9x1x256xf32, #tpu.memory_space<vmem>>, vector<1x1x256xf32>
    %16 = vector.shape_cast %15 : vector<1x1x256xf32> to vector<1x256xf32>
    %17 = vector.shape_cast %16 : vector<1x256xf32> to vector<1x256xf32>
    %18 = vector.broadcast %17 : vector<1x256xf32> to vector<8x256xf32>
    %c4 = arith.constant 4 : index
    %c0_9 = arith.constant 0 : index
    %c0_10 = arith.constant 0 : index
    %19 = vector.load %arg4[%c4, %c0_9, %c0_10] : memref<9x1x256xf32, #tpu.memory_space<vmem>>, vector<1x1x256xf32>
    %20 = vector.shape_cast %19 : vector<1x1x256xf32> to vector<1x256xf32>
    %21 = vector.shape_cast %20 : vector<1x256xf32> to vector<1x256xf32>
    %22 = vector.broadcast %21 : vector<1x256xf32> to vector<8x256xf32>
    %c5 = arith.constant 5 : index
    %c0_11 = arith.constant 0 : index
    %c0_12 = arith.constant 0 : index
    %23 = vector.load %arg4[%c5, %c0_11, %c0_12] : memref<9x1x256xf32, #tpu.memory_space<vmem>>, vector<1x1x256xf32>
    %24 = vector.shape_cast %23 : vector<1x1x256xf32> to vector<1x256xf32>
    %25 = vector.shape_cast %24 : vector<1x256xf32> to vector<1x256xf32>
    %26 = vector.broadcast %25 : vector<1x256xf32> to vector<8x256xf32>
    %c6 = arith.constant 6 : index
    %c0_13 = arith.constant 0 : index
    %c0_14 = arith.constant 0 : index
    %27 = vector.load %arg4[%c6, %c0_13, %c0_14] : memref<9x1x256xf32, #tpu.memory_space<vmem>>, vector<1x1x256xf32>
    %28 = vector.shape_cast %27 : vector<1x1x256xf32> to vector<1x256xf32>
    %29 = vector.shape_cast %28 : vector<1x256xf32> to vector<1x256xf32>
    %30 = vector.broadcast %29 : vector<1x256xf32> to vector<8x256xf32>
    %c7 = arith.constant 7 : index
    %c0_15 = arith.constant 0 : index
    %c0_16 = arith.constant 0 : index
    %31 = vector.load %arg4[%c7, %c0_15, %c0_16] : memref<9x1x256xf32, #tpu.memory_space<vmem>>, vector<1x1x256xf32>
    %32 = vector.shape_cast %31 : vector<1x1x256xf32> to vector<1x256xf32>
    %33 = vector.shape_cast %32 : vector<1x256xf32> to vector<1x256xf32>
    %34 = vector.broadcast %33 : vector<1x256xf32> to vector<8x256xf32>
    %c8 = arith.constant 8 : index
    %c0_17 = arith.constant 0 : index
    %c0_18 = arith.constant 0 : index
    %35 = vector.load %arg4[%c8, %c0_17, %c0_18] : memref<9x1x256xf32, #tpu.memory_space<vmem>>, vector<1x1x256xf32>
    %36 = vector.shape_cast %35 : vector<1x1x256xf32> to vector<1x256xf32>
    %37 = vector.shape_cast %36 : vector<1x256xf32> to vector<1x256xf32>
    %38 = vector.broadcast %37 : vector<1x256xf32> to vector<8x256xf32>
    %c0_19 = arith.constant 0 : index
    %c0_20 = arith.constant 0 : index
    %39 = vector.load %arg1[%c0_19, %c0_20] : memref<32x256xf32, #tpu.memory_space<vmem>>, vector<32x256xf32>
    %c0_21 = arith.constant 0 : index
    %c0_22 = arith.constant 0 : index
    %40 = vector.load %arg2[%c0_21, %c0_22] : memref<32x72xf32, #tpu.memory_space<vmem>>, vector<32x72xf32>
    %c0_23 = arith.constant 0 : index
    %c0_24 = arith.constant 0 : index
    %41 = vector.load %arg8[%c0_23, %c0_24] : memref<152x256xf32, #tpu.memory_space<vmem>>, vector<72x256xf32>
    %cst = arith.constant dense<0.000000e+00> : vector<32x256xf32>
    %42 = tpu.matmul %40, %41, %cst {dimension_numbers = #tpu.dot_dimension_numbers<[1], [0], [0], [1], [0, 0, 1, 1], [], []>} : vector<32x72xf32>, vector<72x256xf32>, vector<32x256xf32> -> vector<32x256xf32>
    %43 = arith.addf %39, %42 : vector<32x256xf32>
    %c0_25 = arith.constant 0 : index
    %c0_26 = arith.constant 0 : index
    %44 = vector.load %arg6[%c0_25, %c0_26] : memref<8x256xf32, #tpu.memory_space<vmem>>, vector<8x256xf32>
    %45 = vector.extract_strided_slice %43 {offsets = [0, 0], sizes = [8, 256], strides = [1, 1]} : vector<32x256xf32> to vector<8x256xf32>
    %46 = arith.negf %45 : vector<8x256xf32>
    %47 = math.exp %46 : vector<8x256xf32>
    %cst_27 = arith.constant 1.000000e+00 : f32
    %48 = vector.broadcast %cst_27 : f32 to vector<8x256xf32>
    %49 = arith.addf %48, %47 : vector<8x256xf32>
    %50 = arith.divf %48, %49 : vector<8x256xf32>
    %51 = vector.extract_strided_slice %43 {offsets = [8, 0], sizes = [8, 256], strides = [1, 1]} : vector<32x256xf32> to vector<8x256xf32>
    %52 = arith.negf %51 : vector<8x256xf32>
    %53 = math.exp %52 : vector<8x256xf32>
    %cst_28 = arith.constant 1.000000e+00 : f32
    %54 = vector.broadcast %cst_28 : f32 to vector<8x256xf32>
    %55 = arith.addf %54, %53 : vector<8x256xf32>
    %56 = arith.divf %54, %55 : vector<8x256xf32>
    %57 = vector.extract_strided_slice %43 {offsets = [16, 0], sizes = [8, 256], strides = [1, 1]} : vector<32x256xf32> to vector<8x256xf32>
    %58 = arith.negf %57 : vector<8x256xf32>
    %59 = math.exp %58 : vector<8x256xf32>
    %cst_29 = arith.constant 1.000000e+00 : f32
    %60 = vector.broadcast %cst_29 : f32 to vector<8x256xf32>
    %61 = arith.addf %60, %59 : vector<8x256xf32>
    %62 = arith.divf %60, %61 : vector<8x256xf32>
    %63 = vector.extract_strided_slice %43 {offsets = [24, 0], sizes = [8, 256], strides = [1, 1]} : vector<32x256xf32> to vector<8x256xf32>
    %64 = math.tanh %63 : vector<8x256xf32>
    %65 = arith.mulf %56, %44 : vector<8x256xf32>
    %66 = arith.mulf %50, %64 : vector<8x256xf32>
    %67 = arith.addf %65, %66 : vector<8x256xf32>
    %68 = math.tanh %67 : vector<8x256xf32>
    %69 = arith.mulf %62, %68 : vector<8x256xf32>
    %c0_30 = arith.constant 0 : index
    %c0_31 = arith.constant 0 : index
    %70 = vector.load %arg6[%c0_30, %c0_31] : memref<8x256xf32, #tpu.memory_space<vmem>>, vector<8x256xf32>
    tpu.vector_store %arg6[%c0_30, %c0_31], %67 {strides = array<i32>} : memref<8x256xf32, #tpu.memory_space<vmem>>, vector<8x256xf32>,
    %c17_i32 = arith.constant 17 : i32
    %71 = tpu.dynamic_rotate %69 by %c17_i32 dim 1 : vector<8x256xf32>, i32 -> vector<8x256xf32>
    %72 = arith.mulf %71, %6 : vector<8x256xf32>
    %c0_32 = arith.constant 0 : index
    %c0_33 = arith.constant 0 : index
    %73 = vector.load %arg8[%c0_32, %c0_33] : memref<152x256xf32, #tpu.memory_space<vmem>>, vector<8x256xf32>
    tpu.vector_store %arg8[%c0_32, %c0_33], %72 {strides = array<i32>} : memref<152x256xf32, #tpu.memory_space<vmem>>, vector<8x256xf32>,
    %c16_i32 = arith.constant 16 : i32
    %74 = tpu.dynamic_rotate %69 by %c16_i32 dim 1 : vector<8x256xf32>, i32 -> vector<8x256xf32>
    %75 = arith.mulf %74, %10 : vector<8x256xf32>
    %c8_34 = arith.constant 8 : index
    %c0_35 = arith.constant 0 : index
    %76 = vector.load %arg8[%c8_34, %c0_35] : memref<152x256xf32, #tpu.memory_space<vmem>>, vector<8x256xf32>
    tpu.vector_store %arg8[%c8_34, %c0_35], %75 {strides = array<i32>} : memref<152x256xf32, #tpu.memory_space<vmem>>, vector<8x256xf32>,
    %c15_i32 = arith.constant 15 : i32
    %77 = tpu.dynamic_rotate %69 by %c15_i32 dim 1 : vector<8x256xf32>, i32 -> vector<8x256xf32>
    %78 = arith.mulf %77, %14 : vector<8x256xf32>
    %c16 = arith.constant 16 : index
    %c0_36 = arith.constant 0 : index
    %79 = vector.load %arg8[%c16, %c0_36] : memref<152x256xf32, #tpu.memory_space<vmem>>, vector<8x256xf32>
    tpu.vector_store %arg8[%c16, %c0_36], %78 {strides = array<i32>} : memref<152x256xf32, #tpu.memory_space<vmem>>, vector<8x256xf32>,
    %c1_i32 = arith.constant 1 : i32
    %80 = tpu.dynamic_rotate %69 by %c1_i32 dim 1 : vector<8x256xf32>, i32 -> vector<8x256xf32>
    %81 = arith.mulf %80, %18 : vector<8x256xf32>
    %c24 = arith.constant 24 : index
    %c0_37 = arith.constant 0 : index
    %82 = vector.load %arg8[%c24, %c0_37] : memref<152x256xf32, #tpu.memory_space<vmem>>, vector<8x256xf32>
    tpu.vector_store %arg8[%c24, %c0_37], %81 {strides = array<i32>} : memref<152x256xf32, #tpu.memory_space<vmem>>, vector<8x256xf32>,
    %83 = arith.mulf %69, %22 : vector<8x256xf32>
    %c32 = arith.constant 32 : index
    %c0_38 = arith.constant 0 : index
    %84 = vector.load %arg8[%c32, %c0_38] : memref<152x256xf32, #tpu.memory_space<vmem>>, vector<8x256xf32>
    tpu.vector_store %arg8[%c32, %c0_38], %83 {strides = array<i32>} : memref<152x256xf32, #tpu.memory_space<vmem>>, vector<8x256xf32>,
    %c255_i32 = arith.constant 255 : i32
    %85 = tpu.dynamic_rotate %69 by %c255_i32 dim 1 : vector<8x256xf32>, i32 -> vector<8x256xf32>
    %86 = arith.mulf %85, %26 : vector<8x256xf32>
    %c40 = arith.constant 40 : index
    %c0_39 = arith.constant 0 : index
    %87 = vector.load %arg8[%c40, %c0_39] : memref<152x256xf32, #tpu.memory_space<vmem>>, vector<8x256xf32>
    tpu.vector_store %arg8[%c40, %c0_39], %86 {strides = array<i32>} : memref<152x256xf32, #tpu.memory_space<vmem>>, vector<8x256xf32>,
    %c241_i32 = arith.constant 241 : i32
    %88 = tpu.dynamic_rotate %69 by %c241_i32 dim 1 : vector<8x256xf32>, i32 -> vector<8x256xf32>
    %89 = arith.mulf %88, %30 : vector<8x256xf32>
    %c48 = arith.constant 48 : index
    %c0_40 = arith.constant 0 : index
    %90 = vector.load %arg8[%c48, %c0_40] : memref<152x256xf32, #tpu.memory_space<vmem>>, vector<8x256xf32>
    tpu.vector_store %arg8[%c48, %c0_40], %89 {strides = array<i32>} : memref<152x256xf32, #tpu.memory_space<vmem>>, vector<8x256xf32>,
    %c240_i32 = arith.constant 240 : i32
    %91 = tpu.dynamic_rotate %69 by %c240_i32 dim 1 : vector<8x256xf32>, i32 -> vector<8x256xf32>
    %92 = arith.mulf %91, %34 : vector<8x256xf32>
    %c56 = arith.constant 56 : index
    %c0_41 = arith.constant 0 : index
    %93 = vector.load %arg8[%c56, %c0_41] : memref<152x256xf32, #tpu.memory_space<vmem>>, vector<8x256xf32>
    tpu.vector_store %arg8[%c56, %c0_41], %92 {strides = array<i32>} : memref<152x256xf32, #tpu.memory_space<vmem>>, vector<8x256xf32>,
    %c239_i32 = arith.constant 239 : i32
    %94 = tpu.dynamic_rotate %69 by %c239_i32 dim 1 : vector<8x256xf32>, i32 -> vector<8x256xf32>
    %95 = arith.mulf %94, %38 : vector<8x256xf32>
    %c64 = arith.constant 64 : index
    %c0_42 = arith.constant 0 : index
    %96 = vector.load %arg8[%c64, %c0_42] : memref<152x256xf32, #tpu.memory_space<vmem>>, vector<8x256xf32>
    tpu.vector_store %arg8[%c64, %c0_42], %95 {strides = array<i32>} : memref<152x256xf32, #tpu.memory_space<vmem>>, vector<8x256xf32>,
    %c0_43 = arith.constant 0 : index
    %c0_44 = arith.constant 0 : index
    %97 = vector.load %arg3[%c0_43, %c0_44] : memref<32x152xf32, #tpu.memory_space<vmem>>, vector<32x152xf32>
    %c0_45 = arith.constant 0 : index
    %c0_46 = arith.constant 0 : index
    %98 = vector.load %arg8[%c0_45, %c0_46] : memref<152x256xf32, #tpu.memory_space<vmem>>, vector<152x256xf32>
    %cst_47 = arith.constant dense<0.000000e+00> : vector<32x256xf32>
    %99 = tpu.matmul %97, %98, %cst_47 {dimension_numbers = #tpu.dot_dimension_numbers<[1], [0], [0], [1], [0, 0, 1, 1], [], []>} : vector<32x152xf32>, vector<152x256xf32>, vector<32x256xf32> -> vector<32x256xf32>
    %c0_48 = arith.constant 0 : index
    %c0_49 = arith.constant 0 : index
    %100 = vector.load %arg7[%c0_48, %c0_49] : memref<8x256xf32, #tpu.memory_space<vmem>>, vector<8x256xf32>
    %101 = vector.extract_strided_slice %99 {offsets = [0, 0], sizes = [8, 256], strides = [1, 1]} : vector<32x256xf32> to vector<8x256xf32>
    %102 = arith.negf %101 : vector<8x256xf32>
    %103 = math.exp %102 : vector<8x256xf32>
    %cst_50 = arith.constant 1.000000e+00 : f32
    %104 = vector.broadcast %cst_50 : f32 to vector<8x256xf32>
    %105 = arith.addf %104, %103 : vector<8x256xf32>
    %106 = arith.divf %104, %105 : vector<8x256xf32>
    %107 = vector.extract_strided_slice %99 {offsets = [8, 0], sizes = [8, 256], strides = [1, 1]} : vector<32x256xf32> to vector<8x256xf32>
    %108 = arith.negf %107 : vector<8x256xf32>
    %109 = math.exp %108 : vector<8x256xf32>
    %cst_51 = arith.constant 1.000000e+00 : f32
    %110 = vector.broadcast %cst_51 : f32 to vector<8x256xf32>
    %111 = arith.addf %110, %109 : vector<8x256xf32>
    %112 = arith.divf %110, %111 : vector<8x256xf32>
    %113 = vector.extract_strided_slice %99 {offsets = [16, 0], sizes = [8, 256], strides = [1, 1]} : vector<32x256xf32> to vector<8x256xf32>
    %114 = arith.negf %113 : vector<8x256xf32>
    %115 = math.exp %114 : vector<8x256xf32>
    %cst_52 = arith.constant 1.000000e+00 : f32
    %116 = vector.broadcast %cst_52 : f32 to vector<8x256xf32>
    %117 = arith.addf %116, %115 : vector<8x256xf32>
    %118 = arith.divf %116, %117 : vector<8x256xf32>
    %119 = vector.extract_strided_slice %99 {offsets = [24, 0], sizes = [8, 256], strides = [1, 1]} : vector<32x256xf32> to vector<8x256xf32>
    %120 = math.tanh %119 : vector<8x256xf32>
    %121 = arith.mulf %112, %100 : vector<8x256xf32>
    %122 = arith.mulf %106, %120 : vector<8x256xf32>
    %123 = arith.addf %121, %122 : vector<8x256xf32>
    %124 = math.tanh %123 : vector<8x256xf32>
    %125 = arith.mulf %118, %124 : vector<8x256xf32>
    %c0_53 = arith.constant 0 : index
    %c0_54 = arith.constant 0 : index
    %126 = vector.load %arg7[%c0_53, %c0_54] : memref<8x256xf32, #tpu.memory_space<vmem>>, vector<8x256xf32>
    tpu.vector_store %arg7[%c0_53, %c0_54], %123 {strides = array<i32>} : memref<8x256xf32, #tpu.memory_space<vmem>>, vector<8x256xf32>,
    %c0_55 = arith.constant 0 : index
    %c0_56 = arith.constant 0 : index
    %c0_57 = arith.constant 0 : index
    %127 = vector.load %arg5[%c0_55, %c0_56, %c0_57] : memref<1x8x256xf32, #tpu.memory_space<vmem>>, vector<1x8x256xf32>
    %128 = vector.shape_cast %127 : vector<1x8x256xf32> to vector<8x256xf32>
    %129 = vector.shape_cast %125 : vector<8x256xf32> to vector<1x8x256xf32>
    tpu.vector_store %arg5[%c0_55, %c0_56, %c0_57], %129 {strides = array<i32>} : memref<1x8x256xf32, #tpu.memory_space<vmem>>, vector<1x8x256xf32>,
    %c17_i32_58 = arith.constant 17 : i32
    %130 = tpu.dynamic_rotate %125 by %c17_i32_58 dim 1 : vector<8x256xf32>, i32 -> vector<8x256xf32>
    %131 = arith.mulf %130, %6 : vector<8x256xf32>
    %c72 = arith.constant 72 : index
    %c0_59 = arith.constant 0 : index
    %132 = vector.load %arg8[%c72, %c0_59] : memref<152x256xf32, #tpu.memory_space<vmem>>, vector<8x256xf32>
    tpu.vector_store %arg8[%c72, %c0_59], %131 {strides = array<i32>} : memref<152x256xf32, #tpu.memory_space<vmem>>, vector<8x256xf32>,
    %c16_i32_60 = arith.constant 16 : i32
    %133 = tpu.dynamic_rotate %125 by %c16_i32_60 dim 1 : vector<8x256xf32>, i32 -> vector<8x256xf32>
    %134 = arith.mulf %133, %10 : vector<8x256xf32>
    %c80 = arith.constant 80 : index
    %c0_61 = arith.constant 0 : index
    %135 = vector.load %arg8[%c80, %c0_61] : memref<152x256xf32, #tpu.memory_space<vmem>>, vector<8x256xf32>
    tpu.vector_store %arg8[%c80, %c0_61], %134 {strides = array<i32>} : memref<152x256xf32, #tpu.memory_space<vmem>>, vector<8x256xf32>,
    %c15_i32_62 = arith.constant 15 : i32
    %136 = tpu.dynamic_rotate %125 by %c15_i32_62 dim 1 : vector<8x256xf32>, i32 -> vector<8x256xf32>
    %137 = arith.mulf %136, %14 : vector<8x256xf32>
    %c88 = arith.constant 88 : index
    %c0_63 = arith.constant 0 : index
    %138 = vector.load %arg8[%c88, %c0_63] : memref<152x256xf32, #tpu.memory_space<vmem>>, vector<8x256xf32>
    tpu.vector_store %arg8[%c88, %c0_63], %137 {strides = array<i32>} : memref<152x256xf32, #tpu.memory_space<vmem>>, vector<8x256xf32>,
    %c1_i32_64 = arith.constant 1 : i32
    %139 = tpu.dynamic_rotate %125 by %c1_i32_64 dim 1 : vector<8x256xf32>, i32 -> vector<8x256xf32>
    %140 = arith.mulf %139, %18 : vector<8x256xf32>
    %c96 = arith.constant 96 : index
    %c0_65 = arith.constant 0 : index
    %141 = vector.load %arg8[%c96, %c0_65] : memref<152x256xf32, #tpu.memory_space<vmem>>, vector<8x256xf32>
    tpu.vector_store %arg8[%c96, %c0_65], %140 {strides = array<i32>} : memref<152x256xf32, #tpu.memory_space<vmem>>, vector<8x256xf32>,
    %142 = arith.mulf %125, %22 : vector<8x256xf32>
    %c104 = arith.constant 104 : index
    %c0_66 = arith.constant 0 : index
    %143 = vector.load %arg8[%c104, %c0_66] : memref<152x256xf32, #tpu.memory_space<vmem>>, vector<8x256xf32>
    tpu.vector_store %arg8[%c104, %c0_66], %142 {strides = array<i32>} : memref<152x256xf32, #tpu.memory_space<vmem>>, vector<8x256xf32>,
    %c255_i32_67 = arith.constant 255 : i32
    %144 = tpu.dynamic_rotate %125 by %c255_i32_67 dim 1 : vector<8x256xf32>, i32 -> vector<8x256xf32>
    %145 = arith.mulf %144, %26 : vector<8x256xf32>
    %c112 = arith.constant 112 : index
    %c0_68 = arith.constant 0 : index
    %146 = vector.load %arg8[%c112, %c0_68] : memref<152x256xf32, #tpu.memory_space<vmem>>, vector<8x256xf32>
    tpu.vector_store %arg8[%c112, %c0_68], %145 {strides = array<i32>} : memref<152x256xf32, #tpu.memory_space<vmem>>, vector<8x256xf32>,
    %c241_i32_69 = arith.constant 241 : i32
    %147 = tpu.dynamic_rotate %125 by %c241_i32_69 dim 1 : vector<8x256xf32>, i32 -> vector<8x256xf32>
    %148 = arith.mulf %147, %30 : vector<8x256xf32>
    %c120 = arith.constant 120 : index
    %c0_70 = arith.constant 0 : index
    %149 = vector.load %arg8[%c120, %c0_70] : memref<152x256xf32, #tpu.memory_space<vmem>>, vector<8x256xf32>
    tpu.vector_store %arg8[%c120, %c0_70], %148 {strides = array<i32>} : memref<152x256xf32, #tpu.memory_space<vmem>>, vector<8x256xf32>,
    %c240_i32_71 = arith.constant 240 : i32
    %150 = tpu.dynamic_rotate %125 by %c240_i32_71 dim 1 : vector<8x256xf32>, i32 -> vector<8x256xf32>
    %151 = arith.mulf %150, %34 : vector<8x256xf32>
    %c128 = arith.constant 128 : index
    %c0_72 = arith.constant 0 : index
    %152 = vector.load %arg8[%c128, %c0_72] : memref<152x256xf32, #tpu.memory_space<vmem>>, vector<8x256xf32>
    tpu.vector_store %arg8[%c128, %c0_72], %151 {strides = array<i32>} : memref<152x256xf32, #tpu.memory_space<vmem>>, vector<8x256xf32>,
    %c239_i32_73 = arith.constant 239 : i32
    %153 = tpu.dynamic_rotate %125 by %c239_i32_73 dim 1 : vector<8x256xf32>, i32 -> vector<8x256xf32>
    %154 = arith.mulf %153, %38 : vector<8x256xf32>
    %c136 = arith.constant 136 : index
    %c0_74 = arith.constant 0 : index
    %155 = vector.load %arg8[%c136, %c0_74] : memref<152x256xf32, #tpu.memory_space<vmem>>, vector<8x256xf32>
    tpu.vector_store %arg8[%c136, %c0_74], %154 {strides = array<i32>} : memref<152x256xf32, #tpu.memory_space<vmem>>, vector<8x256xf32>,
    return
  }
  func.func @transform_0(%arg0: i32) -> (i32, i32) {
    %c0_i32 = arith.constant 0 : i32
    %c0_i32_0 = arith.constant 0 : i32
    return %c0_i32, %arg0 : i32, i32
  }
  func.func @transform_1(%arg0: i32) -> (i32, i32) {
    %c0_i32 = arith.constant 0 : i32
    %c0_i32_0 = arith.constant 0 : i32
    %c0_i32_1 = arith.constant 0 : i32
    return %c0_i32, %c0_i32_0 : i32, i32
  }
  func.func @transform_2(%arg0: i32) -> (i32, i32) {
    %c0_i32 = arith.constant 0 : i32
    %c0_i32_0 = arith.constant 0 : i32
    %c0_i32_1 = arith.constant 0 : i32
    return %c0_i32, %c0_i32_0 : i32, i32
  }
  func.func @transform_3(%arg0: i32) -> (i32, i32, i32) {
    %c0_i32 = arith.constant 0 : i32
    %c0_i32_0 = arith.constant 0 : i32
    %c0_i32_1 = arith.constant 0 : i32
    %c0_i32_2 = arith.constant 0 : i32
    return %c0_i32, %c0_i32_0, %c0_i32_1 : i32, i32, i32
  }
  func.func @transform_4(%arg0: i32) -> (i32, i32, i32) {
    %c0_i32 = arith.constant 0 : i32
    %c0_i32_0 = arith.constant 0 : i32
    %c0_i32_1 = arith.constant 0 : i32
    return %arg0, %c0_i32, %c0_i32_0 : i32, i32, i32
  }
}

</mosaic_0001>

<bundles_post_ra>
// kernel: double_conv_forward.5
= control target key start
LH: loop header
LB: loop body
LE: loop exit
PB: predicated region body
PF: predicated region fallthrough
CT: control target
= control target key end

     0   :  { %v431_v0 = vmov 0   ;;  %s433_s10 = smov 111   ;;  %s434_s13 = smov 113   ;;  %v76_v24 = vlaneseq  ;;  %vm292_vm8 = vcmask 588800   ;;  %vm385_vm9 = vcmask 7168   ;;  %s724_s1 = inlined_call_operand.vmem [shape: f32[8,1], index: 1, kind: input, shape index: {}]   ;;  %s725_s2 = inlined_call_operand.vmem [shape: f32[8,1], index: 2, kind: input, shape index: {}]   ;;  %s726_s0 = inlined_call_operand.vmem [shape: f32[8,512], index: 0, kind: input, shape index: {}]   ;;  %s727_s4 = inlined_call_operand.vmem [shape: f32[9,1,512], index: 4, kind: input, shape index: {}]   ;;  %s728_s3 = inlined_call_operand.vmem [shape: f32[8,72], index: 3, kind: input, shape index: {}]   ;;  %s729_s5 = inlined_call_operand.vmem [shape: f32[8,512], index: 5, kind: output, shape index: {0}]   ;;  %s730_s6 = inlined_call_operand.vmem [shape: f32[1,8,1], index: 6, kind: output, shape index: {1}]   ;;  %s731_s7 = inlined_call_operand.vmem [shape: f32[1,8,1], index: 7, kind: output, shape index: {2}]  }
   0x1   :  { %430 = vset.pattern.permute.xlu0 %v431_v0  ;;  %v27_v1 = vld [vmem:[%s724_s1] sm:$0xff]  ;;  %v25_v5 = vld [vmem:[%s726_s0 + $0x10] sm:$0xff]  ;;  %v26_v11 = vld [vmem:[%s726_s0 + $0x18] sm:$0xff]  ;;  %s435_s14 = smov 127   ;;  %s437_s15 = smov 15  }
   0x2   :  { %30 = vperm.xlu0 %430, %v27_v1   ;;  %v37_v2 = vld [vmem:[%s725_s2] sm:$0xff]  ;;  %s432_s2 = smov 112   ;;  %v24_v17 = vld [vmem:[%s726_s0 + $0x8] sm:$0xff]  ;;  %s438_s16 = smov 16   ;;  %v542_v28 = vand.u32 127, %v76_v24 }
   0x3   :  { %v23_v4 = vld [vmem:[%s726_s0] sm:$0xff]  ;;  %s436_s0 = smov 1   ;;  %s439_s17 = smov 17   ;;  %v415_v30 = vld [vmem:[%s727_s4 + $0x1c] sm:$0xf] }
   0x4   :  { %v416_v29 = vld [vmem:[%s727_s4 + $0x20] sm:$0xf]  ;;  %vm247_vm0 = vcmp.lt.s32.totalorder %v542_v28, 112  ;;  %vm273_vm1 = vcmp.lt.s32.totalorder %v542_v28, 111  ;;  %v255_v35 = vperm.slane %v415_v30, 2  ;;  %v256_v36 = vperm.slane %v415_v30, 3 }
   0x5   :  { %v281_v31 = vperm.slane %v416_v29, 2  ;;  %v282_v32 = vperm.slane %v416_v29, 3  ;;  %v563_v44 = vld [vmem:[%s727_s4 + $0x18] sm:$0xf]  ;;  %v568_v47 = vld [vmem:[%s727_s4 + $0x14] sm:$0xf] }
   0x6   :  { %vm221_vm2 = vcmp.lt.s32.totalorder %v542_v28, 113  ;;  %v229_v48 = vperm.slane %v563_v44, 2  ;;  %vm195_vm3 = vcmp.lt.s32.totalorder %v542_v28, 127  ;;  %v576_v49 = vld [vmem:[%s727_s4 + $0x10] sm:$0xf]  ;;  %v203_v52 = vperm.slane %v568_v47, 2 }
   0x7   :  { %v177_v57 = vperm.slane %v576_v49, 2  ;;  %v279_v60 = vperm.slane %v416_v29, 0  ;;  %v280_v61 = vperm.slane %v416_v29, 1  ;;  %v253_v0 = vperm.slane %v415_v30, 0 }
   0x8   :  { %v254_v1 = vperm.slane %v415_v30, 1  ;;  %vm156_vm4 = vcmp.lt.s32.totalorder %v542_v28, 1  ;;  %vm130_vm5 = vcmp.lt.s32.totalorder %v542_v28, 15  ;;  %vm104_vm6 = vcmp.lt.s32.totalorder %v542_v28, 16 }
   0x9   :  { %vm78_vm7 = vcmp.lt.s32.totalorder %v542_v28, 17 }
   0xa   :  { %40 = vperm.xlu0 %430, %v37_v2  }
  0x74   :  { %v31_v3 = vpop.permute.xlu0 %30 }
  0x75   :  { %v33_v6 = vmul.f32 %v31_v3, %v23_v4  ;;  %v35_v7 = vmul.f32 %v31_v3, %v25_v5  ;;  %v36_v14 = vmul.f32 %v31_v3, %v26_v11  ;;  %v34_v18 = vmul.f32 %v31_v3, %v24_v17  ;;  %v602_v11 = vld [vmem:[%s727_s4 + $0xc] sm:$0xf] }
  0x7c   :  { %v41_v8 = vpop.permute.xlu0 %40 }
  0x7d   :  { %v43_v9 = vadd.f32 %v41_v8, %v33_v6  ;;  %v45_v10 = vadd.f32 %v41_v8, %v35_v7  ;;  %v46_v15 = vadd.f32 %v41_v8, %v36_v14  ;;  %v44_v19 = vadd.f32 %v41_v8, %v34_v18 }
  0x7e   :  { %v164_v14 = vperm.slane %v602_v11, 2  ;;  %v204_v18 = vperm.slane %v568_v47, 3 }
  0x7f   :  { %v495_v12 = vmax.f32 %v43_v9, 0.0  ;;  %v497_v13 = vmax.f32 %v45_v10, 0.0  ;;  %v502_v16 = vmax.f32 %v46_v15, 0.0  ;;  %v513_v20 = vmax.f32 %v44_v19, 0.0 }
  0x81   :  { %243 = vrot.lane.b32.xlu2 %v497_v13, %s432_s2  ;;  %269 = vrot.lane.b32.xlu1 %v497_v13, %s433_s10  ;;  %v185_v59 = vmul.f32 %v177_v57, %v497_v13 }
  0x82   :  { %265 = vrot.lane.b32.xlu0 %v495_v12, %s433_s10 }
  0x89   :  { %245 = vrot.lane.b32.xlu2 %v502_v16, %s432_s2  ;;  %271 = vrot.lane.b32.xlu1 %v502_v16, %s433_s10 }
  0x8a   :  { %239 = vrot.lane.b32.xlu0 %v495_v12, %s432_s2 }
  0x91   :  { %219 = vrot.lane.b32.xlu2 %v502_v16, %s434_s13  ;;  %217 = vrot.lane.b32.xlu1 %v497_v13, %s434_s13 }
  0x92   :  { %193 = vrot.lane.b32.xlu0 %v502_v16, %s435_s14 }
  0x99   :  { %191 = vrot.lane.b32.xlu2 %v497_v13, %s435_s14  ;;  %267 = vrot.lane.b32.xlu1 %v513_v20, %s433_s10 }
  0x9a   :  { %187 = vrot.lane.b32.xlu0 %v495_v12, %s435_s14 }
  0xa1   :  { %241 = vrot.lane.b32.xlu2 %v513_v20, %s432_s2  ;;  %213 = vrot.lane.b32.xlu1 %v495_v12, %s434_s13 }
  0xa2   :  { %152 = vrot.lane.b32.xlu0 %v497_v13, %s436_s0 }
  0xa9   :  { %150 = vrot.lane.b32.xlu2 %v513_v20, %s436_s0  ;;  %215 = vrot.lane.b32.xlu1 %v513_v20, %s434_s13 }
  0xaa   :  { %126 = vrot.lane.b32.xlu0 %v497_v13, %s437_s15 }
  0xb1   :  { %124 = vrot.lane.b32.xlu2 %v513_v20, %s437_s15  ;;  %189 = vrot.lane.b32.xlu1 %v513_v20, %s435_s14 }
  0xb2   :  { %100 = vrot.lane.b32.xlu0 %v497_v13, %s438_s16 }
  0xb9   :  { %98 = vrot.lane.b32.xlu2 %v513_v20, %s438_s16  ;;  %154 = vrot.lane.b32.xlu1 %v502_v16, %s436_s0 }
  0xba   :  { %70 = vrot.lane.b32.xlu0 %v513_v20, %s439_s17 }
  0xc1   :  { %148 = vrot.lane.b32.xlu2 %v495_v12, %s436_s0  ;;  %128 = vrot.lane.b32.xlu1 %v502_v16, %s437_s15 }
  0xc2   :  { %122 = vrot.lane.b32.xlu0 %v495_v12, %s437_s15 }
  0xc9   :  { %102 = vrot.lane.b32.xlu2 %v502_v16, %s438_s16  ;;  %72 = vrot.lane.b32.xlu1 %v497_v13, %s439_s17  ;;  %v230_v13 = vperm.slane %v563_v44, 3 }
  0xca   :  { %68 = vrot.lane.b32.xlu0 %v495_v12, %s439_s17 }
  0xd1   :  { %96 = vrot.lane.b32.xlu2 %v495_v12, %s438_s16  ;;  %74 = vrot.lane.b32.xlu1 %v502_v16, %s439_s17 }
  0xdb   :  { %v244_v21 = vpop.permute.xlu2 %243 }
  0xe3   :  { %v246_v22 = vpop.permute.xlu2 %245 }
  0xe4   :  { %v248_v37 = vsel %vm247_vm0, %v244_v21, %v246_v22 }
  0xe5   :  { %v263_v45 = vmul.f32 %v255_v35, %v248_v37 }
  0xeb   :  { %v538_v23 = vpop.permute.xlu2 %219 }
  0xf3   :  { %v540_v25 = vpop.permute.xlu2 %191  ;;  %v270_v26 = vpop.permute.xlu1 %269 }
  0xf4   :  { %v266_v27 = vpop.permute.xlu0 %265 }
  0xfb   :  { %v272_v33 = vpop.permute.xlu1 %271  ;;  %v242_v34 = vpop.permute.xlu2 %241 }
  0xfc   :  { %v240_v38 = vpop.permute.xlu0 %239  ;;  %v274_v39 = vsel %vm273_vm1, %v270_v26, %v272_v33  ;;  %v277_v40 = vsel %vm273_vm1, %v272_v33, %v266_v27  ;;  %v249_v2 = vsel %vm247_vm0, %v242_v34, %v244_v21  ;;  %v228_v33 = vperm.slane %v563_v44, 1 }
  0xfd   :  { %v251_v41 = vsel %vm247_vm0, %v246_v22, %v240_v38  ;;  %v289_v42 = vmul.f32 %v281_v31, %v274_v39  ;;  %v290_v43 = vmul.f32 %v282_v32, %v277_v40  ;;  %v250_v3 = vsel %vm247_vm0, %v240_v38, %v242_v34  ;;  %v622_v31 = vld [vmem:[%s727_s4 + $0x8] sm:$0xf] }
  0xfe   :  { %v264_v46 = vmul.f32 %v256_v36, %v251_v41  ;;  %v261_v9 = vmul.f32 %v253_v0, %v250_v3  ;;  %v262_v10 = vmul.f32 %v254_v1, %v249_v2  ;;  %v227_v32 = vperm.slane %v563_v44, 0 }
  0xff   :  { %343 = vmatpush.msra.mxu2 %v289_v42  ;;  %363 = vmatpush.msra.mxu3 %v290_v43  ;;  %v138_v34 = vperm.slane %v622_v31, 2  ;;  %v639_v43 = vld [vmem:[%s727_s4 + $0x4] sm:$0xf]  ;;  %v201_v44 = vperm.slane %v568_v47, 0  ;;  %v162_v0 = vperm.slane %v602_v11, 0  ;;  %v165_v1 = vperm.slane %v602_v11, 3 }
 0x101   :  { %344 = vmatpush.msra.mxu2 %v263_v45  ;;  %364 = vmatpush.msra.mxu3 %v264_v46  ;;  %v202_v45 = vperm.slane %v568_v47, 1  ;;  %v112_v46 = vperm.slane %v639_v43, 2 }
 0x103   :  { %v218_v50 = vpop.permute.xlu1 %217  ;;  %v578_v51 = vpop.permute.xlu2 %150 }
 0x104   :  { %v222_v53 = vsel %vm221_vm2, %v218_v50, %v538_v23  ;;  %v194_v54 = vpop.permute.xlu0 %193 }
 0x105   :  { %v196_v55 = vsel %vm195_vm3, %v540_v25, %v194_v54  ;;  %v237_v56 = vmul.f32 %v229_v48, %v222_v53 }
 0x106   :  { %v211_v58 = vmul.f32 %v203_v52, %v196_v55  ;;  %v176_v52 = vperm.slane %v576_v49, 1 }
 0x107   :  { %345 = vmatpush.msra.mxu2 %v237_v56 }
 0x109   :  { %346 = vmatpush.msra.mxu2 %v211_v58  ;;  %v163_v58 = vperm.slane %v602_v11, 1  ;;  %v113_v11 = vperm.slane %v639_v43, 3 }
 0x10b   :  { %v589_v62 = vpop.permute.xlu2 %124  ;;  %v268_v63 = vpop.permute.xlu1 %267  ;;  %347 = vmatpush.msra.mxu2 %v185_v59 }
 0x10c   :  { %v188_v4 = vpop.permute.xlu0 %187  ;;  %v276_v5 = vsel %vm273_vm1, %v266_v27, %v268_v63  ;;  %v275_v6 = vsel %vm273_vm1, %v268_v63, %v270_v26  ;;  %v178_v27 = vperm.slane %v576_v49, 3 }
 0x10d   :  { %v287_v7 = vmul.f32 %v279_v60, %v276_v5  ;;  %v288_v8 = vmul.f32 %v280_v61, %v275_v6  ;;  %v199_v19 = vsel %vm195_vm3, %v194_v54, %v188_v4  ;;  %v184_v61 = vmul.f32 %v176_v52, %v513_v20 }
 0x10e   :  { %v212_v30 = vmul.f32 %v204_v18, %v199_v19  ;;  %v139_v6 = vperm.slane %v622_v31, 3  ;;  %v111_v19 = vperm.slane %v639_v43, 1 }
 0x10f   :  { %303 = vmatpush.msra.mxu0 %v287_v7  ;;  %323 = vmatpush.msra.mxu1 %v288_v8  ;;  %v136_v7 = vperm.slane %v622_v31, 0  ;;  %v137_v8 = vperm.slane %v622_v31, 1 }
 0x111   :  { %304 = vmatpush.msra.mxu0 %v261_v9  ;;  %324 = vmatpush.msra.mxu1 %v262_v10  ;;  %v110_v10 = vperm.slane %v639_v43, 0 }
 0x113   :  { %v607_v15 = vpop.permute.xlu2 %98  ;;  %v214_v17 = vpop.permute.xlu1 %213 }
 0x114   :  { %v225_v21 = vsel %vm221_vm2, %v538_v23, %v214_v17  ;;  %v153_v22 = vpop.permute.xlu0 %152  ;;  %v186_v23 = vmul.f32 %v178_v27, %v502_v16 }
 0x115   :  { %v158_v24 = vsel %vm156_vm4, %v578_v51, %v153_v22  ;;  %v238_v26 = vmul.f32 %v230_v13, %v225_v21 }
 0x116   :  { %v172_v29 = vmul.f32 %v164_v14, %v158_v24 }
 0x117   :  { %365 = vmatpush.msra.mxu3 %v238_v26 }
 0x118   :  { %348 = vmatpush.msra.mxu2 %v172_v29 }
 0x119   :  { %366 = vmatpush.msra.mxu3 %v212_v30 }
 0x11b   :  { %v216_v35 = vpop.permute.xlu1 %215  ;;  %367 = vmatpush.msra.mxu3 %v186_v23  ;;  %v149_v39 = vpop.permute.xlu2 %148 }
 0x11c   :  { %v223_v36 = vsel %vm221_vm2, %v216_v35, %v218_v50  ;;  %v224_v37 = vsel %vm221_vm2, %v214_v17, %v216_v35  ;;  %v127_v38 = vpop.permute.xlu0 %126  ;;  %v175_v50 = vperm.slane %v576_v49, 0  ;;  %v159_v49 = vsel %vm156_vm4, %v149_v39, %v578_v51 }
 0x11d   :  { %v132_v16 = vsel %vm130_vm5, %v589_v62, %v127_v38  ;;  %v235_v40 = vmul.f32 %v227_v32, %v224_v37  ;;  %v236_v41 = vmul.f32 %v228_v33, %v223_v36  ;;  %v171_v63 = vmul.f32 %v163_v58, %v159_v49 }
 0x11e   :  { %v146_v42 = vmul.f32 %v138_v34, %v132_v16 }
 0x11f   :  { %305 = vmatpush.msra.mxu0 %v235_v40  ;;  %325 = vmatpush.msra.mxu1 %v236_v41 }
 0x120   :  { %349 = vmatpush.msra.mxu2 %v146_v42 }
 0x123   :  { %v190_v48 = vpop.permute.xlu1 %189  ;;  %v103_v60 = vpop.permute.xlu2 %102 }
 0x124   :  { %v197_v53 = vsel %vm195_vm3, %v190_v48, %v540_v25  ;;  %v198_v54 = vsel %vm195_vm3, %v188_v4, %v190_v48  ;;  %v101_v55 = vpop.permute.xlu0 %100  ;;  %v183_v25 = vmul.f32 %v175_v50, %v495_v12 }
 0x125   :  { %v106_v47 = vsel %vm104_vm6, %v607_v15, %v101_v55  ;;  %v209_v56 = vmul.f32 %v201_v44, %v198_v54  ;;  %v210_v57 = vmul.f32 %v202_v45, %v197_v53  ;;  %v105_v13 = vsel %vm104_vm6, %v101_v55, %v103_v60 }
 0x126   :  { %v120_v59 = vmul.f32 %v112_v46, %v106_v47  ;;  %v121_v30 = vmul.f32 %v113_v11, %v105_v13 }
 0x127   :  { %306 = vmatpush.msra.mxu0 %v209_v56  ;;  %326 = vmatpush.msra.mxu1 %v210_v57 }
 0x128   :  { %350 = vmatpush.msra.mxu2 %v120_v59 }
 0x129   :  { %307 = vmatpush.msra.mxu0 %v183_v25  ;;  %327 = vmatpush.msra.mxu1 %v184_v61 }
 0x12b   :  { %328 = vmatpush.msra.mxu1 %v171_v63  ;;  %v155_v2 = vpop.permute.xlu1 %154  ;;  %v97_v20 = vpop.permute.xlu2 %96 }
 0x12c   :  { %v157_v51 = vsel %vm156_vm4, %v153_v22, %v155_v2  ;;  %v160_v3 = vsel %vm156_vm4, %v155_v2, %v149_v39  ;;  %v71_v4 = vpop.permute.xlu0 %70  ;;  %v107_v14 = vsel %vm104_vm6, %v97_v20, %v607_v15  ;;  %v108_v21 = vsel %vm104_vm6, %v103_v60, %v97_v20  ;;  %v51_v15 = vld [vmem:[%s727_s4] sm:$0xf] }
 0x12d   :  { %v170_v12 = vmul.f32 %v162_v0, %v160_v3  ;;  %v173_v5 = vmul.f32 %v165_v1, %v157_v51  ;;  %v118_v31 = vmul.f32 %v110_v10, %v108_v21  ;;  %v119_v23 = vmul.f32 %v111_v19, %v107_v14 }
 0x12e   :  { %v85_v32 = vperm.slane %v51_v15, 1  ;;  %v84_v16 = vperm.slane %v51_v15, 0  ;;  %v87_v40 = vperm.slane %v51_v15, 3 }
 0x12f   :  { %308 = vmatpush.msra.mxu0 %v170_v12  ;;  %368 = vmatpush.msra.mxu3 %v173_v5 }
 0x133   :  { %v129_v9 = vpop.permute.xlu1 %128 }
 0x134   :  { %v131_v17 = vsel %vm130_vm5, %v127_v38, %v129_v9  ;;  %v123_v18 = vpop.permute.xlu0 %122  ;;  %v291_v38 = vld [vmem:[%s728_s3] sm:$0xff] }
 0x135   :  { %v133_v22 = vsel %vm130_vm5, %v123_v18, %v589_v62  ;;  %v134_v24 = vsel %vm130_vm5, %v129_v9, %v123_v18  ;;  %v147_v26 = vmul.f32 %v139_v6, %v131_v17  ;;  %v86_v62 = vperm.slane %v51_v15, 2 }
 0x136   :  { %v144_v27 = vmul.f32 %v136_v7, %v134_v24  ;;  %v145_v29 = vmul.f32 %v137_v8, %v133_v22 }
 0x137   :  { %369 = vmatpush.msra.mxu3 %v147_v26 }
 0x138   :  { %309 = vmatpush.msra.mxu0 %v144_v27  ;;  %329 = vmatpush.msra.mxu1 %v145_v29 }
 0x139   :  { %370 = vmatpush.msra.mxu3 %v121_v30 }
 0x13a   :  { %310 = vmatpush.msra.mxu0 %v118_v31  ;;  %330 = vmatpush.msra.mxu1 %v119_v23 }
 0x13b   :  { %v73_v33 = vpop.permute.xlu1 %72 }
 0x13c   :  { %v80_v34 = vsel %vm78_vm7, %v71_v4, %v73_v33  ;;  %v69_v35 = vpop.permute.xlu0 %68 }
 0x13d   :  { %v81_v36 = vsel %vm78_vm7, %v69_v35, %v71_v4  ;;  %v94_v37 = vmul.f32 %v86_v62, %v80_v34 }
 0x13e   :  { %v93_v39 = vmul.f32 %v85_v32, %v81_v36 }
 0x13f   :  { %351 = vmatpush.msra.mxu2 %v94_v37 }
 0x140   :  { %331 = vmatpush.msra.mxu1 %v93_v39  ;;  %419 = vmatmul.msk.f32.vlgmr.msra.gmra.mxu2 %vm292_vm8, %v291_v38 }
 0x141   :  { %418 = vmatmul.msk.f32.vlgmr.msra.gmra.mxu1 %vm292_vm8, %v291_v38 }
 0x143   :  { %v75_v41 = vpop.permute.xlu1 %74 }
 0x144   :  { %v79_v42 = vsel %vm78_vm7, %v73_v33, %v75_v41  ;;  %v82_v43 = vsel %vm78_vm7, %v75_v41, %v69_v35 }
 0x145   :  { %v92_v44 = vmul.f32 %v84_v16, %v82_v43  ;;  %v95_v45 = vmul.f32 %v87_v40, %v79_v42 }
 0x147   :  { %311 = vmatpush.msra.mxu0 %v92_v44  ;;  %371 = vmatpush.msra.mxu3 %v95_v45 }
 0x148   :  { %420 = vmatmul.msk.f32.vlgmr.msra.gmra.mxu3 %vm292_vm8, %v291_v38  ;;  %417 = vmatmul.msk.f32.vlgmr.msra.gmra.mxu0 %vm292_vm8, %v291_v38 }
 0x1be   :  { %v333_v46 = vpop.f32.mrf.mxu1 }
 0x1bf   :  { %377 = vst [vmem:[%s729_s5 + $0x8] sm:$0xff] %v333_v46  ;;  %v388_v50 = vmul.f32 %v333_v46, %v333_v46 }
 0x1c3   :  { %v353_v48 = vpop.f32.mrf.mxu2 }
 0x1c4   :  { %378 = vst [vmem:[%s729_s5 + $0x10] sm:$0xff] %v353_v48  ;;  %v389_v54 = vmul.f32 %v353_v48, %v353_v48 }
 0x1c5   :  { %v313_v28 = vpop.f32.mrf.mxu0 }
 0x1c6   :  { %376 = vst [vmem:[%s729_s5] sm:$0xff] %v313_v28  ;;  %v387_v52 = vmul.f32 %v313_v28, %v313_v28  ;;  %v380_v53 = vadd.f32 %v333_v46, %v313_v28 }
 0x1c8   :  { %v391_v55 = vadd.f32 %v388_v50, %v387_v52  ;;  %v381_v47 = vadd.f32 %v380_v53, %v353_v48 }
 0x1ca   :  { %v392_v56 = vadd.f32 %v391_v55, %v389_v54 }
 0x1cb   :  { %v373_v57 = vpop.f32.mrf.mxu3 }
 0x1cc   :  { %379 = vst [vmem:[%s729_s5 + $0x18] sm:$0xff] %v373_v57  ;;  %v390_v58 = vmul.f32 %v373_v57, %v373_v57  ;;  %v382_v49 = vadd.f32 %v381_v47, %v373_v57 }
 0x1ce   :  { %383 = vadd.xlane.f32.xlu1 %v382_v49  ;;  %v393_v59 = vadd.f32 %v392_v56, %v390_v58 }
 0x1d0   :  { %394 = vadd.xlane.f32.xlu2 %v393_v59 }
 0x241   :  { %v384_v60 = vpop.xlane.xlu1 %383 }
 0x242   :  { %386 = vst.msk [vmem:[%s730_s6] sm:$0xff] %vm385_vm9, %v384_v60 }
 0x243   :  { %v395_v25 = vpop.xlane.xlu2 %394 }
 0x244   :  { %396 = vst.msk [vmem:[%s731_s7] sm:$0xff] %vm385_vm9, %v395_v25 }

// kernel: double_conv_forward.4
= control target key start
LH: loop header
LB: loop body
LE: loop exit
PB: predicated region body
PF: predicated region fallthrough
CT: control target
= control target key end

     0   :  { %s399_s22 = smov 112   ;;  %s400_s23 = smov 111   ;;  %v46_v6 = vlaneseq  ;;  %vm262_vm8 = vcmask 588800   ;;  %vm355_vm9 = vcmask 7168   ;;  %s645_s0 = inlined_call_operand.vmem [shape: f32[8,512], index: 0, kind: input, shape index: {}]   ;;  %s646_s2 = inlined_call_operand.vmem [shape: f32[9,1,512], index: 2, kind: input, shape index: {}]   ;;  %s647_s1 = inlined_call_operand.vmem [shape: f32[8,72], index: 1, kind: input, shape index: {}]   ;;  %s648_s3 = inlined_call_operand.vmem [shape: f32[8,512], index: 3, kind: output, shape index: {0}]   ;;  %s649_s4 = inlined_call_operand.vmem [shape: f32[1,8,1], index: 4, kind: output, shape index: {1}]   ;;  %s650_s5 = inlined_call_operand.vmem [shape: f32[1,8,1], index: 5, kind: output, shape index: {2}]  }
   0x1   :  { %v440_v0 = vld [vmem:[%s645_s0 + $0x10] sm:$0xff]  ;;  %v445_v1 = vld [vmem:[%s645_s0] sm:$0xff]  ;;  %v453_v2 = vld [vmem:[%s645_s0 + $0x18] sm:$0xff]  ;;  %s401_s26 = smov 113   ;;  %s402_s29 = smov 127  }
   0x2   :  { %213 = vrot.lane.b32.xlu1 %v440_v0, %s399_s22  ;;  %239 = vrot.lane.b32.xlu0 %v440_v0, %s400_s23  ;;  %v461_v3 = vld [vmem:[%s645_s0 + $0x8] sm:$0xff]  ;;  %s403_s0 = smov 1   ;;  %s404_s30 = smov 15   ;;  %v491_v7 = vand.u32 127, %v46_v6  ;;  %v386_v8 = vld [vmem:[%s646_s2 + $0x20] sm:$0xf] }
   0x3   :  { %235 = vrot.lane.b32.xlu2 %v445_v1, %s400_s23  ;;  %s405_s6 = smov 16   ;;  %s406_s7 = smov 17   ;;  %v249_v9 = vperm.slane %v386_v8, 0  ;;  %v250_v13 = vperm.slane %v386_v8, 1  ;;  %v506_v18 = vld [vmem:[%s646_s2 + $0x1c] sm:$0xf] }
   0x4   :  { %vm243_vm0 = vcmp.lt.s32.totalorder %v491_v7, 111  ;;  %vm217_vm1 = vcmp.lt.s32.totalorder %v491_v7, 112  ;;  %v251_v19 = vperm.slane %v386_v8, 2  ;;  %v252_v20 = vperm.slane %v386_v8, 3  ;;  %v384_v30 = vld [vmem:[%s646_s2 + $0x18] sm:$0xf] }
   0x5   :  { %v225_v24 = vperm.slane %v506_v18, 2  ;;  %vm191_vm2 = vcmp.lt.s32.totalorder %v491_v7, 113  ;;  %v199_v32 = vperm.slane %v384_v30, 2  ;;  %v226_v33 = vperm.slane %v506_v18, 3  ;;  %v383_v43 = vld [vmem:[%s646_s2 + $0x14] sm:$0xf] }
   0x6   :  { %v200_v36 = vperm.slane %v384_v30, 3  ;;  %v382_v44 = vld [vmem:[%s646_s2 + $0x10] sm:$0xf]  ;;  %vm165_vm3 = vcmp.lt.s32.totalorder %v491_v7, 127  ;;  %v173_v46 = vperm.slane %v383_v43, 2  ;;  %v223_v54 = vperm.slane %v506_v18, 0 }
   0x7   :  { %v147_v47 = vperm.slane %v382_v44, 2  ;;  %v224_v55 = vperm.slane %v506_v18, 1  ;;  %v174_v56 = vperm.slane %v383_v43, 3  ;;  %v197_v57 = vperm.slane %v384_v30, 0 }
   0x8   :  { %v198_v58 = vperm.slane %v384_v30, 1  ;;  %v172_v59 = vperm.slane %v383_v43, 1  ;;  %v148_v60 = vperm.slane %v382_v44, 3  ;;  %v171_v6 = vperm.slane %v383_v43, 0 }
   0x9   :  { %v155_v52 = vmul.f32 %v147_v47, %v440_v0  ;;  %vm126_vm4 = vcmp.lt.s32.totalorder %v491_v7, 1  ;;  %vm100_vm5 = vcmp.lt.s32.totalorder %v491_v7, 15  ;;  %vm74_vm6 = vcmp.lt.s32.totalorder %v491_v7, 16 }
   0xa   :  { %215 = vrot.lane.b32.xlu1 %v453_v2, %s399_s22  ;;  %241 = vrot.lane.b32.xlu0 %v453_v2, %s400_s23  ;;  %vm48_vm7 = vcmp.lt.s32.totalorder %v491_v7, 17 }
   0xb   :  { %187 = vrot.lane.b32.xlu2 %v440_v0, %s401_s26 }
  0x12   :  { %189 = vrot.lane.b32.xlu0 %v453_v2, %s401_s26  ;;  %209 = vrot.lane.b32.xlu1 %v445_v1, %s399_s22 }
  0x13   :  { %237 = vrot.lane.b32.xlu2 %v461_v3, %s400_s23 }
  0x1a   :  { %161 = vrot.lane.b32.xlu0 %v440_v0, %s402_s29  ;;  %163 = vrot.lane.b32.xlu1 %v453_v2, %s402_s29 }
  0x1b   :  { %183 = vrot.lane.b32.xlu2 %v445_v1, %s401_s26 }
  0x22   :  { %211 = vrot.lane.b32.xlu0 %v461_v3, %s399_s22  ;;  %157 = vrot.lane.b32.xlu1 %v445_v1, %s402_s29 }
  0x23   :  { %185 = vrot.lane.b32.xlu2 %v461_v3, %s401_s26 }
  0x2a   :  { %120 = vrot.lane.b32.xlu0 %v461_v3, %s403_s0  ;;  %122 = vrot.lane.b32.xlu1 %v440_v0, %s403_s0 }
  0x2b   :  { %159 = vrot.lane.b32.xlu2 %v461_v3, %s402_s29 }
  0x32   :  { %94 = vrot.lane.b32.xlu0 %v461_v3, %s404_s30  ;;  %96 = vrot.lane.b32.xlu1 %v440_v0, %s404_s30 }
  0x33   :  { %124 = vrot.lane.b32.xlu2 %v453_v2, %s403_s0 }
  0x3a   :  { %68 = vrot.lane.b32.xlu0 %v461_v3, %s405_s6  ;;  %70 = vrot.lane.b32.xlu1 %v440_v0, %s405_s6 }
  0x3b   :  { %98 = vrot.lane.b32.xlu2 %v453_v2, %s404_s30 }
  0x42   :  { %118 = vrot.lane.b32.xlu0 %v445_v1, %s403_s0  ;;  %40 = vrot.lane.b32.xlu1 %v461_v3, %s406_s7 }
  0x43   :  { %42 = vrot.lane.b32.xlu2 %v440_v0, %s406_s7 }
  0x4a   :  { %72 = vrot.lane.b32.xlu0 %v453_v2, %s405_s6  ;;  %92 = vrot.lane.b32.xlu1 %v445_v1, %s404_s30 }
  0x4b   :  { %44 = vrot.lane.b32.xlu2 %v453_v2, %s406_s7 }
  0x52   :  { %66 = vrot.lane.b32.xlu0 %v445_v1, %s405_s6  ;;  %38 = vrot.lane.b32.xlu1 %v445_v1, %s406_s7 }
  0x5d   :  { %v236_v4 = vpop.permute.xlu2 %235 }
  0x65   :  { %v489_v5 = vpop.permute.xlu2 %187 }
  0x6d   :  { %v238_v10 = vpop.permute.xlu2 %237 }
  0x6e   :  { %v246_v11 = vsel %vm243_vm0, %v236_v4, %v238_v10 }
  0x6f   :  { %v257_v12 = vmul.f32 %v249_v9, %v246_v11 }
  0x71   :  { %273 = vmatpush.msra.mxu0 %v257_v12 }
  0x74   :  { %v499_v14 = vpop.permute.xlu1 %213  ;;  %v240_v15 = vpop.permute.xlu0 %239 }
  0x75   :  { %v245_v16 = vsel %vm243_vm0, %v238_v10, %v240_v15  ;;  %v184_v21 = vpop.permute.xlu2 %183 }
  0x76   :  { %v258_v17 = vmul.f32 %v250_v13, %v245_v16  ;;  %v146_v16 = vperm.slane %v382_v44, 1 }
  0x78   :  { %293 = vmatpush.msra.mxu1 %v258_v17 }
  0x7c   :  { %v216_v22 = vpop.permute.xlu1 %215  ;;  %v242_v23 = vpop.permute.xlu0 %241 }
  0x7d   :  { %v218_v25 = vsel %vm217_vm1, %v499_v14, %v216_v22  ;;  %v244_v26 = vsel %vm243_vm0, %v240_v15, %v242_v23  ;;  %v247_v27 = vsel %vm243_vm0, %v242_v23, %v236_v4  ;;  %v186_v40 = vpop.permute.xlu2 %185  ;;  %v558_v15 = vld [vmem:[%s646_s2 + $0xc] sm:$0xf] }
  0x7e   :  { %v259_v28 = vmul.f32 %v251_v19, %v244_v26  ;;  %v260_v29 = vmul.f32 %v252_v20, %v247_v27  ;;  %v233_v31 = vmul.f32 %v225_v24, %v218_v25  ;;  %v193_v61 = vsel %vm191_vm2, %v186_v40, %v489_v5 }
  0x7f   :  { %v194_v62 = vsel %vm191_vm2, %v184_v21, %v186_v40  ;;  %v206_v19 = vmul.f32 %v198_v58, %v193_v61  ;;  %v135_v24 = vperm.slane %v558_v15, 3  ;;  %v583_v40 = vld [vmem:[%s646_s2 + $0x4] sm:$0xf] }
  0x80   :  { %313 = vmatpush.msra.mxu2 %v259_v28  ;;  %333 = vmatpush.msra.mxu3 %v260_v29  ;;  %v205_v18 = vmul.f32 %v197_v57, %v194_v62  ;;  %v83_v62 = vperm.slane %v583_v40, 3 }
  0x82   :  { %314 = vmatpush.msra.mxu2 %v233_v31 }
  0x84   :  { %v190_v34 = vpop.permute.xlu0 %189  ;;  %v210_v35 = vpop.permute.xlu1 %209 }
  0x85   :  { %v192_v37 = vsel %vm191_vm2, %v489_v5, %v190_v34  ;;  %v195_v38 = vsel %vm191_vm2, %v190_v34, %v184_v21  ;;  %v221_v39 = vsel %vm217_vm1, %v216_v22, %v210_v35  ;;  %v160_v53 = vpop.permute.xlu2 %159  ;;  %v145_v5 = vperm.slane %v382_v44, 0 }
  0x86   :  { %v207_v41 = vmul.f32 %v199_v32, %v192_v37  ;;  %v234_v42 = vmul.f32 %v226_v33, %v221_v39  ;;  %v208_v45 = vmul.f32 %v200_v36, %v195_v38  ;;  %v134_v22 = vperm.slane %v558_v15, 2 }
  0x87   :  { %v153_v25 = vmul.f32 %v145_v5, %v445_v1  ;;  %v380_v1 = vld [vmem:[%s646_s2 + $0x8] sm:$0xf] }
  0x88   :  { %315 = vmatpush.msra.mxu2 %v207_v41  ;;  %334 = vmatpush.msra.mxu3 %v234_v42  ;;  %v108_v32 = vperm.slane %v380_v1, 2  ;;  %v109_v33 = vperm.slane %v380_v1, 3  ;;  %v82_v41 = vperm.slane %v583_v40, 2  ;;  %v107_v61 = vperm.slane %v380_v1, 1 }
  0x8a   :  { %335 = vmatpush.msra.mxu3 %v208_v45 }
  0x8c   :  { %v162_v48 = vpop.permute.xlu0 %161  ;;  %v164_v49 = vpop.permute.xlu1 %163 }
  0x8d   :  { %v166_v50 = vsel %vm165_vm3, %v162_v48, %v164_v49  ;;  %v167_v63 = vsel %vm165_vm3, %v160_v53, %v162_v48  ;;  %v125_v20 = vpop.permute.xlu2 %124  ;;  %v132_v48 = vperm.slane %v558_v15, 0 }
  0x8e   :  { %v181_v51 = vmul.f32 %v173_v46, %v166_v50  ;;  %v180_v21 = vmul.f32 %v172_v59, %v167_v63  ;;  %v21_v46 = vld [vmem:[%s646_s2] sm:$0xf] }
  0x8f   :  { %v56_v50 = vperm.slane %v21_v46, 2  ;;  %v261_v59 = vld [vmem:[%s647_s1] sm:$0xff] }
  0x90   :  { %316 = vmatpush.msra.mxu2 %v181_v51 }
  0x92   :  { %317 = vmatpush.msra.mxu2 %v155_v52 }
  0x94   :  { %v212_v0 = vpop.permute.xlu0 %211  ;;  %v158_v4 = vpop.permute.xlu1 %157 }
  0x95   :  { %v219_v8 = vsel %vm217_vm1, %v212_v0, %v499_v14  ;;  %v220_v9 = vsel %vm217_vm1, %v210_v35, %v212_v0  ;;  %v169_v10 = vsel %vm165_vm3, %v164_v49, %v158_v4  ;;  %v168_v17 = vsel %vm165_vm3, %v158_v4, %v160_v53 }
  0x96   :  { %v231_v11 = vmul.f32 %v223_v54, %v220_v9  ;;  %v232_v12 = vmul.f32 %v224_v55, %v219_v8  ;;  %v182_v13 = vmul.f32 %v174_v56, %v169_v10  ;;  %v156_v14 = vmul.f32 %v148_v60, %v453_v2 }
  0x97   :  { %v179_v23 = vmul.f32 %v171_v6, %v168_v17  ;;  %v154_v2 = vmul.f32 %v146_v16, %v461_v3  ;;  %v99_v3 = vpop.permute.xlu2 %98  ;;  %v133_v49 = vperm.slane %v558_v15, 1  ;;  %v106_v60 = vperm.slane %v380_v1, 0 }
  0x98   :  { %274 = vmatpush.msra.mxu0 %v231_v11  ;;  %294 = vmatpush.msra.mxu1 %v232_v12  ;;  %v57_v10 = vperm.slane %v21_v46, 3  ;;  %v80_v16 = vperm.slane %v583_v40, 0  ;;  %v81_v17 = vperm.slane %v583_v40, 1 }
  0x99   :  { %336 = vmatpush.msra.mxu3 %v182_v13 }
  0x9a   :  { %275 = vmatpush.msra.mxu0 %v205_v18  ;;  %295 = vmatpush.msra.mxu1 %v206_v19  ;;  %v54_v19 = vperm.slane %v21_v46, 0 }
  0x9b   :  { %337 = vmatpush.msra.mxu3 %v156_v14 }
  0x9c   :  { %v121_v26 = vpop.permute.xlu0 %120  ;;  %v123_v27 = vpop.permute.xlu1 %122  ;;  %276 = vmatpush.msra.mxu0 %v179_v23  ;;  %296 = vmatpush.msra.mxu1 %v180_v21 }
  0x9d   :  { %v128_v28 = vsel %vm126_vm4, %v121_v26, %v123_v27  ;;  %v127_v29 = vsel %vm126_vm4, %v123_v27, %v125_v20 }
  0x9e   :  { %v142_v30 = vmul.f32 %v134_v22, %v128_v28  ;;  %v143_v31 = vmul.f32 %v135_v24, %v127_v29  ;;  %277 = vmatpush.msra.mxu0 %v153_v25  ;;  %297 = vmatpush.msra.mxu1 %v154_v2 }
  0x9f   :  { %v43_v47 = vpop.permute.xlu2 %42 }
  0xa0   :  { %318 = vmatpush.msra.mxu2 %v142_v30  ;;  %338 = vmatpush.msra.mxu3 %v143_v31 }
  0xa4   :  { %v95_v34 = vpop.permute.xlu0 %94  ;;  %v97_v35 = vpop.permute.xlu1 %96 }
  0xa5   :  { %v102_v36 = vsel %vm100_vm5, %v95_v34, %v97_v35  ;;  %v101_v37 = vsel %vm100_vm5, %v97_v35, %v99_v3 }
  0xa6   :  { %v116_v38 = vmul.f32 %v108_v32, %v102_v36  ;;  %v117_v39 = vmul.f32 %v109_v33, %v101_v37 }
  0xa7   :  { %v45_v63 = vpop.permute.xlu2 %44 }
  0xa8   :  { %319 = vmatpush.msra.mxu2 %v116_v38  ;;  %339 = vmatpush.msra.mxu3 %v117_v39  ;;  %v49_v5 = vsel %vm48_vm7, %v43_v47, %v45_v63 }
  0xa9   :  { %v65_v15 = vmul.f32 %v57_v10, %v49_v5 }
  0xac   :  { %v69_v42 = vpop.permute.xlu0 %68  ;;  %v71_v43 = vpop.permute.xlu1 %70 }
  0xad   :  { %v76_v44 = vsel %vm74_vm6, %v69_v42, %v71_v43 }
  0xae   :  { %v90_v45 = vmul.f32 %v82_v41, %v76_v44 }
  0xb0   :  { %320 = vmatpush.msra.mxu2 %v90_v45 }
  0xb4   :  { %v119_v51 = vpop.permute.xlu0 %118  ;;  %v41_v52 = vpop.permute.xlu1 %40 }
  0xb5   :  { %v129_v53 = vsel %vm126_vm4, %v119_v51, %v121_v26  ;;  %v130_v54 = vsel %vm126_vm4, %v125_v20, %v119_v51  ;;  %v50_v55 = vsel %vm48_vm7, %v41_v52, %v43_v47  ;;  %v55_v20 = vperm.slane %v21_v46, 1 }
  0xb6   :  { %v140_v56 = vmul.f32 %v132_v48, %v130_v54  ;;  %v141_v57 = vmul.f32 %v133_v49, %v129_v53  ;;  %v64_v58 = vmul.f32 %v56_v50, %v50_v55 }
  0xb8   :  { %278 = vmatpush.msra.mxu0 %v140_v56  ;;  %298 = vmatpush.msra.mxu1 %v141_v57 }
  0xb9   :  { %321 = vmatpush.msra.mxu2 %v64_v58 }
  0xba   :  { %389 = vmatmul.msk.f32.vlgmr.msra.gmra.mxu2 %vm262_vm8, %v261_v59 }
  0xbc   :  { %v73_v0 = vpop.permute.xlu0 %72  ;;  %v93_v4 = vpop.permute.xlu1 %92 }
  0xbd   :  { %v75_v6 = vsel %vm74_vm6, %v71_v43, %v73_v0  ;;  %v103_v8 = vsel %vm100_vm5, %v93_v4, %v95_v34  ;;  %v104_v9 = vsel %vm100_vm5, %v99_v3, %v93_v4 }
  0xbe   :  { %v114_v11 = vmul.f32 %v106_v60, %v104_v9  ;;  %v115_v12 = vmul.f32 %v107_v61, %v103_v8  ;;  %v91_v13 = vmul.f32 %v83_v62, %v75_v6 }
  0xc0   :  { %279 = vmatpush.msra.mxu0 %v114_v11  ;;  %299 = vmatpush.msra.mxu1 %v115_v12 }
  0xc1   :  { %340 = vmatpush.msra.mxu3 %v91_v13 }
  0xc3   :  { %341 = vmatpush.msra.mxu3 %v65_v15 }
  0xc4   :  { %v67_v14 = vpop.permute.xlu0 %66  ;;  %v39_v18 = vpop.permute.xlu1 %38  ;;  %390 = vmatmul.msk.f32.vlgmr.msra.gmra.mxu3 %vm262_vm8, %v261_v59 }
  0xc5   :  { %v77_v21 = vsel %vm74_vm6, %v67_v14, %v69_v42  ;;  %v78_v22 = vsel %vm74_vm6, %v73_v0, %v67_v14  ;;  %v51_v23 = vsel %vm48_vm7, %v39_v18, %v41_v52  ;;  %v52_v24 = vsel %vm48_vm7, %v45_v63, %v39_v18 }
  0xc6   :  { %v88_v25 = vmul.f32 %v80_v16, %v78_v22  ;;  %v89_v2 = vmul.f32 %v81_v17, %v77_v21  ;;  %v62_v26 = vmul.f32 %v54_v19, %v52_v24  ;;  %v63_v27 = vmul.f32 %v55_v20, %v51_v23 }
  0xc8   :  { %280 = vmatpush.msra.mxu0 %v88_v25  ;;  %300 = vmatpush.msra.mxu1 %v89_v2 }
  0xca   :  { %281 = vmatpush.msra.mxu0 %v62_v26  ;;  %301 = vmatpush.msra.mxu1 %v63_v27 }
  0xcb   :  { %387 = vmatmul.msk.f32.vlgmr.msra.gmra.mxu0 %vm262_vm8, %v261_v59  ;;  %388 = vmatmul.msk.f32.vlgmr.msra.gmra.mxu1 %vm262_vm8, %v261_v59 }
 0x13d   :  { %v323_v28 = vpop.f32.mrf.mxu2 }
 0x13e   :  { %348 = vst [vmem:[%s648_s3 + $0x10] sm:$0xff] %v323_v28  ;;  %v359_v32 = vmul.f32 %v323_v28, %v323_v28 }
 0x147   :  { %v343_v29 = vpop.f32.mrf.mxu3 }
 0x148   :  { %v283_v7 = vpop.f32.mrf.mxu0  ;;  %v303_v30 = vpop.f32.mrf.mxu1  ;;  %349 = vst [vmem:[%s648_s3 + $0x18] sm:$0xff] %v343_v29  ;;  %v360_v35 = vmul.f32 %v343_v29, %v343_v29 }
 0x149   :  { %346 = vst [vmem:[%s648_s3] sm:$0xff] %v283_v7  ;;  %v357_v31 = vmul.f32 %v283_v7, %v283_v7  ;;  %v350_v1 = vadd.f32 %v303_v30, %v283_v7  ;;  %v358_v3 = vmul.f32 %v303_v30, %v303_v30 }
 0x14a   :  { %347 = vst [vmem:[%s648_s3 + $0x8] sm:$0xff] %v303_v30 }
 0x14b   :  { %v361_v33 = vadd.f32 %v358_v3, %v357_v31  ;;  %v351_v34 = vadd.f32 %v350_v1, %v323_v28 }
 0x14d   :  { %v352_v36 = vadd.f32 %v351_v34, %v343_v29  ;;  %v362_v37 = vadd.f32 %v361_v33, %v359_v32 }
 0x14f   :  { %353 = vadd.xlane.f32.xlu2 %v352_v36  ;;  %v363_v38 = vadd.f32 %v362_v37, %v360_v35 }
 0x151   :  { %364 = vadd.xlane.f32.xlu0 %v363_v38 }
 0x1c2   :  { %v354_v39 = vpop.xlane.xlu2 %353 }
 0x1c3   :  { %356 = vst.msk [vmem:[%s649_s4] sm:$0xff] %vm355_vm9, %v354_v39 }
 0x1c4   :  { %v365_v40 = vpop.xlane.xlu0 %364 }
 0x1c5   :  { %366 = vst.msk [vmem:[%s650_s5] sm:$0xff] %vm355_vm9, %v365_v40 }

// kernel: double_conv_forward.6
= control target key start
LH: loop header
LB: loop body
LE: loop exit
PB: predicated region body
PF: predicated region fallthrough
CT: control target
= control target key end

     0   :  { %v504_v0 = vmov 0   ;;  %s507_s7 = smov 113   ;;  %s508_s10 = smov 127   ;;  %v76_v24 = vlaneseq  ;;  %vm319_vm8 = vcmask 588800   ;;  %s855_s1 = inlined_call_operand.vmem [shape: f32[8,1], index: 1, kind: input, shape index: {}]   ;;  %s856_s2 = inlined_call_operand.vmem [shape: f32[8,1], index: 2, kind: input, shape index: {}]   ;;  %s857_s0 = inlined_call_operand.vmem [shape: f32[8,512], index: 0, kind: input, shape index: {}]   ;;  %s858_s4 = inlined_call_operand.vmem [shape: f32[32,1], index: 4, kind: input, shape index: {}]   ;;  %s859_s5 = inlined_call_operand.vmem [shape: f32[9,1,512], index: 5, kind: input, shape index: {}]   ;;  %s860_s3 = inlined_call_operand.vmem [shape: f32[32,72], index: 3, kind: input, shape index: {}]   ;;  %s861_s6 = inlined_call_operand.vmem [shape: f32[32,512], index: 6, kind: output, shape index: {}]  }
   0x1   :  { %501 = vset.pattern.permute.xlu0 %v504_v0  ;;  %v27_v1 = vld [vmem:[%s855_s1] sm:$0xff]  ;;  %502 = vset.pattern.permute.xlu1 %v504_v0  ;;  %v25_v5 = vld [vmem:[%s857_s0 + $0x10] sm:$0xff]  ;;  %v26_v6 = vld [vmem:[%s857_s0 + $0x18] sm:$0xff]  ;;  %s505_s1 = smov 111   ;;  %s509_s11 = smov 1  }
   0x2   :  { %30 = vperm.xlu0 %501, %v27_v1   ;;  %503 = vset.pattern.permute.xlu2 %v504_v0  ;;  %v37_v2 = vld [vmem:[%s856_s2] sm:$0xff]  ;;  %s506_s2 = smov 112   ;;  %v24_v17 = vld [vmem:[%s857_s0 + $0x8] sm:$0xff]  ;;  %s511_s12 = smov 16   ;;  %v297_v21 = vld [vmem:[%s858_s4 + $0x10] sm:$0xff]  ;;  %v611_v26 = vand.u32 127, %v76_v24 }
   0x3   :  { %v23_v4 = vld [vmem:[%s857_s0] sm:$0xff]  ;;  %s510_s0 = smov 15   ;;  %s512_s13 = smov 17   ;;  %v474_v46 = vld [vmem:[%s859_s5 + $0x1c] sm:$0xf] }
   0x4   :  { %v475_v27 = vld [vmem:[%s859_s5 + $0x20] sm:$0xf]  ;;  %vm273_vm0 = vcmp.lt.s32.totalorder %v611_v26, 111  ;;  %vm247_vm1 = vcmp.lt.s32.totalorder %v611_v26, 112  ;;  %v255_v47 = vperm.slane %v474_v46, 2  ;;  %v256_v48 = vperm.slane %v474_v46, 3 }
   0x5   :  { %v282_v28 = vperm.slane %v475_v27, 3  ;;  %v279_v34 = vperm.slane %v475_v27, 0  ;;  %v280_v35 = vperm.slane %v475_v27, 1  ;;  %v281_v36 = vperm.slane %v475_v27, 2  ;;  %v642_v55 = vld [vmem:[%s859_s5 + $0x18] sm:$0xf] }
   0x6   :  { %v253_v56 = vperm.slane %v474_v46, 0  ;;  %v254_v57 = vperm.slane %v474_v46, 1  ;;  %vm221_vm2 = vcmp.lt.s32.totalorder %v611_v26, 113  ;;  %v229_v58 = vperm.slane %v642_v55, 2 }
   0x7   :  { %v230_v59 = vperm.slane %v642_v55, 3  ;;  %vm195_vm3 = vcmp.lt.s32.totalorder %v611_v26, 127  ;;  %vm156_vm4 = vcmp.lt.s32.totalorder %v611_v26, 1  ;;  %vm130_vm5 = vcmp.lt.s32.totalorder %v611_v26, 15 }
   0x8   :  { %vm104_vm6 = vcmp.lt.s32.totalorder %v611_v26, 16  ;;  %vm78_vm7 = vcmp.lt.s32.totalorder %v611_v26, 17  ;;  %v293_v26 = vld [vmem:[%s860_s3 + $0x10] sm:$0xff] }
   0xa   :  { %40 = vperm.xlu0 %501, %v37_v2  }
  0x74   :  { %v31_v3 = vpop.permute.xlu0 %30 }
  0x75   :  { %v33_v7 = vmul.f32 %v31_v3, %v23_v4  ;;  %v35_v8 = vmul.f32 %v31_v3, %v25_v5  ;;  %v36_v9 = vmul.f32 %v31_v3, %v26_v6  ;;  %v34_v18 = vmul.f32 %v31_v3, %v24_v17 }
  0x7c   :  { %v41_v10 = vpop.permute.xlu0 %40 }
  0x7d   :  { %v43_v11 = vadd.f32 %v41_v10, %v33_v7  ;;  %v45_v12 = vadd.f32 %v41_v10, %v35_v8  ;;  %v46_v13 = vadd.f32 %v41_v10, %v36_v9  ;;  %v44_v19 = vadd.f32 %v41_v10, %v34_v18  ;;  %v472_v7 = vld [vmem:[%s859_s5 + $0x14] sm:$0xf]  ;;  %v471_v8 = vld [vmem:[%s859_s5 + $0x10] sm:$0xf] }
  0x7e   :  { %v203_v9 = vperm.slane %v472_v7, 2  ;;  %v204_v10 = vperm.slane %v472_v7, 3  ;;  %v177_v17 = vperm.slane %v471_v8, 2  ;;  %v178_v18 = vperm.slane %v471_v8, 3 }
  0x7f   :  { %v563_v14 = vmax.f32 %v43_v11, 0.0  ;;  %v565_v15 = vmax.f32 %v45_v12, 0.0  ;;  %v567_v16 = vmax.f32 %v46_v13, 0.0  ;;  %v581_v20 = vmax.f32 %v44_v19, 0.0  ;;  %v669_v12 = vld [vmem:[%s859_s5 + $0xc] sm:$0xf] }
  0x80   :  { %v165_v24 = vperm.slane %v669_v12, 3  ;;  %v201_v46 = vperm.slane %v472_v7, 0 }
  0x81   :  { %271 = vrot.lane.b32.xlu2 %v567_v16, %s505_s1  ;;  %243 = vrot.lane.b32.xlu0 %v565_v15, %s506_s2 }
  0x82   :  { %265 = vrot.lane.b32.xlu1 %v563_v14, %s505_s1 }
  0x89   :  { %217 = vrot.lane.b32.xlu0 %v565_v15, %s507_s7  ;;  %239 = vrot.lane.b32.xlu2 %v563_v14, %s506_s2 }
  0x8a   :  { %269 = vrot.lane.b32.xlu1 %v565_v15, %s505_s1 }
  0x91   :  { %191 = vrot.lane.b32.xlu0 %v565_v15, %s508_s10  ;;  %213 = vrot.lane.b32.xlu2 %v563_v14, %s507_s7 }
  0x92   :  { %245 = vrot.lane.b32.xlu1 %v567_v16, %s506_s2 }
  0x99   :  { %241 = vrot.lane.b32.xlu0 %v581_v20, %s506_s2  ;;  %187 = vrot.lane.b32.xlu2 %v563_v14, %s508_s10 }
  0x9a   :  { %219 = vrot.lane.b32.xlu1 %v567_v16, %s507_s7 }
  0xa1   :  { %154 = vrot.lane.b32.xlu0 %v567_v16, %s509_s11  ;;  %267 = vrot.lane.b32.xlu2 %v581_v20, %s505_s1 }
  0xa2   :  { %193 = vrot.lane.b32.xlu1 %v567_v16, %s508_s10 }
  0xa9   :  { %126 = vrot.lane.b32.xlu0 %v565_v15, %s510_s0  ;;  %152 = vrot.lane.b32.xlu2 %v565_v15, %s509_s11 }
  0xaa   :  { %150 = vrot.lane.b32.xlu1 %v581_v20, %s509_s11 }
  0xb1   :  { %98 = vrot.lane.b32.xlu0 %v581_v20, %s511_s12  ;;  %124 = vrot.lane.b32.xlu2 %v581_v20, %s510_s0 }
  0xb2   :  { %215 = vrot.lane.b32.xlu1 %v581_v20, %s507_s7 }
  0xb9   :  { %70 = vrot.lane.b32.xlu0 %v581_v20, %s512_s13  ;;  %189 = vrot.lane.b32.xlu2 %v581_v20, %s508_s10 }
  0xba   :  { %128 = vrot.lane.b32.xlu1 %v567_v16, %s510_s0 }
  0xc1   :  { %148 = vrot.lane.b32.xlu0 %v563_v14, %s509_s11  ;;  %102 = vrot.lane.b32.xlu2 %v567_v16, %s511_s12 }
  0xc2   :  { %100 = vrot.lane.b32.xlu1 %v565_v15, %s511_s12 }
  0xc9   :  { %68 = vrot.lane.b32.xlu0 %v563_v14, %s512_s13  ;;  %74 = vrot.lane.b32.xlu2 %v567_v16, %s512_s13 }
  0xca   :  { %72 = vrot.lane.b32.xlu1 %v565_v15, %s512_s13 }
  0xd1   :  { %311 = vperm.xlu0 %501, %v297_v21   ;;  %96 = vrot.lane.b32.xlu2 %v563_v14, %s511_s12 }
  0xd2   :  { %122 = vrot.lane.b32.xlu1 %v563_v14, %s510_s0 }
  0xdb   :  { %v272_v22 = vpop.permute.xlu2 %271 }
  0xe3   :  { %v240_v23 = vpop.permute.xlu2 %239 }
  0xeb   :  { %v609_v25 = vpop.permute.xlu2 %213 }
  0xf3   :  { %v244_v29 = vpop.permute.xlu0 %243  ;;  %v617_v30 = vpop.permute.xlu2 %187 }
  0xf4   :  { %v266_v31 = vpop.permute.xlu1 %265 }
  0xf5   :  { %v277_v32 = vsel %vm273_vm0, %v272_v22, %v266_v31 }
  0xf6   :  { %v290_v33 = vmul.f32 %v282_v28, %v277_v32  ;;  %v689_v32 = vld [vmem:[%s859_s5 + $0x8] sm:$0xf] }
  0xf8   :  { %426 = vmatpush.msra.mxu3 %v290_v33 }
  0xfb   :  { %v621_v37 = vpop.permute.xlu0 %217  ;;  %v268_v38 = vpop.permute.xlu2 %267 }
  0xfc   :  { %v270_v39 = vpop.permute.xlu1 %269  ;;  %v276_v40 = vsel %vm273_vm0, %v266_v31, %v268_v38  ;;  %v186_v31 = vmul.f32 %v178_v18, %v567_v16 }
  0xfd   :  { %v287_v41 = vmul.f32 %v279_v34, %v276_v40  ;;  %v275_v42 = vsel %vm273_vm0, %v268_v38, %v270_v39  ;;  %v274_v43 = vsel %vm273_vm0, %v270_v39, %v272_v22  ;;  %v164_v34 = vperm.slane %v669_v12, 2 }
  0xfe   :  { %v288_v44 = vmul.f32 %v280_v35, %v275_v42  ;;  %v289_v45 = vmul.f32 %v281_v36, %v274_v43  ;;  %v138_v38 = vperm.slane %v689_v32, 2  ;;  %v227_v42 = vperm.slane %v642_v55, 0 }
  0xff   :  { %339 = vmatpush.msra.mxu0 %v287_v41  ;;  %v228_v43 = vperm.slane %v642_v55, 1  ;;  %v176_v55 = vperm.slane %v471_v8, 1 }
 0x100   :  { %368 = vmatpush.msra.mxu1 %v288_v44  ;;  %397 = vmatpush.msra.mxu2 %v289_v45 }
 0x103   :  { %v633_v49 = vpop.permute.xlu0 %191  ;;  %v153_v4 = vpop.permute.xlu2 %152 }
 0x104   :  { %v246_v50 = vpop.permute.xlu1 %245 }
 0x105   :  { %v248_v51 = vsel %vm247_vm1, %v244_v29, %v246_v50  ;;  %v251_v52 = vsel %vm247_vm1, %v246_v50, %v240_v23 }
 0x106   :  { %v263_v53 = vmul.f32 %v255_v47, %v248_v51  ;;  %v264_v54 = vmul.f32 %v256_v48, %v251_v52  ;;  %v202_v47 = vperm.slane %v472_v7, 1 }
 0x108   :  { %398 = vmatpush.msra.mxu2 %v263_v53  ;;  %427 = vmatpush.msra.mxu3 %v264_v54 }
 0x10b   :  { %v242_v60 = vpop.permute.xlu0 %241  ;;  %v682_v28 = vpop.permute.xlu2 %124 }
 0x10c   :  { %v249_v61 = vsel %vm247_vm1, %v242_v60, %v244_v29  ;;  %v250_v62 = vsel %vm247_vm1, %v240_v23, %v242_v60  ;;  %v220_v63 = vpop.permute.xlu1 %219  ;;  %v185_v29 = vmul.f32 %v177_v17, %v565_v15 }
 0x10d   :  { %v222_v0 = vsel %vm221_vm2, %v621_v37, %v220_v63  ;;  %v225_v1 = vsel %vm221_vm2, %v220_v63, %v609_v25  ;;  %v261_v2 = vmul.f32 %v253_v56, %v250_v62  ;;  %v262_v3 = vmul.f32 %v254_v57, %v249_v61 }
 0x10e   :  { %v237_v5 = vmul.f32 %v229_v58, %v222_v0  ;;  %v238_v6 = vmul.f32 %v230_v59, %v225_v1  ;;  %v175_v56 = vperm.slane %v471_v8, 0  ;;  %v162_v63 = vperm.slane %v669_v12, 0 }
 0x10f   :  { %340 = vmatpush.msra.mxu0 %v261_v2  ;;  %369 = vmatpush.msra.mxu1 %v262_v3  ;;  %v163_v0 = vperm.slane %v669_v12, 1 }
 0x110   :  { %399 = vmatpush.msra.mxu2 %v237_v5  ;;  %428 = vmatpush.msra.mxu3 %v238_v6  ;;  %v183_v58 = vmul.f32 %v175_v56, %v563_v14  ;;  %v727_v14 = vld [vmem:[%s859_s5 + $0x4] sm:$0xf] }
 0x111   :  { %v113_v1 = vperm.slane %v727_v14, 3 }
 0x113   :  { %v664_v11 = vpop.permute.xlu0 %154  ;;  %v190_v41 = vpop.permute.xlu2 %189 }
 0x114   :  { %v194_v13 = vpop.permute.xlu1 %193  ;;  %v157_v27 = vsel %vm156_vm4, %v153_v4, %v664_v11  ;;  %v197_v48 = vsel %vm195_vm3, %v190_v41, %v633_v49  ;;  %v198_v50 = vsel %vm195_vm3, %v617_v30, %v190_v41  ;;  %v298_v41 = vld [vmem:[%s858_s4 + $0x18] sm:$0xff] }
 0x115   :  { %v196_v19 = vsel %vm195_vm3, %v633_v49, %v194_v13  ;;  %v199_v21 = vsel %vm195_vm3, %v194_v13, %v617_v30  ;;  %v173_v33 = vmul.f32 %v165_v24, %v157_v27  ;;  %v209_v57 = vmul.f32 %v201_v46, %v198_v50 }
 0x116   :  { %v211_v22 = vmul.f32 %v203_v9, %v196_v19  ;;  %v212_v23 = vmul.f32 %v204_v10, %v199_v21  ;;  %v210_v49 = vmul.f32 %v202_v47, %v197_v48  ;;  %v184_v30 = vmul.f32 %v176_v55, %v581_v20  ;;  %v295_v10 = vld [vmem:[%s858_s4] sm:$0xff] }
 0x117   :  { %v112_v20 = vperm.slane %v727_v14, 2  ;;  %301 = vperm.xlu1 %502, %v295_v10  }
 0x118   :  { %400 = vmatpush.msra.mxu2 %v211_v22  ;;  %429 = vmatpush.msra.mxu3 %v212_v23 }
 0x11a   :  { %401 = vmatpush.msra.mxu2 %v185_v29  ;;  %430 = vmatpush.msra.mxu3 %v186_v31  ;;  %v291_v29 = vld [vmem:[%s860_s3] sm:$0xff] }
 0x11b   :  { %v127_v35 = vpop.permute.xlu0 %126  ;;  %v103_v61 = vpop.permute.xlu2 %102 }
 0x11c   :  { %431 = vmatpush.msra.mxu3 %v173_v33  ;;  %v151_v36 = vpop.permute.xlu1 %150  ;;  %v132_v15 = vsel %vm130_vm5, %v682_v28, %v127_v35  ;;  %v136_v33 = vperm.slane %v689_v32, 0 }
 0x11d   :  { %v158_v16 = vsel %vm156_vm4, %v151_v36, %v153_v4  ;;  %v146_v40 = vmul.f32 %v138_v38, %v132_v15  ;;  %v110_v38 = vperm.slane %v727_v14, 0  ;;  %v111_v15 = vperm.slane %v727_v14, 1 }
 0x11e   :  { %v172_v39 = vmul.f32 %v164_v34, %v158_v16  ;;  %v137_v34 = vperm.slane %v689_v32, 1 }
 0x11f   :  { %316 = vperm.xlu1 %502, %v298_v41  }
 0x120   :  { %402 = vmatpush.msra.mxu2 %v172_v39 }
 0x122   :  { %403 = vmatpush.msra.mxu2 %v146_v40 }
 0x123   :  { %v701_v44 = vpop.permute.xlu0 %98  ;;  %v75_v17 = vpop.permute.xlu2 %74 }
 0x124   :  { %v216_v45 = vpop.permute.xlu1 %215 }
 0x125   :  { %v223_v51 = vsel %vm221_vm2, %v216_v45, %v621_v37  ;;  %v224_v52 = vsel %vm221_vm2, %v609_v25, %v216_v45  ;;  %v139_v37 = vperm.slane %v689_v32, 3  ;;  %v292_v45 = vld [vmem:[%s860_s3 + $0x8] sm:$0xff] }
 0x126   :  { %v235_v53 = vmul.f32 %v227_v42, %v224_v52  ;;  %v236_v54 = vmul.f32 %v228_v43, %v223_v51  ;;  %v296_v42 = vld [vmem:[%s858_s4 + $0x8] sm:$0xff] }
 0x127   :  { %306 = vperm.xlu2 %503, %v296_v42  }
 0x128   :  { %341 = vmatpush.msra.mxu0 %v235_v53  ;;  %370 = vmatpush.msra.mxu1 %v236_v54  ;;  %v294_v54 = vld [vmem:[%s860_s3 + $0x18] sm:$0xff] }
 0x12a   :  { %342 = vmatpush.msra.mxu0 %v209_v57  ;;  %371 = vmatpush.msra.mxu1 %v210_v49 }
 0x12b   :  { %v718_v59 = vpop.permute.xlu0 %70  ;;  %v97_v31 = vpop.permute.xlu2 %96 }
 0x12c   :  { %372 = vmatpush.msra.mxu1 %v184_v30  ;;  %v129_v25 = vpop.permute.xlu1 %128  ;;  %343 = vmatpush.msra.mxu0 %v183_v58  ;;  %v107_v16 = vsel %vm104_vm6, %v97_v31, %v701_v44  ;;  %v108_v39 = vsel %vm104_vm6, %v103_v61, %v97_v31 }
 0x12d   :  { %v131_v60 = vsel %vm130_vm5, %v127_v35, %v129_v25  ;;  %v118_v50 = vmul.f32 %v110_v38, %v108_v39  ;;  %v119_v51 = vmul.f32 %v111_v15, %v107_v16 }
 0x12e   :  { %v147_v62 = vmul.f32 %v139_v37, %v131_v60 }
 0x130   :  { %432 = vmatpush.msra.mxu3 %v147_v62 }
 0x133   :  { %v149_v2 = vpop.permute.xlu0 %148 }
 0x134   :  { %v159_v3 = vsel %vm156_vm4, %v149_v2, %v151_v36  ;;  %v160_v4 = vsel %vm156_vm4, %v664_v11, %v149_v2  ;;  %v101_v5 = vpop.permute.xlu1 %100  ;;  %v51_v11 = vld [vmem:[%s859_s5] sm:$0xf] }
 0x135   :  { %v105_v6 = vsel %vm104_vm6, %v101_v5, %v103_v61  ;;  %v106_v7 = vsel %vm104_vm6, %v701_v44, %v101_v5  ;;  %v170_v8 = vmul.f32 %v162_v63, %v160_v4  ;;  %v171_v9 = vmul.f32 %v163_v0, %v159_v3 }
 0x136   :  { %v120_v12 = vmul.f32 %v112_v20, %v106_v7  ;;  %v121_v13 = vmul.f32 %v113_v1, %v105_v6  ;;  %v86_v18 = vperm.slane %v51_v11, 2  ;;  %v87_v19 = vperm.slane %v51_v11, 3 }
 0x137   :  { %344 = vmatpush.msra.mxu0 %v170_v8  ;;  %373 = vmatpush.msra.mxu1 %v171_v9  ;;  %v84_v46 = vperm.slane %v51_v11, 0  ;;  %v85_v47 = vperm.slane %v51_v11, 1 }
 0x138   :  { %404 = vmatpush.msra.mxu2 %v120_v12  ;;  %433 = vmatpush.msra.mxu3 %v121_v13 }
 0x13b   :  { %v69_v35 = vpop.permute.xlu0 %68 }
 0x13c   :  { %v73_v21 = vpop.permute.xlu1 %72  ;;  %v82_v48 = vsel %vm78_vm7, %v75_v17, %v69_v35 }
 0x13d   :  { %v79_v22 = vsel %vm78_vm7, %v73_v21, %v75_v17  ;;  %v80_v23 = vsel %vm78_vm7, %v718_v59, %v73_v21  ;;  %v92_v52 = vmul.f32 %v84_v46, %v82_v48 }
 0x13e   :  { %v94_v24 = vmul.f32 %v86_v18, %v80_v23  ;;  %v95_v27 = vmul.f32 %v87_v19, %v79_v22 }
 0x140   :  { %405 = vmatpush.msra.mxu2 %v94_v24  ;;  %434 = vmatpush.msra.mxu3 %v95_v27 }
 0x141   :  { %484 = vmatmul.msk.f32.vlgmr.msra.gmra.mxu2 %vm319_vm8, %v291_v29  ;;  %488 = vmatmul.msk.f32.vlgmr.msra.gmra.mxu3 %vm319_vm8, %v291_v29 }
 0x143   :  { %v312_v1 = vpop.permute.xlu0 %311 }
 0x144   :  { %v123_v36 = vpop.permute.xlu1 %122 }
 0x145   :  { %v133_v40 = vsel %vm130_vm5, %v123_v36, %v682_v28  ;;  %v134_v32 = vsel %vm130_vm5, %v129_v25, %v123_v36  ;;  %v81_v28 = vsel %vm78_vm7, %v69_v35, %v718_v59 }
 0x146   :  { %v144_v43 = vmul.f32 %v136_v33, %v134_v32  ;;  %v145_v44 = vmul.f32 %v137_v34, %v133_v40  ;;  %v93_v53 = vmul.f32 %v85_v47, %v81_v28 }
 0x148   :  { %345 = vmatpush.msra.mxu0 %v144_v43  ;;  %374 = vmatpush.msra.mxu1 %v145_v44 }
 0x149   :  { %485 = vmatmul.msk.f32.gmra.mxu2 %vm319_vm8, %v292_v45  ;;  %489 = vmatmul.msk.f32.gmra.mxu3 %vm319_vm8, %v292_v45 }
 0x14a   :  { %346 = vmatpush.msra.mxu0 %v118_v50  ;;  %375 = vmatpush.msra.mxu1 %v119_v51 }
 0x14c   :  { %347 = vmatpush.msra.mxu0 %v92_v52  ;;  %376 = vmatpush.msra.mxu1 %v93_v53 }
 0x14d   :  { %476 = vmatmul.msk.f32.vlgmr.msra.gmra.mxu0 %vm319_vm8, %v291_v29  ;;  %480 = vmatmul.msk.f32.vlgmr.msra.gmra.mxu1 %vm319_vm8, %v291_v29 }
 0x151   :  { %486 = vmatmul.msk.f32.gmra.mxu2 %vm319_vm8, %v293_v26  ;;  %490 = vmatmul.msk.f32.gmra.mxu3 %vm319_vm8, %v293_v26 }
 0x155   :  { %477 = vmatmul.msk.f32.gmra.mxu0 %vm319_vm8, %v292_v45  ;;  %481 = vmatmul.msk.f32.gmra.mxu1 %vm319_vm8, %v292_v45 }
 0x159   :  { %487 = vmatmul.msk.f32.gmra.mxu2 %vm319_vm8, %v294_v54  ;;  %491 = vmatmul.msk.f32.gmra.mxu3 %vm319_vm8, %v294_v54 }
 0x15d   :  { %478 = vmatmul.msk.f32.gmra.mxu0 %vm319_vm8, %v293_v26  ;;  %482 = vmatmul.msk.f32.gmra.mxu1 %vm319_vm8, %v293_v26 }
 0x165   :  { %479 = vmatmul.msk.f32.gmra.mxu0 %vm319_vm8, %v294_v54  ;;  %483 = vmatmul.msk.f32.gmra.mxu1 %vm319_vm8, %v294_v54 }
 0x181   :  { %v307_v58 = vpop.permute.xlu2 %306 }
 0x189   :  { %v302_v55 = vpop.permute.xlu1 %301 }
 0x191   :  { %v317_v12 = vpop.permute.xlu1 %316 }
 0x1c4   :  { %v407_v56 = vpop.f32.mrf.mxu2  ;;  %v436_v57 = vpop.f32.mrf.mxu3 }
 0x1c5   :  { %v408_v49 = vadd.f32 %v407_v56, %v302_v55  ;;  %v437_v30 = vadd.f32 %v436_v57, %v302_v55 }
 0x1c7   :  { %450 = vst [vmem:[%s861_s6 + $0x10] sm:$0xff] %v408_v49 }
 0x1c8   :  { %451 = vst [vmem:[%s861_s6 + $0x18] sm:$0xff] %v437_v30 }
 0x1ca   :  { %v378_v37 = vpop.f32.mrf.mxu1  ;;  %v349_v59 = vpop.f32.mrf.mxu0 }
 0x1cb   :  { %v379_v25 = vadd.f32 %v378_v37, %v302_v55  ;;  %v350_v60 = vadd.f32 %v349_v59, %v302_v55 }
 0x1cc   :  { %v410_v61 = vpop.f32.mrf.mxu2  ;;  %v439_v62 = vpop.f32.mrf.mxu3 }
 0x1cd   :  { %449 = vst [vmem:[%s861_s6 + $0x8] sm:$0xff] %v379_v25  ;;  %v411_v63 = vadd.f32 %v410_v61, %v307_v58  ;;  %v440_v0 = vadd.f32 %v439_v62, %v307_v58 }
 0x1ce   :  { %448 = vst [vmem:[%s861_s6] sm:$0xff] %v350_v60 }
 0x1cf   :  { %454 = vst [vmem:[%s861_s6 + $0x30] sm:$0xff] %v411_v63 }
 0x1d0   :  { %455 = vst [vmem:[%s861_s6 + $0x38] sm:$0xff] %v440_v0 }
 0x1d2   :  { %v352_v14 = vpop.f32.mrf.mxu0  ;;  %v381_v20 = vpop.f32.mrf.mxu1 }
 0x1d3   :  { %v353_v2 = vadd.f32 %v352_v14, %v307_v58  ;;  %v382_v3 = vadd.f32 %v381_v20, %v307_v58 }
 0x1d4   :  { %v413_v4 = vpop.f32.mrf.mxu2  ;;  %v442_v5 = vpop.f32.mrf.mxu3 }
 0x1d5   :  { %452 = vst [vmem:[%s861_s6 + $0x20] sm:$0xff] %v353_v2  ;;  %v414_v6 = vadd.f32 %v413_v4, %v312_v1  ;;  %v443_v7 = vadd.f32 %v442_v5, %v312_v1 }
 0x1d6   :  { %453 = vst [vmem:[%s861_s6 + $0x28] sm:$0xff] %v382_v3 }
 0x1d7   :  { %458 = vst [vmem:[%s861_s6 + $0x50] sm:$0xff] %v414_v6 }
 0x1d8   :  { %459 = vst [vmem:[%s861_s6 + $0x58] sm:$0xff] %v443_v7 }
 0x1da   :  { %v384_v8 = vpop.f32.mrf.mxu1  ;;  %v355_v9 = vpop.f32.mrf.mxu0 }
 0x1db   :  { %v385_v10 = vadd.f32 %v384_v8, %v312_v1  ;;  %v356_v13 = vadd.f32 %v355_v9, %v312_v1 }
 0x1dc   :  { %v416_v11 = vpop.f32.mrf.mxu2  ;;  %v445_v17 = vpop.f32.mrf.mxu3 }
 0x1dd   :  { %457 = vst [vmem:[%s861_s6 + $0x48] sm:$0xff] %v385_v10  ;;  %v417_v18 = vadd.f32 %v416_v11, %v317_v12  ;;  %v446_v19 = vadd.f32 %v445_v17, %v317_v12 }
 0x1de   :  { %456 = vst [vmem:[%s861_s6 + $0x40] sm:$0xff] %v356_v13 }
 0x1df   :  { %462 = vst [vmem:[%s861_s6 + $0x70] sm:$0xff] %v417_v18 }
 0x1e0   :  { %463 = vst [vmem:[%s861_s6 + $0x78] sm:$0xff] %v446_v19 }
 0x1e2   :  { %v358_v21 = vpop.f32.mrf.mxu0  ;;  %v387_v22 = vpop.f32.mrf.mxu1 }
 0x1e3   :  { %v359_v23 = vadd.f32 %v358_v21, %v317_v12  ;;  %v388_v24 = vadd.f32 %v387_v22, %v317_v12 }
 0x1e5   :  { %460 = vst [vmem:[%s861_s6 + $0x60] sm:$0xff] %v359_v23 }
 0x1e6   :  { %461 = vst [vmem:[%s861_s6 + $0x68] sm:$0xff] %v388_v24 }

// kernel: double_conv_forward.7
= control target key start
LH: loop header
LB: loop body
LE: loop exit
PB: predicated region body
PF: predicated region fallthrough
CT: control target
= control target key end

     0   :  { %s1340_s15 = smov 0   ;;  %s1342_s16 = smov 0   ;;  %s1888_s0 = inlined_call_operand.vmem [shape: f32[32,512], index: 0, kind: input, shape index: {}]   ;;  %s1889_s1 = inlined_call_operand.vmem [shape: f32[32,72], index: 1, kind: input, shape index: {}]   ;;  %s1890_s2 = inlined_call_operand.vmem [shape: f32[32,152], index: 2, kind: input, shape index: {}]   ;;  %s1891_s3 = inlined_call_operand.vmem [shape: f32[9,1,256], index: 3, kind: input, shape index: {}]   ;;  %s1892_s4 = inlined_call_operand.vmem [shape: f32[2,8,256], index: 4, kind: output, shape index: {}]  }
   0x1   :  { %s1344_s17 = smov 0  }
   0x2 LB: > { %s1356_s18 = sadd.s32 4294967295, %s1303_s17   ;;  %s1359_s19 = sadd.s32 1, %s1303_s17   ;;  %s1303_s17 = sphi %s1344_s17, %s1918_s17   ;;  %s1299_s16 = sphi %s1342_s16, %s1917_s16   ;;  %s1295_s15 = sphi %s1340_s15, %s1916_s15  }
   0x3   : > { %s18_s20 = ssub.s32 %s1303_s17, %s1359_s19  ;;  %s21_s21 = sadd.s32 1, %s1299_s16 }
   0x4   : > { %p19_p0 = scmp.eq.s32.totalorder %s18_s20, 0  ;;  %p28_p1 = scmp.ne.s32.totalorder %s1299_s16, %s1295_s15 }
   0x5   : > { %p29_p2 = scmp.eq.s32.totalorder %s1303_s17, 0  ;;  %p1131_p4 = scmp.ge.s32.totalorder %s1303_s17, 2 }
   0x6   : > { %s1368_s22 = scalar_select %p19_p0, %s1299_s16, %s21_s21  }
   0x7   : > { %p30_p3 = por %p29_p2, %p28_p1  ;;  %152 = sbr.rel (%p1131_p4) target bundleno = 24 (0x18), region = 28 }
   0xc   : > { %155 = sbr.rel (!%p30_p3) target bundleno = 24 (0x18), region = 32  ;;  %s157_s23 = sand.u32 (%p30_p3), 1, %s1299_s16  }
   0xd   : > { %s1178_s24 = sshll.u32 (%p30_p3), %s1303_s17, 4  ;;  %s1132_s25 = sshll.u32 (%p30_p3), %s157_s23, 6 }
   0xe   : > { %s162_s28 = scalar_lea.vmem (%p30_p3), %s1888_s0, %s1178_s24  ;;  %s159_s29 = scalar_lea.vmem (%p30_p3), [#allocation5], %s1132_s25 }
   0xf   : > { %v175_v0 = vld [vmem:[%s162_s28] sm:$0xff] (%p30_p3)  ;;  %v177_v1 = vld [vmem:[%s162_s28 + $0x8] sm:$0xff] (%p30_p3) }
  0x10   : > { %v179_v2 = vld [vmem:[%s162_s28 + $0x20] sm:$0xff] (%p30_p3)  ;;  %176 = vst [vmem:[%s159_s29] sm:$0xff] (%p30_p3), %v175_v0  ;;  %v181_v3 = vld [vmem:[%s162_s28 + $0x28] sm:$0xff] (%p30_p3) }
  0x11   : > { %178 = vst [vmem:[%s159_s29 + $0x8] sm:$0xff] %v177_v1  ;;  %v183_v4 = vld [vmem:[%s162_s28 + $0x40] sm:$0xff]  ;;  %v185_v5 = vld [vmem:[%s162_s28 + $0x48] sm:$0xff] }
  0x12   : > { %180 = vst [vmem:[%s159_s29 + $0x10] sm:$0xff] %v179_v2  ;;  %v187_v6 = vld [vmem:[%s162_s28 + $0x60] sm:$0xff]  ;;  %v189_v7 = vld [vmem:[%s162_s28 + $0x68] sm:$0xff] }
  0x13   : > { %182 = vst [vmem:[%s159_s29 + $0x18] sm:$0xff] %v181_v3 }
  0x14   : > { %184 = vst [vmem:[%s159_s29 + $0x20] sm:$0xff] %v183_v4 }
  0x15   : > { %186 = vst [vmem:[%s159_s29 + $0x28] sm:$0xff] %v185_v5 }
  0x16   : > { %188 = vst [vmem:[%s159_s29 + $0x30] sm:$0xff] %v187_v6 }
  0x17   : > { %190 = vst [vmem:[%s159_s29 + $0x38] sm:$0xff] %v189_v7 }
  0x18 PF: > { %p1135_p5 = scmp.ge.s32.totalorder %s1303_s17, 1  ;;  %p195_p6 = scmp.lt.s32.totalorder %s1303_s17, 3 }
  0x1a   : > { %p196_p7 = pnand %p1135_p5, %p195_p6 }
  0x1b   : > { %s202_s30 = sand.u32 (!%p196_p7), 1, %s1295_s15   ;;  %p228_p8 = scmp.lt.s32.totalorder (!%p196_p7), %s1356_s18, 1 }
  0x1c   : > { %199 = sbr.rel (%p196_p7) target bundleno = 780 (0x30c), region = 55  ;;  %s1136_s5 = sshll.u32 (!%p196_p7), %s202_s30, 6 }
  0x1d   : > { %s1386_s11 = scalar_lea.vmem (!%p196_p7), [#allocation5], %s1136_s5  ;;  %p1139_p9 = scmp.ne.s32.totalorder (!%p196_p7), %s1356_s18, 0 }
  0x21   : > { %s229_s6 = scalar_select %p228_p8, %s1356_s18, 1 }
  0x22   : > { %236 = sbr.rel (%p1139_p9) target bundleno = 82 (0x52), region = 63 }
  0x23   : > { %s1179_s7 = sshll.u32 %s229_s6, 4 }
  0x24   : > { %s1384_s10 = scalar_lea.vmem %s1892_s4, %s1179_s7 }
  0x27   : > { %v1305_v8 = vmov 0.0   ;;  %v1306_v9 = vmov 1.0  }
  0x28   : > { %237 = vst [vmem:[#allocation2] sm:$0xff] %v1305_v8 }
  0x29   : > { %238 = vst [vmem:[#allocation2 + $0x8] sm:$0xff] %v1305_v8 }
  0x2a   : > { %239 = vst [vmem:[#allocation3 + $0x8] sm:$0xff] %v1305_v8 }
  0x2b   : > { %240 = vst [vmem:[#allocation3] sm:$0xff] %v1305_v8 }
  0x2c   : > { %241 = vst [vmem:[#allocation4 + $0xc8] sm:$0xff] %v1305_v8 }
  0x2d   : > { %242 = vst [vmem:[#allocation4 + $0x8] sm:$0xff] %v1305_v8 }
  0x2e   : > { %243 = vst [vmem:[#allocation4 + $0x40] sm:$0xff] %v1305_v8 }
  0x2f   : > { %244 = vst [vmem:[#allocation4 + $0x118] sm:$0xff] %v1305_v8 }
  0x30   : > { %245 = vst [vmem:[#allocation4 + $0x30] sm:$0xff] %v1305_v8 }
  0x31   : > { %246 = vst [vmem:[#allocation4 + $0xf0] sm:$0xff] %v1305_v8 }
  0x32   : > { %247 = vst [vmem:[#allocation4 + $0xf8] sm:$0xff] %v1305_v8 }
  0x33   : > { %248 = vst [vmem:[#allocation4 + $0x78] sm:$0xff] %v1305_v8 }
  0x34   : > { %249 = vst [vmem:[#allocation4 + $0x100] sm:$0xff] %v1305_v8 }
  0x35   : > { %250 = vst [vmem:[#allocation4 + $0xe0] sm:$0xff] %v1305_v8 }
  0x36   : > { %251 = vst [vmem:[#allocation4 + $0x20] sm:$0xff] %v1305_v8 }
  0x37   : > { %252 = vst [vmem:[#allocation4 + $0xb8] sm:$0xff] %v1305_v8 }
  0x38   : > { %253 = vst [vmem:[#allocation4 + $0x60] sm:$0xff] %v1305_v8 }
  0x39   : > { %254 = vst [vmem:[#allocation4 + $0x110] sm:$0xff] %v1305_v8 }
  0x3a   : > { %255 = vst [vmem:[#allocation4 + $0x18] sm:$0xff] %v1305_v8 }
  0x3b   : > { %256 = vst [vmem:[#allocation4 + $0x10] sm:$0xff] %v1305_v8 }
  0x3c   : > { %257 = vst [vmem:[#allocation4 + $0xc0] sm:$0xff] %v1305_v8 }
  0x3d   : > { %258 = vst [vmem:[#allocation4 + $0x88] sm:$0xff] %v1305_v8 }
  0x3e   : > { %259 = vst [vmem:[#allocation4 + $0x98] sm:$0xff] %v1305_v8 }
  0x3f   : > { %260 = vst [vmem:[#allocation4 + $0x80] sm:$0xff] %v1305_v8 }
  0x40   : > { %261 = vst [vmem:[#allocation4 + $0xd0] sm:$0xff] %v1305_v8 }
  0x41   : > { %262 = vst [vmem:[#allocation4 + $0x38] sm:$0xff] %v1305_v8 }
  0x42   : > { %263 = vst [vmem:[#allocation4 + $0xb0] sm:$0xff] %v1305_v8 }
  0x43   : > { %264 = vst [vmem:[#allocation4 + $0x108] sm:$0xff] %v1305_v8 }
  0x44   : > { %265 = vst [vmem:[#allocation4] sm:$0xff] %v1305_v8 }
  0x45   : > { %266 = vst [vmem:[#allocation4 + $0x90] sm:$0xff] %v1305_v8 }
  0x46   : > { %267 = vst [vmem:[#allocation4 + $0x58] sm:$0xff] %v1305_v8 }
  0x47   : > { %268 = vst [vmem:[#allocation4 + $0x120] sm:$0xff] %v1305_v8 }
  0x48   : > { %269 = vst [vmem:[#allocation4 + $0x128] sm:$0xff] %v1305_v8 }
  0x49   : > { %270 = vst [vmem:[#allocation4 + $0xd8] sm:$0xff] %v1305_v8 }
  0x4a   : > { %271 = vst [vmem:[#allocation4 + $0x48] sm:$0xff] %v1305_v8 }
  0x4b   : > { %272 = vst [vmem:[#allocation4 + $0x68] sm:$0xff] %v1305_v8 }
  0x4c   : > { %273 = vst [vmem:[#allocation4 + $0xe8] sm:$0xff] %v1305_v8 }
  0x4d   : > { %274 = vst [vmem:[#allocation4 + $0x70] sm:$0xff] %v1305_v8 }
  0x4e   : > { %275 = vst [vmem:[#allocation4 + $0x28] sm:$0xff] %v1305_v8 }
  0x4f   : > { %276 = vst [vmem:[#allocation4 + $0xa0] sm:$0xff] %v1305_v8 }
  0x50   : > { %279 = vst [vmem:[#allocation4 + $0xa8] sm:$0xff] %v1306_v9 }
  0x51   : > { %280 = vst [vmem:[#allocation4 + $0x50] sm:$0xff] %v1306_v9 }
  0x52 PF: > { %v371_v10 = vld [vmem:[#allocation4 + $0xc0] sm:$0xff]  ;;  %v372_v11 = vld [vmem:[#allocation4 + $0x88] sm:$0xff]  ;;  %v369_v12 = vld [vmem:[#allocation4 + $0x18] sm:$0xff]  ;;  %vm373_vm0 = vcmask 588800   ;;  %s1307_s25 = smov 113   ;;  %s1308_s26 = smov 112  }
  0x53   : > { %393 = vmatpush.msra.mxu0 %v371_v10  ;;  %422 = vmatpush.msra.mxu1 %v372_v11  ;;  %v370_v13 = vld [vmem:[#allocation4 + $0x10] sm:$0xff]  ;;  %v367_v14 = vld [vmem:[#allocation4 + $0x60] sm:$0xff]  ;;  %v366_v17 = vld [vmem:[#allocation4 + $0xb8] sm:$0xff]  ;;  %s1309_s27 = smov 111   ;;  %s1310_s28 = smov 1  }
  0x54   : > { %v368_v15 = vld [vmem:[#allocation4 + $0x110] sm:$0xff]  ;;  %v365_v16 = vld [vmem:[#allocation4 + $0x20] sm:$0xff]  ;;  %v361_v20 = vld [vmem:[#allocation4 + $0xf8] sm:$0xff]  ;;  %s1311_s29 = smov 127   ;;  %s1312_s30 = smov 15  }
  0x55   : > { %394 = vmatpush.msra.mxu0 %v369_v12  ;;  %423 = vmatpush.msra.mxu1 %v370_v13  ;;  %v363_v18 = vld [vmem:[#allocation4 + $0x100] sm:$0xff]  ;;  %v362_v21 = vld [vmem:[#allocation4 + $0x78] sm:$0xff]  ;;  %v359_v22 = vld [vmem:[#allocation4 + $0x30] sm:$0xff]  ;;  %s1313_s5 = smov 17   ;;  %s1314_s6 = smov 16  }
  0x56   : > { %v364_v19 = vld [vmem:[#allocation4 + $0xe0] sm:$0xff]  ;;  %v360_v23 = vld [vmem:[#allocation4 + $0xf0] sm:$0xff]  ;;  %v358_v25 = vld [vmem:[#allocation4 + $0x118] sm:$0xff] }
  0x57   : > { %395 = vmatpush.msra.mxu0 %v367_v14  ;;  %424 = vmatpush.msra.mxu1 %v368_v15  ;;  %v357_v24 = vld [vmem:[#allocation4 + $0x40] sm:$0xff]  ;;  %v355_v26 = vld [vmem:[#allocation4 + $0xc8] sm:$0xff]  ;;  %v353_v30 = vld [vmem:[%s1889_s1 + $0x10] sm:$0xff] }
  0x58   : > { %v356_v27 = vld [vmem:[#allocation4 + $0x8] sm:$0xff]  ;;  %v351_v28 = vld [vmem:[%s1889_s1] sm:$0xff]  ;;  %v354_v31 = vld [vmem:[%s1889_s1 + $0x18] sm:$0xff] }
  0x59   : > { %396 = vmatpush.msra.mxu0 %v365_v16  ;;  %425 = vmatpush.msra.mxu1 %v366_v17  ;;  %v352_v29 = vld [vmem:[%s1889_s1 + $0x8] sm:$0xff]  ;;  %v343_v32 = vld [vmem:[%s1386_s11] sm:$0xff]  ;;  %v344_v33 = vld [vmem:[%s1386_s11 + $0x8] sm:$0xff] }
  0x5a   : > { %v345_v40 = vld [vmem:[%s1386_s11 + $0x10] sm:$0xff]  ;;  %v346_v41 = vld [vmem:[%s1386_s11 + $0x18] sm:$0xff]  ;;  %v347_v52 = vld [vmem:[%s1386_s11 + $0x20] sm:$0xff] }
  0x5b   : > { %397 = vmatpush.msra.mxu0 %v363_v18  ;;  %426 = vmatpush.msra.mxu1 %v364_v19  ;;  %v348_v53 = vld [vmem:[%s1386_s11 + $0x28] sm:$0xff]  ;;  %v349_v3 = vld [vmem:[%s1386_s11 + $0x30] sm:$0xff]  ;;  %v350_v8 = vld [vmem:[%s1386_s11 + $0x38] sm:$0xff] }
  0x5d   : > { %398 = vmatpush.msra.mxu0 %v361_v20  ;;  %427 = vmatpush.msra.mxu1 %v362_v21 }
  0x5f   : > { %399 = vmatpush.msra.mxu0 %v359_v22  ;;  %428 = vmatpush.msra.mxu1 %v360_v23 }
  0x61   : > { %400 = vmatpush.msra.mxu0 %v357_v24  ;;  %429 = vmatpush.msra.mxu1 %v358_v25 }
  0x63   : > { %401 = vmatpush.msra.mxu0 %v355_v26  ;;  %430 = vmatpush.msra.mxu1 %v356_v27 }
  0x64   : > { %1148 = vmatmul.msk.f32.vlgmr.msra.gmra.mxu0 %vm373_vm0, %v351_v28  ;;  %1152 = vmatmul.msk.f32.vlgmr.msra.gmra.mxu1 %vm373_vm0, %v351_v28 }
  0x6c   : > { %1149 = vmatmul.msk.f32.gmra.mxu0 %vm373_vm0, %v352_v29  ;;  %1153 = vmatmul.msk.f32.gmra.mxu1 %vm373_vm0, %v352_v29  ;;  %v720_v29 = vld [vmem:[#allocation4 + $0xa8] sm:$0xff] }
  0x6d   : > { %777 = vmatpush.msra.mxu3 %v720_v29 }
  0x74   : > { %1150 = vmatmul.msk.f32.gmra.mxu0 %vm373_vm0, %v353_v30  ;;  %1154 = vmatmul.msk.f32.gmra.mxu1 %vm373_vm0, %v353_v30 }
  0x7c   : > { %1151 = vmatmul.msk.f32.gmra.mxu0 %vm373_vm0, %v354_v31  ;;  %1155 = vmatmul.msk.f32.gmra.mxu1 %vm373_vm0, %v354_v31 }
  0xe1   : > { %v403_v34 = vpop.f32.mrf.mxu0  ;;  %v432_v35 = vpop.f32.mrf.mxu1 }
  0xe2   : > { %v444_v36 = vadd.f32 %v403_v34, %v343_v32  ;;  %v445_v37 = vadd.f32 %v432_v35, %v344_v33  ;;  %v712_v34 = vld [vmem:[#allocation4 + $0x128] sm:$0xff] }
  0xe4   : > { %v1156_v38 = vmul.f32 -1.442695, %v444_v36  ;;  %v1157_v39 = vmul.f32 -1.442695, %v445_v37 }
  0xe6   : > { %1217 = vpow2.f32 %v1156_v38 }
  0xe7   : > { %1219 = vpow2.f32 %v1157_v39 }
  0xe9   : > { %v406_v42 = vpop.f32.mrf.mxu0  ;;  %v435_v43 = vpop.f32.mrf.mxu1 }
  0xea   : > { %v446_v44 = vadd.f32 %v406_v42, %v345_v40  ;;  %v447_v45 = vadd.f32 %v435_v43, %v346_v41  ;;  %v452_v43 = vld [vmem:[#allocation2] sm:$0xff] }
  0xec   : > { %v1218_v46 = vpop.eup %1217  ;;  %v1158_v47 = vmul.f32 -1.442695, %v446_v44  ;;  %v1159_v50 = vmul.f32 -1.442695, %v447_v45 }
  0xed   : > { %v1220_v48 = vpop.eup %1219  ;;  %v1405_v49 = vadd.f32 1.0, %v1218_v46 }
  0xee   : > { %v1407_v51 = vadd.f32 1.0, %v1220_v48  ;;  %1221 = vpow2.f32 %v1158_v47  ;;  %v705_v47 = vld [vmem:[#allocation4 + $0x38] sm:$0xff] }
  0xef   : > { %1223 = vrcp.f32 %v1405_v49  ;;  %vm467_vm1 = vweird.f32 %v1405_v49  ;;  %v471_v15 = vand.u32 2147483647, %v1405_v49  ;;  %v473_v16 = vand.u32 2147483648, %v1405_v49 }
  0xf0   : > { %1225 = vrcp.f32 %v1407_v51  ;;  %vm482_vm2 = vweird.f32 %v1407_v51  ;;  %v486_v20 = vand.u32 2147483647, %v1407_v51  ;;  %v488_v22 = vand.u32 2147483648, %v1407_v51 }
  0xf1   : > { %1227 = vpow2.f32 %v1159_v50  ;;  %v409_v54 = vpop.f32.mrf.mxu0  ;;  %v438_v55 = vpop.f32.mrf.mxu1  ;;  %vm1447_vm4 = vcmp.eq.f32.partialorder %v471_v15, 8.507059e+37  ;;  %v474_v30 = vor.u32 1.1754944e-38, %v473_v16 }
  0xf2   : > { %v448_v56 = vadd.f32 %v409_v54, %v347_v52  ;;  %v449_v57 = vadd.f32 %v438_v55, %v348_v53  ;;  %v489_v48 = vor.u32 1.1754944e-38, %v488_v22  ;;  %vm487_vm15 = vcmp.eq.f32.partialorder %v486_v20, 8.507059e+37 }
  0xf4   : > { %v1222_v58 = vpop.eup %1221  ;;  %v1160_v59 = vmul.f32 -1.442695, %v448_v56  ;;  %v1161_v60 = vmul.f32 -1.442695, %v449_v57 }
  0xf5   : > { %v1413_v61 = vpop.eup %1223  ;;  %v1415_v62 = vadd.f32 1.0, %v1222_v58 }
  0xf6   : > { %v1417_v63 = vpop.eup %1225  ;;  %v463_v0 = vmul.f32 %v1413_v61, %v1405_v49  ;;  %1229 = vpow2.f32 %v1160_v59  ;;  %vm468_vm3 = vweird.f32 %v1413_v61  ;;  %v453_v59 = vld [vmem:[#allocation2 + $0x8] sm:$0xff] }
  0xf7   : > { %v1228_v1 = vpop.eup %1227  ;;  %v478_v2 = vmul.f32 %v1417_v63, %v1407_v51  ;;  %1231 = vrcp.f32 %v1415_v62  ;;  %v511_v25 = vand.u32 2147483648, %v1415_v62  ;;  %v509_v32 = vand.u32 2147483647, %v1415_v62  ;;  %vm1458_vm7 = vmor %vm467_vm1, %vm468_vm3 }
  0xf8   : > { %v464_v4 = vsub.f32 1.0, %v463_v0  ;;  %v1425_v5 = vadd.f32 1.0, %v1228_v1  ;;  %1233 = vpow2.f32 %v1161_v60  ;;  %vm505_vm6 = vweird.f32 %v1415_v62 }
  0xf9   : > { %v412_v6 = vpop.f32.mrf.mxu0  ;;  %v441_v9 = vpop.f32.mrf.mxu1  ;;  %v479_v10 = vsub.f32 1.0, %v478_v2  ;;  %vm483_vm8 = vweird.f32 %v1417_v63  ;;  %v512_v37 = vor.u32 1.1754944e-38, %v511_v25  ;;  %vm510_vm12 = vcmp.eq.f32.partialorder %v509_v32, 8.507059e+37  ;;  %v714_v32 = vld [vmem:[#allocation4 + $0x48] sm:$0xff] }
  0xfa   : > { %1235 = vrcp.f32 %v1425_v5  ;;  %v450_v7 = vadd.f32 %v412_v6, %v349_v3  ;;  %v465_v12 = vmul.f32 %v1413_v61, %v464_v4  ;;  %v451_v17 = vadd.f32 %v441_v9, %v350_v8  ;;  %vm1475_vm13 = vmor %vm482_vm2, %vm483_vm8  ;;  %735 = vmatpush.msra.mxu2 %v714_v32 }
  0xfb   : > { %v480_v21 = vmul.f32 %v1417_v63, %v479_v10  ;;  %v526_v38 = vand.u32 2147483648, %v1425_v5  ;;  %vm520_vm10 = vweird.f32 %v1425_v5  ;;  %v524_v44 = vand.u32 2147483647, %v1425_v5 }
  0xfc   : > { %v1230_v11 = vpop.eup %1229  ;;  %1237 = vtanh.f32 %v450_v7  ;;  %v466_v27 = vadd.f32 %v1413_v61, %v465_v12  ;;  %v1499_v12 = vld [vmem:[%s1891_s3 + $0x8] sm:$0x3]  ;;  %736 = vmatpush.msra.mxu2 %v712_v34  ;;  %v1634_v34 = vld [vmem:[%s1891_s3 + $0x6] sm:$0x3] }
  0xfd   : > { %v1232_v13 = vpop.eup %1231  ;;  %v1431_v14 = vadd.f32 1.0, %v1230_v11  ;;  %v481_v35 = vadd.f32 %v1417_v63, %v480_v21  ;;  %v527_v51 = vor.u32 1.1754944e-38, %v526_v38  ;;  %vm525_vm0 = vcmp.eq.f32.partialorder %v524_v44, 8.507059e+37 }
  0xfe   : > { %v1234_v18 = vpop.eup %1233  ;;  %v501_v19 = vmul.f32 %v1232_v13, %v1415_v62  ;;  %vm506_vm5 = vweird.f32 %v1232_v13  ;;  %v470_v39 = vsel %vm1458_vm7, %v1413_v61, %v466_v27  ;;  %v586_v38 = vlaneseq }
  0xff   : > { %1239 = vrcp.f32 %v1431_v14  ;;  %v1443_v26 = vadd.f32 1.0, %v1234_v18  ;;  %vm507_vm9 = vmor %vm505_vm6, %vm506_vm5  ;;  %v475_v50 = vsel %vm1447_vm4, %v474_v30, %v470_v39  ;;  %v485_v53 = vsel %vm1475_vm13, %v1417_v63, %v481_v35  ;;  %v718_v30 = vld [vmem:[#allocation4 + $0x28] sm:$0xff]  ;;  %v713_v35 = vld [vmem:[#allocation4 + $0xd8] sm:$0xff] }
 0x100   : > { %v1236_v23 = vpop.eup %1235  ;;  %v502_v24 = vsub.f32 1.0, %v501_v19  ;;  %1241 = vtanh.f32 %v451_v17  ;;  %v490_v1 = vsel %vm487_vm15, %v489_v48, %v485_v53  ;;  %vm543_vm2 = vweird.f32 %v1431_v14  ;;  %778 = vmatpush.msra.mxu3 %v718_v30  ;;  %v708_v39 = vld [vmem:[#allocation4] sm:$0xff]  ;;  %v702_v48 = vld [vmem:[#allocation4 + $0x98] sm:$0xff] }
 0x101   : > { %v516_v28 = vmul.f32 %v1236_v23, %v1425_v5  ;;  %1243 = vrcp.f32 %v1443_v26  ;;  %vm521_vm11 = vweird.f32 %v1236_v23  ;;  %v549_v6 = vand.u32 2147483648, %v1431_v14 }
 0x102   : > { %v503_v31 = vmul.f32 %v1232_v13, %v502_v24  ;;  %v1238_v36 = vpop.eup %1237  ;;  %vm522_vm14 = vmor %vm520_vm10, %vm521_vm11  ;;  %v547_v7 = vand.u32 2147483647, %v1431_v14  ;;  %v564_v9 = vand.u32 2147483648, %v1443_v26  ;;  %vm558_vm4 = vweird.f32 %v1443_v26 }
 0x103   : > { %v517_v33 = vsub.f32 1.0, %v516_v28  ;;  %v572_v58 = vmul.f32 %v1238_v36, %v475_v50  ;;  %v550_v15 = vor.u32 1.1754944e-38, %v549_v6  ;;  %v562_v16 = vand.u32 2147483647, %v1443_v26  ;;  %v710_v36 = vld [vmem:[#allocation4 + $0x58] sm:$0xff] }
 0x104   : > { %v504_v40 = vadd.f32 %v1232_v13, %v503_v31  ;;  %vm548_vm6 = vcmp.eq.f32.partialorder %v547_v7, 8.507059e+37  ;;  %v565_v17 = vor.u32 1.1754944e-38, %v564_v9  ;;  %v311_v18 = vperm.slane %v1499_v12, 0  ;;  %v716_v31 = vld [vmem:[#allocation4 + $0xe8] sm:$0xff]  ;;  %737 = vmatpush.msra.mxu2 %v710_v36  ;;  %v1587_v6 = vld [vmem:[%s1890_s2 + $0x38] sm:$0xff] }
 0x105   : > { %v1240_v41 = vpop.eup %1239  ;;  %v518_v42 = vmul.f32 %v1236_v23, %v517_v33  ;;  %vm563_vm8 = vcmp.eq.f32.partialorder %v562_v16, 8.507059e+37  ;;  %779 = vmatpush.msra.mxu3 %v716_v31  ;;  %v715_v33 = vld [vmem:[#allocation4 + $0x68] sm:$0xff]  ;;  %v1532_v44 = vand.u32 127, %v586_v38  ;;  %vm722_vm10 = vcmask 195584  }
 0x106   : > { %v539_v45 = vmul.f32 %v1240_v41, %v1431_v14  ;;  %v508_v46 = vsel %vm507_vm9, %v1232_v13, %v504_v40  ;;  %v1242_v49 = vpop.eup %1241  ;;  %vm544_vm1 = vweird.f32 %v1240_v41  ;;  %v709_v40 = vld [vmem:[#allocation4 + $0x90] sm:$0xff]  ;;  %738 = vmatpush.msra.mxu2 %v708_v39  ;;  %v305_v38 = vperm.slane %v1634_v34, 1 }
 0x107   : > { %v513_v52 = vsel %vm510_vm12, %v512_v37, %v508_v46  ;;  %v519_v54 = vadd.f32 %v1236_v23, %v518_v42  ;;  %v1244_v55 = vpop.eup %1243  ;;  %v573_v4 = vmul.f32 %v1242_v49, %v490_v1  ;;  %vm1491_vm3 = vmor %vm543_vm2, %vm544_vm1  ;;  %793 = vmatpush.msrb.mxu3 %v715_v33  ;;  %v711_v37 = vld [vmem:[#allocation4 + $0x120] sm:$0xff]  ;;  %v706_v42 = vld [vmem:[#allocation4 + $0xb0] sm:$0xff]  ;;  %vm647_vm9 = vcmp.lt.s32.totalorder %v1532_v44, 113 }
 0x108   : > { %v540_v56 = vsub.f32 1.0, %v539_v45  ;;  %v570_v57 = vmul.f32 %v513_v52, %v452_v43  ;;  %v554_v60 = vmul.f32 %v1244_v55, %v1443_v26  ;;  %vm559_vm5 = vweird.f32 %v1244_v55  ;;  %v707_v43 = vld [vmem:[#allocation4 + $0x108] sm:$0xff]  ;;  %739 = vmatpush.msra.mxu2 %v706_v42  ;;  %v704_v46 = vld [vmem:[#allocation4 + $0xd0] sm:$0xff]  ;;  %v703_v49 = vld [vmem:[#allocation4 + $0x80] sm:$0xff] }
 0x109   : > { %v523_v61 = vsel %vm522_vm14, %v1236_v23, %v519_v54  ;;  %vm560_vm7 = vmor %vm558_vm4, %vm559_vm5  ;;  %v312_v23 = vperm.slane %v1499_v12, 1  ;;  %794 = vmatpush.msrb.mxu3 %v713_v35  ;;  %v1537_v45 = vld [vmem:[%s1891_s3 + $0xc] sm:$0x3]  ;;  %vm1894_vm11 = vcmp.lt.s32.totalorder %v1532_v44, 112  ;;  %vm1893_vm12 = vcmp.lt.s32.totalorder %v1532_v44, 111 }
 0x10a   : > { %v541_v62 = vmul.f32 %v1240_v41, %v540_v56  ;;  %v574_v0 = vadd.f32 %v572_v58, %v570_v57  ;;  %v528_v2 = vsel %vm525_vm0, %v527_v51, %v523_v61  ;;  %v555_v63 = vsub.f32 1.0, %v554_v60  ;;  %740 = vmatpush.msra.mxu2 %v704_v46  ;;  %v1545_v54 = vld [vmem:[%s1890_s2 + $0x8] sm:$0xff]  ;;  %v1560_v58 = vld [vmem:[%s1890_s2 + $0x18] sm:$0xff]  ;;  %v1626_v33 = vld [vmem:[%s1891_s3 + $0x4] sm:$0x3] }
 0x10b   : > { %v571_v3 = vmul.f32 %v528_v2, %v453_v59  ;;  %795 = vmatpush.msrb.mxu3 %v711_v37  ;;  %v325_v50 = vperm.slane %v1537_v45, 0  ;;  %v326_v52 = vperm.slane %v1537_v45, 1  ;;  %v681_v60 = vld [vmem:[%s1890_s2 + $0x28] sm:$0xff]  ;;  %vm1895_vm13 = vcmp.lt.s32.totalorder %v1532_v44, 127 }
 0x10c   : > { %v542_v5 = vadd.f32 %v1240_v41, %v541_v62  ;;  %1245 = vtanh.f32 %v574_v0  ;;  %580 = vst [vmem:[#allocation2] sm:$0xff] %v574_v0  ;;  %v556_v8 = vmul.f32 %v1244_v55, %v555_v63  ;;  %741 = vmatpush.msra.mxu2 %v702_v48  ;;  %1162 = vmatmul.msk.f32.vlgmr.msra.gmra.mxu3 %vm722_vm10, %v1545_v54  ;;  %v1571_v62 = vld [vmem:[%s1891_s3 + $0xe] sm:$0x3]  ;;  %v1576_v0 = vld [vmem:[%s1891_s3 + $0x10] sm:$0x3]  ;;  %vm610_vm14 = vcmp.lt.s32.totalorder %v1532_v44, 15 }
 0x10d   : > { %v575_v10 = vadd.f32 %v573_v4, %v571_v3  ;;  %796 = vmatpush.msrb.mxu3 %v709_v40  ;;  %v332_v1 = vperm.slane %v1571_v62, 0  ;;  %v333_v2 = vperm.slane %v1571_v62, 1  ;;  %v721_v63 = vld [vmem:[#allocation4 + $0x50] sm:$0xff]  ;;  %v339_v3 = vperm.slane %v1576_v0, 0 }
 0x10e   : > { %v546_v13 = vsel %vm1491_vm3, %v1240_v41, %v542_v5  ;;  %v557_v14 = vadd.f32 %v1244_v55, %v556_v8  ;;  %v340_v4 = vperm.slane %v1576_v0, 1  ;;  %835 = vmatpush.msrb.mxu0 %v721_v63  ;;  %1180 = vmatpush.msrb.mxu1 %v721_v63  ;;  %v297_v35 = vperm.slane %v1626_v33, 0 }
 0x10f   : > { %1247 = vtanh.f32 %v575_v10  ;;  %581 = vst [vmem:[#allocation2 + $0x8] sm:$0xff] %v575_v10  ;;  %v551_v20 = vsel %vm548_vm6, %v550_v15, %v546_v13  ;;  %797 = vmatpush.msrb.mxu3 %v707_v43  ;;  %v298_v36 = vperm.slane %v1626_v33, 1  ;;  %vm621_vm15 = vcmp.lt.s32.totalorder %v1532_v44, 1 }
 0x110   : > { %v561_v21 = vsel %vm560_vm7, %v1244_v55, %v557_v14  ;;  %v304_v37 = vperm.slane %v1634_v34, 0  ;;  %vm599_vm0 = vcmp.lt.s32.totalorder %v1532_v44, 16  ;;  %vm588_vm1 = vcmp.lt.s32.totalorder %v1532_v44, 17 }
 0x111   : > { %v566_v25 = vsel %vm563_vm8, %v565_v17, %v561_v21  ;;  %798 = vmatpush.msrb.mxu3 %v705_v47  ;;  %v1610_v17 = vld [vmem:[%s1891_s3 + $0xa] sm:$0x3] }
 0x112   : > { %v1246_v19 = vpop.eup %1245  ;;  %v318_v21 = vperm.slane %v1610_v17, 0 }
 0x113   : > { %v578_v22 = vmul.f32 %v1246_v19, %v551_v20  ;;  %799 = vmatpush.msrb.mxu3 %v703_v49  ;;  %v719_v20 = vld [vmem:[#allocation4 + $0xa0] sm:$0xff] }
 0x114   : > { %1163 = vmatmul.msk.f32.gmra.mxu3 %vm722_vm10, %v1560_v58  ;;  %836 = vmatpush.msrb.mxu0 %v719_v20 }
 0x115   : > { %v1248_v24 = vpop.eup %1247  ;;  %643 = vrot.lane.b32.xlu2 %v578_v22, %s1307_s25  ;;  %654 = vrot.lane.b32.xlu1 %v578_v22, %s1308_s26  ;;  %v1510_v26 = vmul.f32 %v578_v22, %v311_v18 }
 0x116   : > { %v579_v27 = vmul.f32 %v1248_v24, %v566_v25  ;;  %665 = vrot.lane.b32.xlu0 %v578_v22, %s1309_s27  ;;  %v717_v24 = vld [vmem:[#allocation4 + $0x70] sm:$0xff]  ;;  %1181 = vmatpush.msrb.mxu1 %v719_v20 }
 0x117   : > { %630 = vst [vmem:[#allocation4 + $0x100] sm:$0xff] %v1510_v26  ;;  %837 = vmatpush.msrb.mxu0 %v717_v24 }
 0x118   : > { %v1516_v28 = vmul.f32 %v579_v27, %v312_v23  ;;  %1182 = vmatpush.msrb.mxu1 %v717_v24  ;;  %1166 = vmatmul.msk.f32.vlgmr.msrb.gmra.mxu0 %vm722_vm10, %v1545_v54 }
 0x119   : > { %1168 = vmatmul.msk.f32.vlgmr.msrb.gmra.mxu1 %vm722_vm10, %v681_v60 }
 0x11a   : > { %631 = vst [vmem:[#allocation4 + $0xe0] sm:$0xff] %v1516_v28 }
 0x11c   : > { %1164 = vmatmul.msk.f32.gmra.mxu3 %vm722_vm10, %v681_v60 }
 0x11d   : > { %645 = vrot.lane.b32.xlu2 %v579_v27, %s1307_s25  ;;  %656 = vrot.lane.b32.xlu1 %v579_v27, %s1308_s26 }
 0x11e   : > { %667 = vrot.lane.b32.xlu0 %v579_v27, %s1309_s27 }
 0x120   : > { %1167 = vmatmul.msk.f32.gmra.mxu0 %vm722_vm10, %v1560_v58 }
 0x121   : > { %1169 = vmatmul.msk.f32.gmra.mxu1 %vm722_vm10, %v1587_v6 }
 0x124   : > { %1165 = vmatmul.msk.f32.gmra.mxu3 %vm722_vm10, %v1587_v6 }
 0x125   : > { %617 = vrot.lane.b32.xlu2 %v578_v22, %s1310_s28  ;;  %634 = vrot.lane.b32.xlu1 %v579_v27, %s1311_s29 }
 0x126   : > { %632 = vrot.lane.b32.xlu0 %v578_v22, %s1311_s29 }
 0x12d   : > { %608 = vrot.lane.b32.xlu2 %v579_v27, %s1312_s30  ;;  %606 = vrot.lane.b32.xlu1 %v578_v22, %s1312_s30 }
 0x12e   : > { %619 = vrot.lane.b32.xlu0 %v579_v27, %s1310_s28 }
 0x135   : > { %582 = vrot.lane.b32.xlu2 %v578_v22, %s1313_s5  ;;  %597 = vrot.lane.b32.xlu1 %v579_v27, %s1314_s6 }
 0x136   : > { %595 = vrot.lane.b32.xlu0 %v578_v22, %s1314_s6  ;;  %v319_v22 = vperm.slane %v1610_v17, 1 }
 0x13e   : > { %584 = vrot.lane.b32.xlu0 %v579_v27, %s1313_s5 }
 0x16f   : > { %v644_v41 = vpop.permute.xlu2 %643 }
 0x177   : > { %v646_v53 = vpop.permute.xlu2 %645 }
 0x178   : > { %v648_v55 = vsel %vm647_vm9, %v644_v41, %v646_v53  ;;  %v649_v51 = vsel %vm647_vm9, %v646_v53, %v644_v41  ;;  %v1667_v53 = vld [vmem:[%s1891_s3 + $0x2] sm:$0x3] }
 0x179   : > { %v650_v56 = vmul.f32 %v648_v55, %v325_v50  ;;  %v651_v57 = vmul.f32 %v649_v51, %v326_v52  ;;  %v290_v54 = vperm.slane %v1667_v53, 0  ;;  %v291_v55 = vperm.slane %v1667_v53, 1 }
 0x17b   : > { %652 = vst [vmem:[#allocation4 + $0x60] sm:$0xff] %v650_v56 }
 0x17c   : > { %653 = vst [vmem:[#allocation4 + $0x110] sm:$0xff] %v651_v57 }
 0x17f   : > { %v618_v19 = vpop.permute.xlu2 %617 }
 0x187   : > { %v655_v59 = vpop.permute.xlu1 %654  ;;  %v609_v39 = vpop.permute.xlu2 %608 }
 0x188   : > { %v666_v61 = vpop.permute.xlu0 %665 }
 0x18f   : > { %v657_v5 = vpop.permute.xlu1 %656  ;;  %v583_v6 = vpop.permute.xlu2 %582 }
 0x190   : > { %v659_v7 = vsel %vm1894_vm11, %v655_v59, %v657_v5  ;;  %v660_v8 = vsel %vm1894_vm11, %v657_v5, %v655_v59  ;;  %v668_v9 = vpop.permute.xlu0 %667 }
 0x191   : > { %v661_v10 = vmul.f32 %v659_v7, %v332_v1  ;;  %v662_v11 = vmul.f32 %v660_v8, %v333_v2  ;;  %v670_v13 = vsel %vm1893_vm12, %v666_v61, %v668_v9  ;;  %v671_v14 = vsel %vm1893_vm12, %v668_v9, %v666_v61  ;;  %v1683_v61 = vld [vmem:[%s1891_s3] sm:$0x3] }
 0x192   : > { %v672_v15 = vmul.f32 %v670_v13, %v339_v3  ;;  %v673_v16 = vmul.f32 %v671_v14, %v340_v4  ;;  %v283_v63 = vperm.slane %v1683_v61, 0  ;;  %v284_v5 = vperm.slane %v1683_v61, 1  ;;  %v676_v13 = vld [vmem:[%s1890_s2] sm:$0xff]  ;;  %v678_v14 = vld [vmem:[%s1890_s2 + $0x10] sm:$0xff] }
 0x193   : > { %663 = vst [vmem:[#allocation4 + $0x18] sm:$0xff] %v661_v10 }
 0x194   : > { %664 = vst [vmem:[#allocation4 + $0x10] sm:$0xff] %v662_v11  ;;  %742 = vmatpush.msra.mxu2 %v672_v15  ;;  %800 = vmatpush.msrb.mxu3 %v673_v16 }
 0x195   : > { %674 = vst [vmem:[#allocation4 + $0xc0] sm:$0xff] %v672_v15  ;;  %v680_v15 = vld [vmem:[%s1890_s2 + $0x20] sm:$0xff] }
 0x196   : > { %675 = vst [vmem:[#allocation4 + $0x88] sm:$0xff] %v673_v16  ;;  %743 = vmatpush.msra.mxu2 %v661_v10  ;;  %801 = vmatpush.msrb.mxu3 %v662_v11  ;;  %v682_v16 = vld [vmem:[%s1890_s2 + $0x30] sm:$0xff] }
 0x197   : > { %v635_v25 = vpop.permute.xlu1 %634 }
 0x198   : > { %v633_v27 = vpop.permute.xlu0 %632  ;;  %744 = vmatpush.msra.mxu2 %v650_v56  ;;  %802 = vmatpush.msrb.mxu3 %v651_v57 }
 0x199   : > { %v637_v29 = vsel %vm1895_vm13, %v633_v27, %v635_v25  ;;  %v638_v30 = vsel %vm1895_vm13, %v635_v25, %v633_v27  ;;  %v839_v27 = vpop.f32.mrf.mxu0 }
 0x19a   : > { %v639_v31 = vmul.f32 %v637_v29, %v318_v21  ;;  %v640_v32 = vmul.f32 %v638_v30, %v319_v22 }
 0x19c   : > { %641 = vst [vmem:[#allocation4 + $0x20] sm:$0xff] %v639_v31  ;;  %745 = vmatpush.msra.mxu2 %v639_v31  ;;  %803 = vmatpush.msrb.mxu3 %v640_v32 }
 0x19d   : > { %642 = vst [vmem:[#allocation4 + $0xb8] sm:$0xff] %v640_v32 }
 0x19e   : > { %746 = vmatpush.msra.mxu2 %v1510_v26  ;;  %804 = vmatpush.msrb.mxu3 %v1516_v28 }
 0x19f   : > { %v607_v40 = vpop.permute.xlu1 %606 }
 0x1a0   : > { %v611_v41 = vsel %vm610_vm14, %v607_v40, %v609_v39  ;;  %v612_v42 = vsel %vm610_vm14, %v609_v39, %v607_v40  ;;  %v620_v43 = vpop.permute.xlu0 %619 }
 0x1a1   : > { %v613_v46 = vmul.f32 %v612_v42, %v297_v35  ;;  %v614_v47 = vmul.f32 %v611_v41, %v298_v36  ;;  %v622_v26 = vsel %vm621_vm15, %v618_v19, %v620_v43  ;;  %v623_v28 = vsel %vm621_vm15, %v620_v43, %v618_v19  ;;  %v781_v19 = vpop.f32.mrf.mxu3  ;;  %v842_v41 = vpop.f32.mrf.mxu0 }
 0x1a2   : > { %v624_v48 = vmul.f32 %v623_v28, %v304_v37  ;;  %v625_v49 = vmul.f32 %v622_v26, %v305_v38 }
 0x1a3   : > { %615 = vst [vmem:[#allocation4 + $0x30] sm:$0xff] %v613_v46 }
 0x1a4   : > { %616 = vst [vmem:[#allocation4 + $0xf0] sm:$0xff] %v614_v47  ;;  %747 = vmatpush.msra.mxu2 %v624_v48  ;;  %805 = vmatpush.msrb.mxu3 %v625_v49 }
 0x1a5   : > { %626 = vst [vmem:[#allocation4 + $0xf8] sm:$0xff] %v624_v48 }
 0x1a6   : > { %627 = vst [vmem:[#allocation4 + $0x78] sm:$0xff] %v625_v49  ;;  %748 = vmatpush.msra.mxu2 %v613_v46  ;;  %806 = vmatpush.msrb.mxu3 %v614_v47 }
 0x1a7   : > { %v598_v51 = vpop.permute.xlu1 %597 }
 0x1a8   : > { %v596_v56 = vpop.permute.xlu0 %595 }
 0x1a9   : > { %v600_v57 = vsel %vm599_vm0, %v596_v56, %v598_v51  ;;  %v601_v58 = vsel %vm599_vm0, %v598_v51, %v596_v56  ;;  %v784_v20 = vpop.f32.mrf.mxu3 }
 0x1aa   : > { %v602_v59 = vmul.f32 %v601_v58, %v290_v54  ;;  %v603_v60 = vmul.f32 %v600_v57, %v291_v55  ;;  %v845_v57 = vpop.f32.mrf.mxu1 }
 0x1ac   : > { %604 = vst [vmem:[#allocation4 + $0x40] sm:$0xff] %v602_v59  ;;  %749 = vmatpush.msra.mxu2 %v602_v59  ;;  %807 = vmatpush.msrb.mxu3 %v603_v60 }
 0x1ad   : > { %605 = vst [vmem:[#allocation4 + $0x118] sm:$0xff] %v603_v60 }
 0x1b0   : > { %v585_v7 = vpop.permute.xlu0 %584 }
 0x1b1   : > { %v589_v8 = vsel %vm588_vm1, %v583_v6, %v585_v7  ;;  %v590_v9 = vsel %vm588_vm1, %v585_v7, %v583_v6  ;;  %v787_v24 = vpop.f32.mrf.mxu3 }
 0x1b2   : > { %v591_v10 = vmul.f32 %v590_v9, %v283_v63  ;;  %v592_v11 = vmul.f32 %v589_v8, %v284_v5 }
 0x1b4   : > { %593 = vst [vmem:[#allocation4 + $0xc8] sm:$0xff] %v591_v10  ;;  %750 = vmatpush.msra.mxu2 %v591_v10  ;;  %808 = vmatpush.msrb.mxu3 %v592_v11 }
 0x1b5   : > { %594 = vst [vmem:[#allocation4 + $0x8] sm:$0xff] %v592_v11  ;;  %751 = vmatmul.f32.vlgmr.msra.gmra.mxu2 %v676_v13  ;;  %809 = vmatmul.f32.vlgmr.msrb.gmra.mxu3 %v676_v13 }
 0x1b9   : > { %v790_v25 = vpop.f32.mrf.mxu3 }
 0x1bd   : > { %754 = vmatmul.f32.gmra.mxu2 %v678_v14  ;;  %812 = vmatmul.f32.gmra.mxu3 %v678_v14 }
 0x1c5   : > { %757 = vmatmul.f32.gmra.mxu2 %v680_v15  ;;  %815 = vmatmul.f32.gmra.mxu3 %v680_v15 }
 0x1cd   : > { %760 = vmatmul.f32.gmra.mxu2 %v682_v16  ;;  %818 = vmatmul.f32.gmra.mxu3 %v682_v16 }
 0x238   : > { %v752_v29 = vpop.f32.mrf.mxu2  ;;  %v810_v30 = vpop.f32.mrf.mxu3 }
 0x239   : > { %v782_v31 = vadd.f32 %v781_v19, %v752_v29  ;;  %v840_v32 = vadd.f32 %v839_v27, %v810_v30  ;;  %v848_v30 = vpop.f32.mrf.mxu1 }
 0x23b   : > { %v1170_v39 = vmul.f32 -1.442695, %v782_v31  ;;  %v1171_v40 = vmul.f32 -1.442695, %v840_v32 }
 0x23d   : > { %1249 = vpow2.f32 %v1170_v39 }
 0x23e   : > { %1251 = vpow2.f32 %v1171_v40 }
 0x240   : > { %v755_v42 = vpop.f32.mrf.mxu2  ;;  %v813_v43 = vpop.f32.mrf.mxu3 }
 0x241   : > { %v785_v46 = vadd.f32 %v784_v20, %v755_v42  ;;  %v843_v47 = vadd.f32 %v842_v41, %v813_v43 }
 0x243   : > { %v1250_v26 = vpop.eup %1249  ;;  %v1172_v28 = vmul.f32 -1.442695, %v785_v46  ;;  %v1173_v51 = vmul.f32 -1.442695, %v843_v47 }
 0x244   : > { %v1252_v48 = vpop.eup %1251  ;;  %v1708_v49 = vadd.f32 1.0, %v1250_v26 }
 0x245   : > { %v1710_v56 = vadd.f32 1.0, %v1252_v48  ;;  %1253 = vpow2.f32 %v1172_v28 }
 0x246   : > { %1255 = vrcp.f32 %v1708_v49  ;;  %vm866_vm2 = vweird.f32 %v1708_v49  ;;  %v870_v42 = vand.u32 2147483647, %v1708_v49  ;;  %v872_v43 = vand.u32 2147483648, %v1708_v49 }
 0x247   : > { %1257 = vrcp.f32 %v1710_v56  ;;  %vm881_vm3 = vweird.f32 %v1710_v56  ;;  %v887_v48 = vand.u32 2147483648, %v1710_v56 }
 0x248   : > { %1259 = vpow2.f32 %v1173_v51  ;;  %v758_v58 = vpop.f32.mrf.mxu2  ;;  %v816_v59 = vpop.f32.mrf.mxu3  ;;  %vm1746_vm5 = vcmp.eq.f32.partialorder %v870_v42, 8.507059e+37 }
 0x249   : > { %v788_v60 = vadd.f32 %v787_v24, %v758_v58  ;;  %v846_v6 = vadd.f32 %v845_v57, %v816_v59 }
 0x24b   : > { %v1254_v7 = vpop.eup %1253  ;;  %v1174_v8 = vmul.f32 -1.442695, %v788_v60  ;;  %v1175_v9 = vmul.f32 -1.442695, %v846_v6 }
 0x24c   : > { %v1714_v10 = vpop.eup %1255  ;;  %v1716_v11 = vadd.f32 1.0, %v1254_v7 }
 0x24d   : > { %v1718_v13 = vpop.eup %1257  ;;  %v862_v14 = vmul.f32 %v1714_v10, %v1708_v49  ;;  %1261 = vpow2.f32 %v1174_v8  ;;  %vm867_vm4 = vweird.f32 %v1714_v10  ;;  %v873_v8 = vor.u32 1.1754944e-38, %v872_v43 }
 0x24e   : > { %v1260_v15 = vpop.eup %1259  ;;  %v877_v16 = vmul.f32 %v1718_v13, %v1710_v56  ;;  %1263 = vrcp.f32 %v1716_v11  ;;  %v910_v58 = vand.u32 2147483648, %v1716_v11  ;;  %vm904_vm7 = vweird.f32 %v1716_v11  ;;  %vm1757_vm8 = vmor %vm866_vm2, %vm867_vm4 }
 0x24f   : > { %v863_v19 = vsub.f32 1.0, %v862_v14  ;;  %v1725_v20 = vadd.f32 1.0, %v1260_v15  ;;  %1265 = vpow2.f32 %v1175_v9  ;;  %v908_v14 = vand.u32 2147483647, %v1716_v11 }
 0x250   : > { %v761_v24 = vpop.f32.mrf.mxu2  ;;  %v819_v29 = vpop.f32.mrf.mxu3  ;;  %v878_v31 = vsub.f32 1.0, %v877_v16  ;;  %vm882_vm10 = vweird.f32 %v1718_v13 }
 0x251   : > { %1267 = vrcp.f32 %v1725_v20  ;;  %v791_v27 = vadd.f32 %v790_v25, %v761_v24  ;;  %v864_v39 = vmul.f32 %v1714_v10, %v863_v19  ;;  %v849_v46 = vadd.f32 %v848_v30, %v819_v29  ;;  %vm1774_vm13 = vmor %vm881_vm3, %vm882_vm10 }
 0x252   : > { %v885_v25 = vand.u32 2147483647, %v1710_v56  ;;  %v879_v28 = vmul.f32 %v1718_v13, %v878_v31  ;;  %v925_v29 = vand.u32 2147483648, %v1725_v20  ;;  %vm919_vm2 = vweird.f32 %v1725_v20 }
 0x253   : > { %v1262_v32 = vpop.eup %1261  ;;  %1269 = vtanh.f32 %v791_v27  ;;  %v865_v60 = vadd.f32 %v1714_v10, %v864_v39  ;;  %v911_v27 = vor.u32 1.1754944e-38, %v910_v58  ;;  %v923_v39 = vand.u32 2147483647, %v1725_v20 }
 0x254   : > { %v1264_v40 = vpop.eup %1263  ;;  %v1730_v41 = vadd.f32 1.0, %v1262_v32  ;;  %v880_v19 = vadd.f32 %v1718_v13, %v879_v28  ;;  %v851_v32 = vld [vmem:[#allocation3 + $0x8] sm:$0xff]  ;;  %vm909_vm11 = vcmp.eq.f32.partialorder %v908_v14, 8.507059e+37  ;;  %v926_v56 = vor.u32 1.1754944e-38, %v925_v29  ;;  %v852_v14 = vld [vmem:[#allocation3] sm:$0xff] }
 0x255   : > { %v1266_v47 = vpop.eup %1265  ;;  %v900_v26 = vmul.f32 %v1264_v40, %v1716_v11  ;;  %vm905_vm6 = vweird.f32 %v1264_v40  ;;  %v869_v11 = vsel %vm1757_vm8, %v1714_v10, %v865_v60  ;;  %vm886_vm3 = vcmp.eq.f32.partialorder %v885_v25, 8.507059e+37 }
 0x256   : > { %1271 = vrcp.f32 %v1730_v41  ;;  %v1742_v59 = vadd.f32 1.0, %v1266_v47  ;;  %vm906_vm12 = vmor %vm904_vm7, %vm905_vm6  ;;  %v948_v29 = vand.u32 2147483648, %v1730_v41 }
 0x257   : > { %v1268_v51 = vpop.eup %1267  ;;  %v901_v57 = vsub.f32 1.0, %v900_v26  ;;  %1273 = vtanh.f32 %v849_v46  ;;  %v888_v46 = vor.u32 1.1754944e-38, %v887_v48  ;;  %v874_v26 = vsel %vm1746_vm5, %v873_v8, %v869_v11 }
 0x258   : > { %v915_v6 = vmul.f32 %v1268_v51, %v1725_v20  ;;  %1275 = vrcp.f32 %v1742_v59  ;;  %vm920_vm4 = vweird.f32 %v1268_v51  ;;  %vm924_vm5 = vcmp.eq.f32.partialorder %v923_v39, 8.507059e+37 }
 0x259   : > { %v902_v9 = vmul.f32 %v1264_v40, %v901_v57  ;;  %v1270_v24 = vpop.eup %1269  ;;  %v884_v57 = vsel %vm1774_vm13, %v1718_v13, %v880_v19  ;;  %vm942_vm13 = vweird.f32 %v1730_v41  ;;  %vm957_vm7 = vweird.f32 %v1742_v59 }
 0x25a   : > { %v916_v15 = vsub.f32 1.0, %v915_v6  ;;  %v889_v16 = vsel %vm886_vm3, %v888_v46, %v884_v57  ;;  %v949_v39 = vor.u32 1.1754944e-38, %v948_v29 }
 0x25b   : > { %v903_v30 = vadd.f32 %v1264_v40, %v902_v9  ;;  %v971_v9 = vmul.f32 %v1270_v24, %v874_v26  ;;  %v946_v24 = vand.u32 2147483647, %v1730_v41 }
 0x25c   : > { %v1272_v31 = vpop.eup %1271  ;;  %v917_v49 = vmul.f32 %v1268_v51, %v916_v15 }
 0x25d   : > { %v938_v42 = vmul.f32 %v1272_v31, %v1730_v41  ;;  %v907_v43 = vsel %vm906_vm12, %v1264_v40, %v903_v30  ;;  %v1274_v47 = vpop.eup %1273  ;;  %vm921_vm12 = vmor %vm919_vm2, %vm920_vm4  ;;  %vm947_vm10 = vcmp.eq.f32.partialorder %v946_v24, 8.507059e+37 }
 0x25e   : > { %v912_v28 = vsel %vm909_vm11, %v911_v27, %v907_v43  ;;  %v918_v40 = vadd.f32 %v1268_v51, %v917_v49  ;;  %v1276_v58 = vpop.eup %1275  ;;  %vm943_vm11 = vweird.f32 %v1272_v31  ;;  %v972_v11 = vmul.f32 %v1274_v47, %v889_v16 }
 0x25f   : > { %v939_v60 = vsub.f32 1.0, %v938_v42  ;;  %v969_v6 = vmul.f32 %v912_v28, %v851_v32  ;;  %v953_v48 = vmul.f32 %v1276_v58, %v1742_v59  ;;  %vm944_vm6 = vmor %vm942_vm13, %vm943_vm11  ;;  %vm958_vm8 = vweird.f32 %v1276_v58 }
 0x260   : > { %v922_v7 = vsel %vm921_vm12, %v1268_v51, %v918_v40  ;;  %v963_v51 = vand.u32 2147483648, %v1742_v59  ;;  %v961_v42 = vand.u32 2147483647, %v1742_v59  ;;  %vm959_vm2 = vmor %vm957_vm7, %vm958_vm8 }
 0x261   : > { %v940_v8 = vmul.f32 %v1272_v31, %v939_v60  ;;  %v973_v15 = vadd.f32 %v971_v9, %v969_v6  ;;  %v927_v27 = vsel %vm924_vm5, %v926_v56, %v922_v7  ;;  %v954_v13 = vsub.f32 1.0, %v953_v48 }
 0x262   : > { %v970_v19 = vmul.f32 %v927_v27, %v852_v14  ;;  %v964_v41 = vor.u32 1.1754944e-38, %v963_v51  ;;  %vm962_vm4 = vcmp.eq.f32.partialorder %v961_v42, 8.507059e+37 }
 0x263   : > { %v941_v20 = vadd.f32 %v1272_v31, %v940_v8  ;;  %1277 = vtanh.f32 %v973_v15  ;;  %979 = vst [vmem:[#allocation3 + $0x8] sm:$0xff] %v973_v15  ;;  %v955_v25 = vmul.f32 %v1276_v58, %v954_v13 }
 0x264   : > { %v974_v30 = vadd.f32 %v972_v11, %v970_v19 }
 0x265   : > { %v945_v49 = vsel %vm944_vm6, %v1272_v31, %v941_v20  ;;  %v956_v32 = vadd.f32 %v1276_v58, %v955_v25 }
 0x266   : > { %1279 = vtanh.f32 %v974_v30  ;;  %980 = vst [vmem:[#allocation3] sm:$0xff] %v974_v30  ;;  %v950_v10 = vsel %vm947_vm10, %v949_v39, %v945_v49 }
 0x267   : > { %v960_v46 = vsel %vm959_vm2, %v1276_v58, %v956_v32 }
 0x268   : > { %v965_v28 = vsel %vm962_vm4, %v964_v41, %v960_v46 }
 0x269   : > { %v1278_v43 = vpop.eup %1277 }
 0x26a   : > { %v977_v47 = vmul.f32 %v1278_v43, %v950_v10 }
 0x26c   : > { %v1280_v26 = vpop.eup %1279  ;;  %981 = vst [vmem:[%s1384_s10] sm:$0xff] %v977_v47  ;;  %v1023_v31 = vmul.f32 %v977_v47, %v311_v18  ;;  %993 = vrot.lane.b32.xlu0 %v977_v47, %s1314_s6  ;;  %983 = vrot.lane.b32.xlu1 %v977_v47, %s1313_s5 }
 0x26d   : > { %v978_v59 = vmul.f32 %v1280_v26, %v965_v28 }
 0x26e   : > { %1025 = vst [vmem:[#allocation4 + $0x58] sm:$0xff] %v1023_v31 }
 0x26f   : > { %982 = vst [vmem:[%s1384_s10 + $0x8] sm:$0xff] %v978_v59  ;;  %v1024_v57 = vmul.f32 %v978_v59, %v312_v23  ;;  %985 = vrot.lane.b32.xlu2 %v978_v59, %s1313_s5 }
 0x271   : > { %1026 = vst [vmem:[#allocation4 + $0x120] sm:$0xff] %v1024_v57 }
 0x274   : > { %1005 = vrot.lane.b32.xlu0 %v978_v59, %s1312_s30  ;;  %995 = vrot.lane.b32.xlu1 %v978_v59, %s1314_s6 }
 0x277   : > { %1003 = vrot.lane.b32.xlu2 %v977_v47, %s1312_s30 }
 0x27c   : > { %1027 = vrot.lane.b32.xlu0 %v977_v47, %s1311_s29  ;;  %1013 = vrot.lane.b32.xlu1 %v977_v47, %s1310_s28 }
 0x27f   : > { %1015 = vrot.lane.b32.xlu2 %v978_v59, %s1310_s28 }
 0x284   : > { %1039 = vrot.lane.b32.xlu0 %v978_v59, %s1307_s25  ;;  %1029 = vrot.lane.b32.xlu1 %v978_v59, %s1311_s29 }
 0x287   : > { %1037 = vrot.lane.b32.xlu2 %v977_v47, %s1307_s25 }
 0x28c   : > { %1057 = vrot.lane.b32.xlu0 %v977_v47, %s1309_s27  ;;  %1047 = vrot.lane.b32.xlu1 %v977_v47, %s1308_s26 }
 0x28f   : > { %1049 = vrot.lane.b32.xlu2 %v978_v59, %s1308_s26 }
 0x294   : > { %1059 = vrot.lane.b32.xlu1 %v978_v59, %s1309_s27 }
 0x2c9   : > { %v986_v12 = vpop.permute.xlu2 %985 }
 0x2d1   : > { %v1004_v56 = vpop.permute.xlu2 %1003 }
 0x2d9   : > { %v1016_v27 = vpop.permute.xlu2 %1015 }
 0x2de   : > { %v994_v18 = vpop.permute.xlu0 %993  ;;  %v984_v23 = vpop.permute.xlu1 %983 }
 0x2df   : > { %v987_v40 = vsel %vm588_vm1, %v984_v23, %v986_v12  ;;  %v988_v58 = vsel %vm588_vm1, %v986_v12, %v984_v23  ;;  %vm1914_vm1 = vcmp.lt.s32.totalorder %v1532_v44, 111 }
 0x2e0   : > { %v989_v60 = vmul.f32 %v988_v58, %v283_v63  ;;  %v990_v6 = vmul.f32 %v987_v40, %v284_v5  ;;  %vm1915_vm12 = vmmov %vm1914_vm1 }
 0x2e1   : > { %v1038_v53 = vpop.permute.xlu2 %1037 }
 0x2e2   : > { %991 = vst [vmem:[#allocation4 + $0x98] sm:$0xff] %v989_v60 }
 0x2e3   : > { %992 = vst [vmem:[#allocation4 + $0x80] sm:$0xff] %v990_v6 }
 0x2e6   : > { %v1006_v9 = vpop.permute.xlu0 %1005  ;;  %v996_v14 = vpop.permute.xlu1 %995 }
 0x2e7   : > { %v1007_v48 = vsel %vm610_vm14, %v1004_v56, %v1006_v9  ;;  %v1008_v7 = vsel %vm610_vm14, %v1006_v9, %v1004_v56  ;;  %v997_v8 = vsel %vm599_vm0, %v994_v18, %v996_v14  ;;  %v998_v15 = vsel %vm599_vm0, %v996_v14, %v994_v18 }
 0x2e8   : > { %v1009_v61 = vmul.f32 %v1008_v7, %v297_v35  ;;  %v1010_v63 = vmul.f32 %v1007_v48, %v298_v36  ;;  %v999_v5 = vmul.f32 %v998_v15, %v290_v54  ;;  %v1000_v16 = vmul.f32 %v997_v8, %v291_v55 }
 0x2e9   : > { %vm1910_vm14 = vcmp.lt.s32.totalorder %v1532_v44, 127  ;;  %v1050_v30 = vpop.permute.xlu2 %1049 }
 0x2ea   : > { %1011 = vst [vmem:[#allocation4 + $0xb0] sm:$0xff] %v1009_v61 }
 0x2eb   : > { %1012 = vst [vmem:[#allocation4 + $0x108] sm:$0xff] %v1010_v63 }
 0x2ec   : > { %1001 = vst [vmem:[#allocation4 + $0xd0] sm:$0xff] %v999_v5 }
 0x2ed   : > { %1002 = vst [vmem:[#allocation4 + $0x38] sm:$0xff] %v1000_v16 }
 0x2ee   : > { %v1028_v13 = vpop.permute.xlu0 %1027  ;;  %v1014_v19 = vpop.permute.xlu1 %1013 }
 0x2ef   : > { %v1017_v11 = vsel %vm621_vm15, %v1014_v19, %v1016_v27  ;;  %v1018_v33 = vsel %vm621_vm15, %v1016_v27, %v1014_v19  ;;  %vm1911_vm15 = vmmov %vm1910_vm14 }
 0x2f0   : > { %v1019_v35 = vmul.f32 %v1018_v33, %v304_v37  ;;  %v1020_v36 = vmul.f32 %v1017_v11, %v305_v38 }
 0x2f2   : > { %1021 = vst [vmem:[#allocation4] sm:$0xff] %v1019_v35 }
 0x2f3   : > { %1022 = vst [vmem:[#allocation4 + $0x90] sm:$0xff] %v1020_v36 }
 0x2f6   : > { %v1040_v54 = vpop.permute.xlu0 %1039  ;;  %v1030_v55 = vpop.permute.xlu1 %1029 }
 0x2f7   : > { %v1041_v20 = vsel %vm647_vm9, %v1038_v53, %v1040_v54  ;;  %v1042_v29 = vsel %vm647_vm9, %v1040_v54, %v1038_v53  ;;  %v1031_v24 = vsel %vm1910_vm14, %v1028_v13, %v1030_v55  ;;  %v1032_v37 = vsel %vm1911_vm15, %v1030_v55, %v1028_v13 }
 0x2f8   : > { %v1043_v34 = vmul.f32 %v1041_v20, %v325_v50  ;;  %v1044_v38 = vmul.f32 %v1042_v29, %v326_v52  ;;  %v1033_v25 = vmul.f32 %v1031_v24, %v318_v21  ;;  %v1034_v51 = vmul.f32 %v1032_v37, %v319_v22 }
 0x2f9   : > { %vm1912_vm9 = vcmp.lt.s32.totalorder %v1532_v44, 112 }
 0x2fa   : > { %1045 = vst [vmem:[#allocation4 + $0x48] sm:$0xff] %v1043_v34  ;;  %vm1913_vm0 = vmmov %vm1912_vm9 }
 0x2fb   : > { %1046 = vst [vmem:[#allocation4 + $0x68] sm:$0xff] %v1044_v38 }
 0x2fc   : > { %1035 = vst [vmem:[#allocation4 + $0x128] sm:$0xff] %v1033_v25 }
 0x2fd   : > { %1036 = vst [vmem:[#allocation4 + $0xd8] sm:$0xff] %v1034_v51 }
 0x2fe   : > { %v1048_v49 = vpop.permute.xlu1 %1047  ;;  %v1058_v17 = vpop.permute.xlu0 %1057 }
 0x2ff   : > { %v1051_v32 = vsel %vm1912_vm9, %v1048_v49, %v1050_v30  ;;  %v1052_v50 = vsel %vm1913_vm0, %v1050_v30, %v1048_v49 }
 0x300   : > { %v1053_v45 = vmul.f32 %v1051_v32, %v332_v1  ;;  %v1054_v52 = vmul.f32 %v1052_v50, %v333_v2 }
 0x302   : > { %1055 = vst [vmem:[#allocation4 + $0xe8] sm:$0xff] %v1053_v45 }
 0x303   : > { %1056 = vst [vmem:[#allocation4 + $0x70] sm:$0xff] %v1054_v52 }
 0x306   : > { %v1060_v21 = vpop.permute.xlu1 %1059 }
 0x307   : > { %v1061_v22 = vsel %vm1914_vm1, %v1058_v17, %v1060_v21  ;;  %v1062_v39 = vsel %vm1915_vm12, %v1060_v21, %v1058_v17 }
 0x308   : > { %v1063_v42 = vmul.f32 %v1061_v22, %v339_v3  ;;  %v1064_v41 = vmul.f32 %v1062_v39, %v340_v4 }
 0x30a   : > { %1065 = vst [vmem:[#allocation4 + $0x28] sm:$0xff] %v1063_v42 }
 0x30b   : > { %1066 = vst [vmem:[#allocation4 + $0xa0] sm:$0xff] %v1064_v41 }
 0x30c PF: > { %p11_p10 = scmp.ge.s32.totalorder %s1359_s19, 4   ;;  %s1916_s15 = smov %s1299_s16 }
 0x30d   : > { %s1917_s16 = smov %s1368_s22  ;;  %s1918_s17 = smov %s1359_s19 }
 0x30e   :  { %13 = sbr.rel (!%p11_p10) target bundleno = 2 (0x2), region = 106 }

</bundles_post_ra>
